<compile_context>
chip_gen: v7x
topology: tpu7x:2x2x1
jax: 0.10.0
libtpu: 0.0.40
codegen_flags: <defaults>
</compile_context>

<pallas_src>
import functools

import jax
import jax.numpy as jnp
from jax.experimental import pallas as pl
from jax.experimental.pallas import tpu as pltpu


def _kl_sum(t_logits, s_logits, t_scale, s_scale):
    """sum over rows of  sum_j p_j * (log p_j - log(q_j + 1e-8))  where p/q are
    row-softmaxes of the scaled logits.  Uses log-softmax identities so only
    exp/log full-tile passes remain (no full-tile divide, no 0*log(0))."""
    eps = jnp.float32(1e-8)
    # Teacher: p_j = te_j / ts,  log p_j = tz_j - log ts.
    tz = (t_logits - jnp.max(t_logits, axis=-1, keepdims=True)) * t_scale
    te = jnp.exp(tz)
    ts = jnp.sum(te, axis=-1, keepdims=True)
    # Student: q_j = se_j / ss,  log(q_j + eps) = log(se_j + eps*ss) - log ss.
    sz = (s_logits - jnp.max(s_logits, axis=-1, keepdims=True)) * s_scale
    se = jnp.exp(sz)
    ss = jnp.sum(se, axis=-1, keepdims=True)
    s_log = jnp.log(se + eps * ss)
    num = jnp.sum(te * (tz - s_log), axis=-1, keepdims=True)
    # Remaining work is per-row (X, 1) only; keep it exact (approx reciprocal
    # would blow the 1e-5/1e-6 tolerance).
    row_kl = num / ts - jnp.log(ts) + jnp.log(ss)
    return jnp.sum(row_kl)


def _distill_kernel(tA_ref, tV_ref, sA_ref, sV_ref, out_ref, *,
                    heads_per_block, real_bh, inv_temp,
                    inv_sqrt_dh_t, inv_sqrt_dh_s, unroll):
    """One grid step: loop over G heads, accumulate one scalar partial KL."""
    base = pl.program_id(0) * heads_per_block

    def body(h, acc):
        # Mask heads added by padding BH up to G * num_steps.
        w = jnp.where(base + h < real_bh, jnp.float32(1.0), jnp.float32(0.0))

        # --- attention-distribution transfer ---
        kl_att = _kl_sum(tA_ref[h].astype(jnp.float32),
                         sA_ref[h].astype(jnp.float32),
                         inv_temp, inv_temp)

        # --- value-relation transfer ---
        # Values arrive lane-dense as (dh, X); Gram = Vt^T @ Vt.  Only the
        # small (dh, X) tile is relayouted before a canonical MXU matmul.
        # TODO(synk): switch to pl.dot(..., trans_a=True) / dot_general with
        # a ((0,),(0,)) contraction if Mosaic folds the relayout into the MXU
        # push on this JAX version (saves the per-head XLU transpose).
        tvt = tV_ref[h].astype(jnp.float32)                 # (dh_t, X)
        svt = sV_ref[h].astype(jnp.float32)                 # (dh_s, X)
        t_rel = jnp.dot(tvt.T, tvt, preferred_element_type=jnp.float32)
        s_rel = jnp.dot(svt.T, svt, preferred_element_type=jnp.float32)
        kl_vr = _kl_sum(t_rel, s_rel, inv_sqrt_dh_t, inv_sqrt_dh_s)

        return acc + w * (kl_att + kl_vr)

    total = jax.lax.fori_loop(0, heads_per_block, body, jnp.float32(0.0),
                              unroll=unroll)
    # Lane-dense per-step partial sum (unmasked vst); no cross-step
    # accumulator, so the grid axis stays "parallel" (megacore-shardable).
    out_ref[...] = jnp.full(out_ref.shape, total, dtype=jnp.float32)


def _round_up(x, m):
    return (x + m - 1) // m * m


def _vmem_capacity_bytes():
    try:
        return int(pltpu.get_tpu_info().vmem_capacity_bytes)
    except Exception:
        return 64 * 1024 * 1024  # conservative fallback (v7x per-TC size)


def distillation_loss(teacher_A, teacher_values, student_A, student_values,
                      temperature=2.0, attention_dtype=None):
    B, H, X, X2 = student_A.shape
    assert X == X2, "attention logits must be square over the last two dims"
    dh_t = teacher_values.shape[-1]
    dh_s = student_values.shape[-1]
    BH = B * H

    tA = teacher_A.reshape(BH, X, X)
    sA = student_A.reshape(BH, X, X)
    # Optional bf16 attention inputs: halves the dominant DMA on the
    # bandwidth-bound v5e.  Off by default so the f32 reference check holds.
    if attention_dtype is not None:
        tA = tA.astype(attention_dtype)
        sA = sA.astype(attention_dtype)

    # Lane-dense value layout: (BH, dh, X) puts the sequence axis on the
    # 128-lane dim, so dh~32 values are not padded 4x in HBM/VMEM/DMA.
    tV = jnp.swapaxes(teacher_values.reshape(BH, X, dh_t), 1, 2)
    sV = jnp.swapaxes(student_values.reshape(BH, X, dh_s), 1, 2)

    # ---- generation-aware VMEM budgeting --------------------------------
    vmem_cap = _vmem_capacity_bytes()
    if vmem_cap >= 96 * 1024 * 1024:           # 128 MiB parts (v5e / v6e)
        input_budget = 32 * 1024 * 1024
        vmem_limit = 96 * 1024 * 1024
    else:                                      # 64 MiB per TensorCore (v7x)
        input_budget = 10 * 1024 * 1024
        vmem_limit = 44 * 1024 * 1024
    vmem_limit = min(vmem_limit, int(vmem_cap * 0.75))
    input_budget = min(input_budget, vmem_limit // 3)

    def padded_bytes(rows, cols, itemsize):
        return _round_up(rows, 8) * _round_up(cols, 128) * itemsize

    per_head_bytes = (
        padded_bytes(X, X, tA.dtype.itemsize)
        + padded_bytes(X, X, sA.dtype.itemsize)
        + padded_bytes(dh_t, X, tV.dtype.itemsize)
        + padded_bytes(dh_s, X, sV.dtype.itemsize)
    )

    # Heads per grid step: as large as the double-buffered input budget
    # allows, while keeping >= 2 (even, preferably >= 4) grid steps so both
    # v7x TensorCores get work and the pipeline can overlap prefetch/compute.
    max_g = max(1, input_budget // (2 * per_head_bytes))
    num_steps = max(4 if BH >= 4 else 2, (BH + max_g - 1) // max_g)
    if num_steps % 2:
        num_steps += 1
    G = (BH + num_steps - 1) // num_steps
    padded_bh = G * num_steps
    # TODO(synk): for X so large that even G=1 exceeds the budget, add row
    # tiling of the (X, X) attention blocks instead of relying on G=1 alone.

    if padded_bh != BH:
        pad = padded_bh - BH
        tA = jnp.pad(tA, ((0, pad), (0, 0), (0, 0)))
        sA = jnp.pad(sA, ((0, pad), (0, 0), (0, 0)))
        tV = jnp.pad(tV, ((0, pad), (0, 0), (0, 0)))
        sV = jnp.pad(sV, ((0, pad), (0, 0), (0, 0)))

    kernel = functools.partial(
        _distill_kernel,
        heads_per_block=int(G),
        real_bh=int(BH),
        inv_temp=float(1.0 / temperature),
        inv_sqrt_dh_t=float(dh_t ** -0.5),
        inv_sqrt_dh_s=float(dh_s ** -0.5),
        unroll=bool(G <= 4),
    )

    partials = pl.pallas_call(
        kernel,
        out_shape=jax.ShapeDtypeStruct((num_steps, 8, 128), jnp.float32),
        grid=(num_steps,),
        in_specs=[
            pl.BlockSpec((G, X, X), lambda i: (i, 0, 0)),
            pl.BlockSpec((G, dh_t, X), lambda i: (i, 0, 0)),
            pl.BlockSpec((G, X, X), lambda i: (i, 0, 0)),
            pl.BlockSpec((G, dh_s, X), lambda i: (i, 0, 0)),
        ],
        out_specs=pl.BlockSpec((1, 8, 128), lambda i: (i, 0, 0)),
        compiler_params=pltpu.CompilerParams(
            dimension_semantics=("parallel",),
            vmem_limit_bytes=int(vmem_limit),
        ),
    )(tA, tV, sA, sV)

    total = jnp.sum(partials[:, 0, 0])
    # PyTorch: kl.sum(dim=(-2,-1)).mean() / (Ah * X) for both loss terms,
    # with Ah = H  ==>  total_sum / (B*H) / (H*X).
    # TODO(synk): the PyTorch `assert total_loss.requires_grad` has no Pallas
    # equivalent; JAX autodiff handles gradients transparently.
    return total / jnp.float32(B * H) / jnp.float32(H * X)


def _reference(teacher_A, teacher_values, student_A, student_values,
               temperature=2.0):
    """Pure-JAX reference mirroring the PyTorch forward."""
    B, H, X, _ = student_A.shape
    sAd = jax.nn.softmax(student_A / temperature, axis=-1)
    tAd = jax.nn.softmax(teacher_A / temperature, axis=-1)
    kl_att = jnp.sum(tAd * (jnp.log(tAd) - jnp.log(sAd + 1e-8)), axis=(-2, -1))
    att_loss = kl_att.mean() / (H * X)

    def value_relation(v):
        r = jnp.einsum('bhxd,bhyd->bhxy', v, v) / (v.shape[-1] ** 0.5)
        return jax.nn.softmax(r, axis=-1)

    tVR = value_relation(teacher_values)
    sVR = value_relation(student_values)
    kl_vr = jnp.sum(tVR * (jnp.log(tVR) - jnp.log(sVR + 1e-8)), axis=(-2, -1))
    vr_loss = kl_vr.mean() / (H * X)
    return att_loss + vr_loss


if __name__ == "__main__":
    B, H, X, Dh = 2, 4, 128, 32
    temperature = 2.0

    key = jax.random.PRNGKey(0)
    k1, k2, k3, k4 = jax.random.split(key, 4)
    teacher_A = jax.random.normal(k1, (B, H, X, X), dtype=jnp.float32)
    teacher_values = jax.random.normal(k2, (B, H, X, Dh), dtype=jnp.float32)
    student_A = jax.random.normal(k3, (B, H, X, X), dtype=jnp.float32)
    student_values = jax.random.normal(k4, (B, H, X, Dh), dtype=jnp.float32)

    loss = distillation_loss(teacher_A, teacher_values, student_A,
                             student_values, temperature)
    loss = jax.block_until_ready(loss)

    ref = _reference(teacher_A, teacher_values, student_A, student_values,
                     temperature)
    ref = jax.block_until_ready(ref)

    assert jnp.allclose(loss, ref, rtol=1e-5, atol=1e-6), (loss, ref)
    print("KERNEL_OK")
</pallas_src>

<mosaic_0001>
module attributes {stable_mosaic.version = 11 : i64} {
  func.func @_distill_kernel(%arg0: i32, %arg1: memref<2x128x128xf32, #tpu.memory_space<vmem>>, %arg2: memref<2x32x128xf32, #tpu.memory_space<vmem>>, %arg3: memref<2x128x128xf32, #tpu.memory_space<vmem>>, %arg4: memref<2x32x128xf32, #tpu.memory_space<vmem>>, %arg5: memref<1x8x128xf32, #tpu.memory_space<vmem>>) attributes {dimension_semantics = [#tpu.dimension_semantics<parallel>], iteration_bounds = array<i64: 4>, scalar_prefetch = 0 : i64, scratch_operands = 0 : i64, tpu.core_type = #tpu.core_type<tc>, window_params = [{transform_indices = @transform_0, window_bounds = array<i64: 2, 128, 128>}, {transform_indices = @transform_1, window_bounds = array<i64: 2, 32, 128>}, {transform_indices = @transform_2, window_bounds = array<i64: 2, 128, 128>}, {transform_indices = @transform_3, window_bounds = array<i64: 2, 32, 128>}, {transform_indices = @transform_4, window_bounds = array<i64: 1, 8, 128>}]} {
    %c2_i32 = arith.constant 2 : i32
    %0 = arith.muli %arg0, %c2_i32 : i32
    %cst = arith.constant 0.000000e+00 : f32
    %c0_i32 = arith.constant 0 : i32
    %1 = arith.addi %0, %c0_i32 : i32
    %c8_i32 = arith.constant 8 : i32
    %2 = arith.cmpi slt, %1, %c8_i32 : i32
    %cst_0 = arith.constant 1.000000e+00 : f32
    %cst_1 = arith.constant 0.000000e+00 : f32
    %3 = arith.select %2, %cst_0, %cst_1 : f32
    %4 = arith.index_cast %c0_i32 : i32 to index
    %c0 = arith.constant 0 : index
    %c0_2 = arith.constant 0 : index
    %5 = vector.load %arg1[%4, %c0, %c0_2] : memref<2x128x128xf32, #tpu.memory_space<vmem>>, vector<1x128x128xf32>
    %6 = vector.shape_cast %5 : vector<1x128x128xf32> to vector<128x128xf32>
    %7 = arith.index_cast %c0_i32 : i32 to index
    %c0_3 = arith.constant 0 : index
    %c0_4 = arith.constant 0 : index
    %8 = vector.load %arg3[%7, %c0_3, %c0_4] : memref<2x128x128xf32, #tpu.memory_space<vmem>>, vector<1x128x128xf32>
    %9 = vector.shape_cast %8 : vector<1x128x128xf32> to vector<128x128xf32>
    %cst_5 = arith.constant dense<0xFF800000> : vector<128xf32>
    %10 = vector.multi_reduction <maximumf>, %6, %cst_5 [1] : vector<128x128xf32> to vector<128xf32>
    %11 = vector.shape_cast %10 : vector<128xf32> to vector<128x1xf32>
    %12 = vector.broadcast %11 : vector<128x1xf32> to vector<128x128xf32>
    %13 = arith.subf %6, %12 : vector<128x128xf32>
    %cst_6 = arith.constant 5.000000e-01 : f32
    %14 = vector.broadcast %cst_6 : f32 to vector<128x128xf32>
    %15 = arith.mulf %13, %14 : vector<128x128xf32>
    %16 = math.exp %15 : vector<128x128xf32>
    %cst_7 = arith.constant dense<0.000000e+00> : vector<128xf32>
    %17 = vector.multi_reduction <add>, %16, %cst_7 [1] : vector<128x128xf32> to vector<128xf32>
    %18 = vector.shape_cast %17 : vector<128xf32> to vector<128x1xf32>
    %cst_8 = arith.constant dense<0xFF800000> : vector<128xf32>
    %19 = vector.multi_reduction <maximumf>, %9, %cst_8 [1] : vector<128x128xf32> to vector<128xf32>
    %20 = vector.shape_cast %19 : vector<128xf32> to vector<128x1xf32>
    %21 = vector.broadcast %20 : vector<128x1xf32> to vector<128x128xf32>
    %22 = arith.subf %9, %21 : vector<128x128xf32>
    %cst_9 = arith.constant 5.000000e-01 : f32
    %23 = vector.broadcast %cst_9 : f32 to vector<128x128xf32>
    %24 = arith.mulf %22, %23 : vector<128x128xf32>
    %25 = math.exp %24 : vector<128x128xf32>
    %cst_10 = arith.constant dense<0.000000e+00> : vector<128xf32>
    %26 = vector.multi_reduction <add>, %25, %cst_10 [1] : vector<128x128xf32> to vector<128xf32>
    %27 = vector.shape_cast %26 : vector<128xf32> to vector<128x1xf32>
    %cst_11 = arith.constant 9.99999993E-9 : f32
    %28 = vector.broadcast %cst_11 : f32 to vector<128x1xf32>
    %29 = arith.mulf %28, %27 : vector<128x1xf32>
    %30 = vector.broadcast %29 : vector<128x1xf32> to vector<128x128xf32>
    %31 = arith.addf %25, %30 : vector<128x128xf32>
    %32 = math.log %31 : vector<128x128xf32>
    %33 = arith.subf %15, %32 : vector<128x128xf32>
    %34 = arith.mulf %16, %33 : vector<128x128xf32>
    %cst_12 = arith.constant dense<0.000000e+00> : vector<128xf32>
    %35 = vector.multi_reduction <add>, %34, %cst_12 [1] : vector<128x128xf32> to vector<128xf32>
    %36 = vector.shape_cast %35 : vector<128xf32> to vector<128x1xf32>
    %37 = arith.divf %36, %18 : vector<128x1xf32>
    %38 = math.log %18 : vector<128x1xf32>
    %39 = arith.subf %37, %38 : vector<128x1xf32>
    %40 = math.log %27 : vector<128x1xf32>
    %41 = arith.addf %39, %40 : vector<128x1xf32>
    %42 = vector.shape_cast %41 : vector<128x1xf32> to vector<1x128x1xf32>
    %cst_13 = arith.constant dense<0.000000e+00> : vector<1xf32>
    %43 = vector.multi_reduction <add>, %42, %cst_13 [1, 2] : vector<1x128x1xf32> to vector<1xf32>
    %44 = vector.shape_cast %43 : vector<1xf32> to vector<1x1x1xf32>
    %45 = vector.extract %44[0, 0, 0] : f32 from vector<1x1x1xf32>
    %46 = arith.index_cast %c0_i32 : i32 to index
    %c0_14 = arith.constant 0 : index
    %c0_15 = arith.constant 0 : index
    %47 = vector.load %arg2[%46, %c0_14, %c0_15] : memref<2x32x128xf32, #tpu.memory_space<vmem>>, vector<1x32x128xf32>
    %48 = vector.shape_cast %47 : vector<1x32x128xf32> to vector<32x128xf32>
    %49 = arith.index_cast %c0_i32 : i32 to index
    %c0_16 = arith.constant 0 : index
    %c0_17 = arith.constant 0 : index
    %50 = vector.load %arg4[%49, %c0_16, %c0_17] : memref<2x32x128xf32, #tpu.memory_space<vmem>>, vector<1x32x128xf32>
    %51 = vector.shape_cast %50 : vector<1x32x128xf32> to vector<32x128xf32>
    %52 = tpu.transpose %48, [1, 0] : vector<32x128xf32> -> vector<128x32xf32>
    %cst_18 = arith.constant dense<0.000000e+00> : vector<128x128xf32>
    %53 = tpu.matmul %52, %48, %cst_18 {dimension_numbers = #tpu.dot_dimension_numbers<[1], [0], [0], [1], [0, 0, 1, 1], [], []>} : vector<128x32xf32>, vector<32x128xf32>, vector<128x128xf32> -> vector<128x128xf32>
    %54 = tpu.transpose %51, [1, 0] : vector<32x128xf32> -> vector<128x32xf32>
    %cst_19 = arith.constant dense<0.000000e+00> : vector<128x128xf32>
    %55 = tpu.matmul %54, %51, %cst_19 {dimension_numbers = #tpu.dot_dimension_numbers<[1], [0], [0], [1], [0, 0, 1, 1], [], []>} : vector<128x32xf32>, vector<32x128xf32>, vector<128x128xf32> -> vector<128x128xf32>
    %cst_20 = arith.constant dense<0xFF800000> : vector<128xf32>
    %56 = vector.multi_reduction <maximumf>, %53, %cst_20 [1] : vector<128x128xf32> to vector<128xf32>
    %57 = vector.shape_cast %56 : vector<128xf32> to vector<128x1xf32>
    %58 = vector.broadcast %57 : vector<128x1xf32> to vector<128x128xf32>
    %59 = arith.subf %53, %58 : vector<128x128xf32>
    %cst_21 = arith.constant 0.176776692 : f32
    %60 = vector.broadcast %cst_21 : f32 to vector<128x128xf32>
    %61 = arith.mulf %59, %60 : vector<128x128xf32>
    %62 = math.exp %61 : vector<128x128xf32>
    %cst_22 = arith.constant dense<0.000000e+00> : vector<128xf32>
    %63 = vector.multi_reduction <add>, %62, %cst_22 [1] : vector<128x128xf32> to vector<128xf32>
    %64 = vector.shape_cast %63 : vector<128xf32> to vector<128x1xf32>
    %cst_23 = arith.constant dense<0xFF800000> : vector<128xf32>
    %65 = vector.multi_reduction <maximumf>, %55, %cst_23 [1] : vector<128x128xf32> to vector<128xf32>
    %66 = vector.shape_cast %65 : vector<128xf32> to vector<128x1xf32>
    %67 = vector.broadcast %66 : vector<128x1xf32> to vector<128x128xf32>
    %68 = arith.subf %55, %67 : vector<128x128xf32>
    %cst_24 = arith.constant 0.176776692 : f32
    %69 = vector.broadcast %cst_24 : f32 to vector<128x128xf32>
    %70 = arith.mulf %68, %69 : vector<128x128xf32>
    %71 = math.exp %70 : vector<128x128xf32>
    %cst_25 = arith.constant dense<0.000000e+00> : vector<128xf32>
    %72 = vector.multi_reduction <add>, %71, %cst_25 [1] : vector<128x128xf32> to vector<128xf32>
    %73 = vector.shape_cast %72 : vector<128xf32> to vector<128x1xf32>
    %cst_26 = arith.constant 9.99999993E-9 : f32
    %74 = vector.broadcast %cst_26 : f32 to vector<128x1xf32>
    %75 = arith.mulf %74, %73 : vector<128x1xf32>
    %76 = vector.broadcast %75 : vector<128x1xf32> to vector<128x128xf32>
    %77 = arith.addf %71, %76 : vector<128x128xf32>
    %78 = math.log %77 : vector<128x128xf32>
    %79 = arith.subf %61, %78 : vector<128x128xf32>
    %80 = arith.mulf %62, %79 : vector<128x128xf32>
    %cst_27 = arith.constant dense<0.000000e+00> : vector<128xf32>
    %81 = vector.multi_reduction <add>, %80, %cst_27 [1] : vector<128x128xf32> to vector<128xf32>
    %82 = vector.shape_cast %81 : vector<128xf32> to vector<128x1xf32>
    %83 = arith.divf %82, %64 : vector<128x1xf32>
    %84 = math.log %64 : vector<128x1xf32>
    %85 = arith.subf %83, %84 : vector<128x1xf32>
    %86 = math.log %73 : vector<128x1xf32>
    %87 = arith.addf %85, %86 : vector<128x1xf32>
    %88 = vector.shape_cast %87 : vector<128x1xf32> to vector<1x128x1xf32>
    %cst_28 = arith.constant dense<0.000000e+00> : vector<1xf32>
    %89 = vector.multi_reduction <add>, %88, %cst_28 [1, 2] : vector<1x128x1xf32> to vector<1xf32>
    %90 = vector.shape_cast %89 : vector<1xf32> to vector<1x1x1xf32>
    %91 = vector.extract %90[0, 0, 0] : f32 from vector<1x1x1xf32>
    %92 = arith.addf %45, %91 : f32
    %93 = arith.mulf %3, %92 : f32
    %94 = arith.addf %cst, %93 : f32
    %c1_i32 = arith.constant 1 : i32
    %95 = arith.addi %0, %c1_i32 : i32
    %c8_i32_29 = arith.constant 8 : i32
    %96 = arith.cmpi slt, %95, %c8_i32_29 : i32
    %cst_30 = arith.constant 1.000000e+00 : f32
    %cst_31 = arith.constant 0.000000e+00 : f32
    %97 = arith.select %96, %cst_30, %cst_31 : f32
    %98 = arith.index_cast %c1_i32 : i32 to index
    %c0_32 = arith.constant 0 : index
    %c0_33 = arith.constant 0 : index
    %99 = vector.load %arg1[%98, %c0_32, %c0_33] : memref<2x128x128xf32, #tpu.memory_space<vmem>>, vector<1x128x128xf32>
    %100 = vector.shape_cast %99 : vector<1x128x128xf32> to vector<128x128xf32>
    %101 = arith.index_cast %c1_i32 : i32 to index
    %c0_34 = arith.constant 0 : index
    %c0_35 = arith.constant 0 : index
    %102 = vector.load %arg3[%101, %c0_34, %c0_35] : memref<2x128x128xf32, #tpu.memory_space<vmem>>, vector<1x128x128xf32>
    %103 = vector.shape_cast %102 : vector<1x128x128xf32> to vector<128x128xf32>
    %cst_36 = arith.constant dense<0xFF800000> : vector<128xf32>
    %104 = vector.multi_reduction <maximumf>, %100, %cst_36 [1] : vector<128x128xf32> to vector<128xf32>
    %105 = vector.shape_cast %104 : vector<128xf32> to vector<128x1xf32>
    %106 = vector.broadcast %105 : vector<128x1xf32> to vector<128x128xf32>
    %107 = arith.subf %100, %106 : vector<128x128xf32>
    %cst_37 = arith.constant 5.000000e-01 : f32
    %108 = vector.broadcast %cst_37 : f32 to vector<128x128xf32>
    %109 = arith.mulf %107, %108 : vector<128x128xf32>
    %110 = math.exp %109 : vector<128x128xf32>
    %cst_38 = arith.constant dense<0.000000e+00> : vector<128xf32>
    %111 = vector.multi_reduction <add>, %110, %cst_38 [1] : vector<128x128xf32> to vector<128xf32>
    %112 = vector.shape_cast %111 : vector<128xf32> to vector<128x1xf32>
    %cst_39 = arith.constant dense<0xFF800000> : vector<128xf32>
    %113 = vector.multi_reduction <maximumf>, %103, %cst_39 [1] : vector<128x128xf32> to vector<128xf32>
    %114 = vector.shape_cast %113 : vector<128xf32> to vector<128x1xf32>
    %115 = vector.broadcast %114 : vector<128x1xf32> to vector<128x128xf32>
    %116 = arith.subf %103, %115 : vector<128x128xf32>
    %cst_40 = arith.constant 5.000000e-01 : f32
    %117 = vector.broadcast %cst_40 : f32 to vector<128x128xf32>
    %118 = arith.mulf %116, %117 : vector<128x128xf32>
    %119 = math.exp %118 : vector<128x128xf32>
    %cst_41 = arith.constant dense<0.000000e+00> : vector<128xf32>
    %120 = vector.multi_reduction <add>, %119, %cst_41 [1] : vector<128x128xf32> to vector<128xf32>
    %121 = vector.shape_cast %120 : vector<128xf32> to vector<128x1xf32>
    %cst_42 = arith.constant 9.99999993E-9 : f32
    %122 = vector.broadcast %cst_42 : f32 to vector<128x1xf32>
    %123 = arith.mulf %122, %121 : vector<128x1xf32>
    %124 = vector.broadcast %123 : vector<128x1xf32> to vector<128x128xf32>
    %125 = arith.addf %119, %124 : vector<128x128xf32>
    %126 = math.log %125 : vector<128x128xf32>
    %127 = arith.subf %109, %126 : vector<128x128xf32>
    %128 = arith.mulf %110, %127 : vector<128x128xf32>
    %cst_43 = arith.constant dense<0.000000e+00> : vector<128xf32>
    %129 = vector.multi_reduction <add>, %128, %cst_43 [1] : vector<128x128xf32> to vector<128xf32>
    %130 = vector.shape_cast %129 : vector<128xf32> to vector<128x1xf32>
    %131 = arith.divf %130, %112 : vector<128x1xf32>
    %132 = math.log %112 : vector<128x1xf32>
    %133 = arith.subf %131, %132 : vector<128x1xf32>
    %134 = math.log %121 : vector<128x1xf32>
    %135 = arith.addf %133, %134 : vector<128x1xf32>
    %136 = vector.shape_cast %135 : vector<128x1xf32> to vector<1x128x1xf32>
    %cst_44 = arith.constant dense<0.000000e+00> : vector<1xf32>
    %137 = vector.multi_reduction <add>, %136, %cst_44 [1, 2] : vector<1x128x1xf32> to vector<1xf32>
    %138 = vector.shape_cast %137 : vector<1xf32> to vector<1x1x1xf32>
    %139 = vector.extract %138[0, 0, 0] : f32 from vector<1x1x1xf32>
    %140 = arith.index_cast %c1_i32 : i32 to index
    %c0_45 = arith.constant 0 : index
    %c0_46 = arith.constant 0 : index
    %141 = vector.load %arg2[%140, %c0_45, %c0_46] : memref<2x32x128xf32, #tpu.memory_space<vmem>>, vector<1x32x128xf32>
    %142 = vector.shape_cast %141 : vector<1x32x128xf32> to vector<32x128xf32>
    %143 = arith.index_cast %c1_i32 : i32 to index
    %c0_47 = arith.constant 0 : index
    %c0_48 = arith.constant 0 : index
    %144 = vector.load %arg4[%143, %c0_47, %c0_48] : memref<2x32x128xf32, #tpu.memory_space<vmem>>, vector<1x32x128xf32>
    %145 = vector.shape_cast %144 : vector<1x32x128xf32> to vector<32x128xf32>
    %146 = tpu.transpose %142, [1, 0] : vector<32x128xf32> -> vector<128x32xf32>
    %cst_49 = arith.constant dense<0.000000e+00> : vector<128x128xf32>
    %147 = tpu.matmul %146, %142, %cst_49 {dimension_numbers = #tpu.dot_dimension_numbers<[1], [0], [0], [1], [0, 0, 1, 1], [], []>} : vector<128x32xf32>, vector<32x128xf32>, vector<128x128xf32> -> vector<128x128xf32>
    %148 = tpu.transpose %145, [1, 0] : vector<32x128xf32> -> vector<128x32xf32>
    %cst_50 = arith.constant dense<0.000000e+00> : vector<128x128xf32>
    %149 = tpu.matmul %148, %145, %cst_50 {dimension_numbers = #tpu.dot_dimension_numbers<[1], [0], [0], [1], [0, 0, 1, 1], [], []>} : vector<128x32xf32>, vector<32x128xf32>, vector<128x128xf32> -> vector<128x128xf32>
    %cst_51 = arith.constant dense<0xFF800000> : vector<128xf32>
    %150 = vector.multi_reduction <maximumf>, %147, %cst_51 [1] : vector<128x128xf32> to vector<128xf32>
    %151 = vector.shape_cast %150 : vector<128xf32> to vector<128x1xf32>
    %152 = vector.broadcast %151 : vector<128x1xf32> to vector<128x128xf32>
    %153 = arith.subf %147, %152 : vector<128x128xf32>
    %cst_52 = arith.constant 0.176776692 : f32
    %154 = vector.broadcast %cst_52 : f32 to vector<128x128xf32>
    %155 = arith.mulf %153, %154 : vector<128x128xf32>
    %156 = math.exp %155 : vector<128x128xf32>
    %cst_53 = arith.constant dense<0.000000e+00> : vector<128xf32>
    %157 = vector.multi_reduction <add>, %156, %cst_53 [1] : vector<128x128xf32> to vector<128xf32>
    %158 = vector.shape_cast %157 : vector<128xf32> to vector<128x1xf32>
    %cst_54 = arith.constant dense<0xFF800000> : vector<128xf32>
    %159 = vector.multi_reduction <maximumf>, %149, %cst_54 [1] : vector<128x128xf32> to vector<128xf32>
    %160 = vector.shape_cast %159 : vector<128xf32> to vector<128x1xf32>
    %161 = vector.broadcast %160 : vector<128x1xf32> to vector<128x128xf32>
    %162 = arith.subf %149, %161 : vector<128x128xf32>
    %cst_55 = arith.constant 0.176776692 : f32
    %163 = vector.broadcast %cst_55 : f32 to vector<128x128xf32>
    %164 = arith.mulf %162, %163 : vector<128x128xf32>
    %165 = math.exp %164 : vector<128x128xf32>
    %cst_56 = arith.constant dense<0.000000e+00> : vector<128xf32>
    %166 = vector.multi_reduction <add>, %165, %cst_56 [1] : vector<128x128xf32> to vector<128xf32>
    %167 = vector.shape_cast %166 : vector<128xf32> to vector<128x1xf32>
    %cst_57 = arith.constant 9.99999993E-9 : f32
    %168 = vector.broadcast %cst_57 : f32 to vector<128x1xf32>
    %169 = arith.mulf %168, %167 : vector<128x1xf32>
    %170 = vector.broadcast %169 : vector<128x1xf32> to vector<128x128xf32>
    %171 = arith.addf %165, %170 : vector<128x128xf32>
    %172 = math.log %171 : vector<128x128xf32>
    %173 = arith.subf %155, %172 : vector<128x128xf32>
    %174 = arith.mulf %156, %173 : vector<128x128xf32>
    %cst_58 = arith.constant dense<0.000000e+00> : vector<128xf32>
    %175 = vector.multi_reduction <add>, %174, %cst_58 [1] : vector<128x128xf32> to vector<128xf32>
    %176 = vector.shape_cast %175 : vector<128xf32> to vector<128x1xf32>
    %177 = arith.divf %176, %158 : vector<128x1xf32>
    %178 = math.log %158 : vector<128x1xf32>
    %179 = arith.subf %177, %178 : vector<128x1xf32>
    %180 = math.log %167 : vector<128x1xf32>
    %181 = arith.addf %179, %180 : vector<128x1xf32>
    %182 = vector.shape_cast %181 : vector<128x1xf32> to vector<1x128x1xf32>
    %cst_59 = arith.constant dense<0.000000e+00> : vector<1xf32>
    %183 = vector.multi_reduction <add>, %182, %cst_59 [1, 2] : vector<1x128x1xf32> to vector<1xf32>
    %184 = vector.shape_cast %183 : vector<1xf32> to vector<1x1x1xf32>
    %185 = vector.extract %184[0, 0, 0] : f32 from vector<1x1x1xf32>
    %186 = arith.addf %139, %185 : f32
    %187 = arith.mulf %97, %186 : f32
    %188 = arith.addf %94, %187 : f32
    %c2_i32_60 = arith.constant 2 : i32
    %189 = vector.broadcast %188 : f32 to vector<1x8x128xf32>
    %c0_61 = arith.constant 0 : index
    %c0_62 = arith.constant 0 : index
    %c0_63 = arith.constant 0 : index
    %190 = vector.load %arg5[%c0_61, %c0_62, %c0_63] : memref<1x8x128xf32, #tpu.memory_space<vmem>>, vector<1x8x128xf32>
    tpu.vector_store %arg5[%c0_61, %c0_62, %c0_63], %189 {strides = array<i32>} : memref<1x8x128xf32, #tpu.memory_space<vmem>>, vector<1x8x128xf32>,
    return
  }
  func.func @transform_0(%arg0: i32) -> (i32, i32, i32) {
    %c0_i32 = arith.constant 0 : i32
    %c0_i32_0 = arith.constant 0 : i32
    %c0_i32_1 = arith.constant 0 : i32
    return %arg0, %c0_i32, %c0_i32_0 : i32, i32, i32
  }
  func.func @transform_1(%arg0: i32) -> (i32, i32, i32) {
    %c0_i32 = arith.constant 0 : i32
    %c0_i32_0 = arith.constant 0 : i32
    %c0_i32_1 = arith.constant 0 : i32
    return %arg0, %c0_i32, %c0_i32_0 : i32, i32, i32
  }
  func.func @transform_2(%arg0: i32) -> (i32, i32, i32) {
    %c0_i32 = arith.constant 0 : i32
    %c0_i32_0 = arith.constant 0 : i32
    %c0_i32_1 = arith.constant 0 : i32
    return %arg0, %c0_i32, %c0_i32_0 : i32, i32, i32
  }
  func.func @transform_3(%arg0: i32) -> (i32, i32, i32) {
    %c0_i32 = arith.constant 0 : i32
    %c0_i32_0 = arith.constant 0 : i32
    %c0_i32_1 = arith.constant 0 : i32
    return %arg0, %c0_i32, %c0_i32_0 : i32, i32, i32
  }
  func.func @transform_4(%arg0: i32) -> (i32, i32, i32) {
    %c0_i32 = arith.constant 0 : i32
    %c0_i32_0 = arith.constant 0 : i32
    %c0_i32_1 = arith.constant 0 : i32
    return %arg0, %c0_i32, %c0_i32_0 : i32, i32, i32
  }
}

</mosaic_0001>

<bundles_post_ra>
// kernel: tpu_custom_call.1
= control target key start
LH: loop header
LB: loop body
LE: loop exit
PB: predicated region body
PF: predicated region fallthrough
CT: control target
= control target key end

     0   :  { %s7672_s0 = inlined_call_operand.hbm [shape: f32[8,128,128], index: 0, kind: input, shape index: {}]   ;;  %s7673_s1 = inlined_call_operand.hbm [shape: f32[8,32,128], index: 1, kind: input, shape index: {}]   ;;  %s7674_s2 = inlined_call_operand.hbm [shape: f32[8,128,128], index: 2, kind: input, shape index: {}]   ;;  %s7675_s3 = inlined_call_operand.hbm [shape: f32[8,32,128], index: 3, kind: input, shape index: {}]   ;;  %s7676_s4 = inlined_call_operand.hbm [shape: f32[4,8,128], index: 4, kind: output, shape index: {}]  }
   0x1   :  { %7873 = sst [smem:[#allocation110_spill]] %s7672_s0 }
   0x2   :  { %7874 = sst [smem:[#allocation111_spill]] %s7673_s1 }
   0x3   :  { %9 = vsyncpa [#allocation3], 0 }
   0x4   :  { %11 = vsyncpa [#allocation3 + $0x1], 0 }
   0x5   :  { %12 = vsyncpa [#allocation6], 0 }
   0x6   :  { %14 = vsyncpa [#allocation6 + $0x1], 0 }
   0x7   :  { %15 = vsyncpa [#allocation9], 0 }
   0x8   :  { %17 = vsyncpa [#allocation9 + $0x1], 0 }
   0x9   :  { %18 = vsyncpa [#allocation4], 0 }
   0xa   :  { %20 = vsyncpa [#allocation4 + $0x1], 0  ;;  %s5155_s15 = smov 0   ;;  %s5157_s16 = smov 0  }
   0xb   :  { %s5159_s17 = smov 0   ;;  %s5161_s18 = smov 0  }
   0xc LB: > { %s5176_s19 = sadd.s32 4294967295, %s5121_s18   ;;  %s3699_s20 = sadd.s32 4294967294, %s5121_s18   ;;  %s5121_s18 = sphi %s5161_s18, %s8309_s18   ;;  %s5117_s17 = sphi %s5159_s17, %s8308_s17   ;;  %s5113_s16 = sphi %s5157_s16, %s8307_s16   ;;  %s5109_s15 = sphi %s5155_s15, %s8306_s15  }
   0xd   : > { %s5180_s21 = sadd.s32 1, %s5121_s18   ;;  %s33_s22 = sadd.s32 1, %s5117_s17 }
   0xe   : > { %s30_s23 = ssub.s32 %s5121_s18, %s5180_s21  ;;  %p40_p0 = scmp.ne.s32.totalorder %s5117_s17, %s5113_s16 }
   0xf   : > { %p31_p1 = scmp.eq.s32.totalorder %s30_s23, 0  ;;  %p41_p2 = scmp.eq.s32.totalorder %s5121_s18, 0 }
  0x10   : > { %p46_p3 = scmp.ne.s32.totalorder %s5113_s16, %s5109_s15  ;;  %p47_p4 = scmp.eq.s32.totalorder %s5176_s19, 0 }
  0x11   : > { %s5192_s24 = scalar_select %p31_p1, %s5117_s17, %s33_s22  }
  0x12   : > { %p42_p5 = por %p41_p2, %p40_p0  ;;  %p5194_p6 = por %p47_p4, %p46_p3 }
  0x13   : > { %p148_p7 = scmp.eq.s32.totalorder %s5176_s19, 3  ;;  %p154_p8 = scmp.eq.s32.totalorder %s3699_s20, 3 }
  0x14   : > { %s7875_s25 = scalar_select %p5194_p6, 1, 0 }
  0x15   : > { %p4116_p9 = scmp.lt.s32.totalorder %s5121_s18, 4  ;;  %p5200_p10 = por %p148_p7, %p40_p0 }
  0x16   : > { %p5204_p11 = por %p154_p8, %p46_p3  ;;  %s5209_s28 = sand.u32 1, %s5117_s17  }
  0x17   : > { %s7876_s26 = scalar_select %p5200_p10, 1, 0 }
  0x18   : > { %s7877_s27 = scalar_select %p5204_p11, 1, 0 }
  0x19   : > { %p5211_p12 = pnand %p4116_p9, %p42_p5  ;;  %s196_s30 = sand.u32 1, %s5121_s18  }
  0x1a   : > { %s7679_s5 = sshll.u32 %s5209_s28, 6  ;;  %s7680_s6 = sshll.u32 %s5121_s18, 10 }
  0x1b   : > { %s7879_s1 = sld [smem:[#allocation111_spill]]  ;;  %s200_s10 = scalar_lea.vmem [#allocation5], %s7679_s5 }
  0x1c   : > { %s208_s11 = sshll.u32 %s200_s10, 4  ;;  %s5230_s12 = scalar_lea.sflag [#allocation6], %s196_s30  ;;  %s5227_s11 = int_to_ptr.vmem [resolvable:$true] %s208_s11 }
  0x1d   : > { %p5236_p1 = pneg %p5211_p12 }
  0x21   : > { %s5223_s9 = scalar_lea.hbm %s7879_s1, %s7680_s6  ;;  %s4932_s23 = scalar_lea.hbm %s7879_s1, 4096 }
  0x22   : > { %s4927_s13 = scalar_lea.hbm %s5223_s9, 1024  ;;  %p4933_p4 = scmp.lt.u32.totalorder %s5223_s9, %s7879_s1 }
  0x23   : > { %p4928_p0 = scmp.ne.s32.totalorder %s5223_s9, %s4927_s13  ;;  %p4934_p5 = scmp.lt.u32.totalorder %s4932_s23, %s4927_s13 }
  0x24   : > { %p4936_p8 = scmp.lt.u32.totalorder %s4927_s13, %s5223_s9 }
  0x25   : > { %p4930_p2 = pnand %p5236_p1, %p4928_p0  ;;  %p4935_p7 = por %p4934_p5, %p4933_p4 }
  0x27   : > { %p4931_p3 = pneg %p4930_p2  ;;  %p4937_p9 = por %p4936_p8, %p4935_p7 }
  0x29   : > { %p4938_p13 = pnand %p4937_p9, %p4931_p3 }
  0x2b   : > { %4941 = shalt.err (!%p4938_p13)
}
  0x2c   : > { %s4942_s30 = scalar_lea.vmem %s5227_s11, 1024  ;;  %s5123_s10 = smov [#allocation5]  }
  0x2d   : > { %p4943_p0 = scmp.ne.s32.totalorder %s5227_s11, %s4942_s30  ;;  %s4947_s20 = sshll.u32 %s5123_s10, 4  ;;  %s4948_s20 = int_to_ptr.vmem [resolvable:$false] %s4947_s20 }
  0x2e   : > { %s4949_s22 = scalar_lea.vmem %s4948_s20, 2048  ;;  %p4950_p10 = scmp.lt.s32.totalorder %s5227_s11, %s4948_s20 }
  0x2f   : > { %p4945_p2 = pnand %p4943_p0, %p5236_p1  ;;  %p4951_p6 = scmp.lt.s32.totalorder %s4949_s22, %s4942_s30 }
  0x31   : > { %p4946_p11 = pneg %p4945_p2  ;;  %p4952_p4 = por %p4951_p6, %p4950_p10 }
  0x33   : > { %p4953_p5 = pnand %p4952_p4, %p4946_p11 }
  0x35   : > { %4956 = shalt.err (!%p4953_p5)
}
  0x36   : > { %s7681_s13 = smov 128   ;;  %s7683_s23 = smov 8  }
  0x37   : > { %4105 = dma.hbm_to_vmem [thread:$0]  (!%p5211_p12), %s5223_s9, 1024, %s5227_s11, %s5230_s12, %s7681_s13, %s7681_s13, %s7683_s23  }
  0x38   : > { %p260_p6 = scmp.lt.s32.totalorder %s5121_s18, 5  ;;  %s3702_s7 = sshll.u32 %s5209_s28, 8 }
  0x39   : > { %s7685_s8 = sshll.u32 %s5121_s18, 12  ;;  %p7881_p10 = scmp.ge.s32.totalorder %s5121_s18, 1 }
  0x3a   : > { %s7883_s0 = sld [smem:[#allocation110_spill]]  ;;  %s178_s9 = scalar_lea.vmem [#allocation2], %s3702_s7 }
  0x3b   : > { %p5268_p11 = pnand %p7881_p10, %p260_p6  ;;  %s186_s11 = sshll.u32 %s178_s9, 4  ;;  %s5281_s11 = int_to_ptr.vmem [resolvable:$true] %s186_s11 }
  0x3c   : > { %s175_s5 = scalar_lea.sflag [#allocation3], %s5209_s28 }
  0x3d   : > { %s7882_s30 = scalar_select %p5268_p11, 1, 0 }
  0x40   : > { %s5277_s22 = scalar_lea.hbm %s7883_s0, %s7685_s8  ;;  %s4962_s10 = scalar_lea.hbm %s7883_s0, 16384 }
  0x41   : > { %s4957_s6 = scalar_lea.hbm %s5277_s22, 4096  ;;  %p4963_p8 = scmp.lt.u32.totalorder %s5277_s22, %s7883_s0 }
  0x42   : > { %p4958_p13 = scmp.ne.s32.totalorder %s5277_s22, %s4957_s6  ;;  %p4964_p9 = scmp.lt.u32.totalorder %s4962_s10, %s4957_s6 }
  0x43   : > { %p4966_p2 = scmp.lt.u32.totalorder %s4957_s6, %s5277_s22 }
  0x44   : > { %p4960_p3 = pnand %p4958_p13, %p5236_p1  ;;  %p4965_p0 = por %p4964_p9, %p4963_p8 }
  0x46   : > { %p4961_p7 = pneg %p4960_p3  ;;  %p4967_p4 = por %p4966_p2, %p4965_p0 }
  0x48   : > { %p4968_p5 = pnand %p4967_p4, %p4961_p7 }
  0x4a   : > { %4971 = shalt.err (!%p4968_p5)
}
  0x4b   : > { %s4972_s9 = scalar_lea.vmem %s5281_s11, 4096  ;;  %s5126_s13 = smov [#allocation2]  }
  0x4c   : > { %p4973_p6 = scmp.ne.s32.totalorder %s5281_s11, %s4972_s9  ;;  %s4977_s23 = sshll.u32 %s5126_s13, 4  ;;  %s4978_s23 = int_to_ptr.vmem [resolvable:$false] %s4977_s23 }
  0x4d   : > { %s4979_s8 = scalar_lea.vmem %s4978_s23, 8192  ;;  %p4980_p3 = scmp.lt.s32.totalorder %s5281_s11, %s4978_s23 }
  0x4e   : > { %p4975_p10 = pnand %p4973_p6, %p5236_p1  ;;  %p4981_p11 = scmp.lt.s32.totalorder %s4979_s8, %s4972_s9 }
  0x50   : > { %p4976_p13 = pneg %p4975_p10  ;;  %p4982_p8 = por %p4981_p11, %p4980_p3 }
  0x52   : > { %p4983_p9 = pnand %p4982_p8, %p4976_p13 }
  0x54   : > { %4986 = shalt.err (!%p4983_p9)
}
  0x55   : > { %s7884_s6 = smov 8   ;;  %s7885_s10 = smov 128  }
  0x56   : > { %4102 = dma.hbm_to_vmem [thread:$0]  (!%p5211_p12), %s5277_s22, 4096, %s5281_s11, %s175_s5, %s7885_s10, %s7885_s10, %s7884_s6  }
  0x57   : > { %s7886_s20 = sshll.u32 %s5121_s18, 12  ;;  %s222_s8 = scalar_lea.vmem [#allocation7], %s3702_s7 }
  0x58   : > { %s5315_s9 = scalar_lea.hbm %s7674_s2, %s7886_s20  ;;  %s230_s0 = sshll.u32 %s222_s8, 4  ;;  %s5319_s0 = int_to_ptr.vmem [resolvable:$true] %s230_s0 }
  0x59   : > { %s4987_s1 = scalar_lea.hbm %s5315_s9, 4096  ;;  %s4992_s11 = scalar_lea.hbm %s7674_s2, 16384 }
  0x5a   : > { %p4988_p11 = scmp.ne.s32.totalorder %s5315_s9, %s4987_s1  ;;  %p4993_p2 = scmp.lt.u32.totalorder %s5315_s9, %s7674_s2 }
  0x5b   : > { %p4994_p4 = scmp.lt.u32.totalorder %s4992_s11, %s4987_s1  ;;  %p4996_p6 = scmp.lt.u32.totalorder %s4987_s1, %s5315_s9 }
  0x5c   : > { %p4990_p7 = pnand %p4988_p11, %p5236_p1 }
  0x5d   : > { %p4995_p5 = por %p4994_p4, %p4993_p2 }
  0x5e   : > { %p4991_p0 = pneg %p4990_p7 }
  0x5f   : > { %p4997_p10 = por %p4996_p6, %p4995_p5 }
  0x61   : > { %p4998_p13 = pnand %p4997_p10, %p4991_p0 }
  0x63   : > { %5001 = shalt.err (!%p4998_p13)
}
  0x64   : > { %s5002_s7 = scalar_lea.vmem %s5319_s0, 4096  ;;  %s5127_s23 = smov [#allocation7]  }
  0x65   : > { %p5003_p3 = scmp.ne.s32.totalorder %s5319_s0, %s5002_s7  ;;  %s5007_s8 = sshll.u32 %s5127_s23, 4  ;;  %s5008_s8 = int_to_ptr.vmem [resolvable:$false] %s5007_s8 }
  0x66   : > { %s5009_s5 = scalar_lea.vmem %s5008_s8, 8192  ;;  %p5010_p11 = scmp.lt.s32.totalorder %s5319_s0, %s5008_s8 }
  0x67   : > { %p5005_p8 = pnand %p5003_p3, %p5236_p1  ;;  %p5011_p7 = scmp.lt.s32.totalorder %s5009_s5, %s5002_s7 }
  0x69   : > { %p5006_p9 = pneg %p5005_p8  ;;  %p5012_p2 = por %p5011_p7, %p5010_p11 }
  0x6b   : > { %p5013_p4 = pnand %p5012_p2, %p5006_p9 }
  0x6d   : > { %5016 = shalt.err (!%p5013_p4)
}
  0x6e   : > { %4108 = dma.hbm_to_vmem [thread:$0]  (!%p5211_p12), %s5315_s9, 4096, %s5319_s0, %s5230_s12, %s7885_s10, %s7885_s10, %s7884_s6  }
  0x6f   : > { %s7887_s1 = sshll.u32 %s5121_s18, 10  ;;  %s7888_s13 = sshll.u32 %s5209_s28, 6 }
  0x70   : > { %s5351_s20 = scalar_lea.hbm %s7675_s3, %s7887_s1  ;;  %s244_s7 = scalar_lea.vmem [#allocation8], %s7888_s13 }
  0x71   : > { %s252_s23 = sshll.u32 %s244_s7, 4  ;;  %s241_s8 = scalar_lea.sflag [#allocation9], %s5209_s28  ;;  %s5355_s23 = int_to_ptr.vmem [resolvable:$true] %s252_s23 }
  0x72   : > { %s5017_s5 = scalar_lea.hbm %s5351_s20, 1024  ;;  %s5022_s9 = scalar_lea.hbm %s7675_s3, 4096 }
  0x73   : > { %p5018_p0 = scmp.ne.s32.totalorder %s5351_s20, %s5017_s5  ;;  %p5023_p10 = scmp.lt.u32.totalorder %s5351_s20, %s7675_s3 }
  0x74   : > { %p5024_p13 = scmp.lt.u32.totalorder %s5022_s9, %s5017_s5  ;;  %p5026_p8 = scmp.lt.u32.totalorder %s5017_s5, %s5351_s20 }
  0x75   : > { %p5020_p5 = pnand %p5018_p0, %p5236_p1 }
  0x76   : > { %p5025_p3 = por %p5024_p13, %p5023_p10 }
  0x77   : > { %p5021_p6 = pneg %p5020_p5 }
  0x78   : > { %p5027_p9 = por %p5026_p8, %p5025_p3 }
  0x7a   : > { %p5028_p11 = pnand %p5027_p9, %p5021_p6 }
  0x7c   : > { %5031 = shalt.err (!%p5028_p11)
}
  0x7d   : > { %s5032_s11 = scalar_lea.vmem %s5355_s23, 1024  ;;  %s5128_s13 = smov [#allocation8]  }
  0x7e   : > { %p5033_p7 = scmp.ne.s32.totalorder %s5355_s23, %s5032_s11  ;;  %s5037_s7 = sshll.u32 %s5128_s13, 4  ;;  %s5038_s7 = int_to_ptr.vmem [resolvable:$false] %s5037_s7 }
  0x7f   : > { %s5039_s0 = scalar_lea.vmem %s5038_s7, 2048  ;;  %p5040_p0 = scmp.lt.s32.totalorder %s5355_s23, %s5038_s7 }
  0x80   : > { %p5035_p2 = pnand %p5033_p7, %p5236_p1  ;;  %p5041_p5 = scmp.lt.s32.totalorder %s5039_s0, %s5032_s11 }
  0x82   : > { %p5036_p4 = pneg %p5035_p2  ;;  %p5042_p10 = por %p5041_p5, %p5040_p0 }
  0x84   : > { %p5043_p13 = pnand %p5042_p10, %p5036_p4 }
  0x86   : > { %5046 = shalt.err (!%p5043_p13)
}
  0x87   : > { %4111 = dma.hbm_to_vmem [thread:$0]  (!%p5211_p12), %s5351_s20, 1024, %s5355_s23, %s241_s8, %s7885_s10, %s7885_s10, %s7884_s6  }
  0x88   : > { %p7889_p1 = scmp.ne.s32.totalorder %s7882_s30, 0 }
  0x8a   : > { %264 = sbr.rel (%p7889_p1) target bundleno = 1849 (0x739), region = 36 }
  0x91   : > { %s5387_s14 = sand.u32 1, %s5113_s16   ;;  %p7890_p6 = scmp.ne.s32.totalorder %s7875_s25, 0 }
  0x92   : > { %s3719_s5 = sshll.u32 %s5387_s14, 8  ;;  %s267_s12 = scalar_lea.sflag [#allocation3], %s5387_s14 }
  0x93   : > { %s5391_s29 = scalar_lea.vmem [#allocation2], %s3719_s5 }
  0x94   : > { %5092 = dma.done.wait (%p7890_p6), %s267_s12, 4096  }
  0x95   : > { %5094 = vsyncadd (%p7890_p6), %s267_s12, 4294963200  ;;  %s275_s28 = sand.u32 1, %s5176_s19   ;;  %s3720_s30 = sshll.u32 %s5387_s14, 6 }
  0x96   : > { %s276_s6 = scalar_lea.sflag [#allocation6], %s275_s28  ;;  %s5399_s10 = scalar_lea.vmem [#allocation5], %s3720_s30 }
  0x97   : > { %5096 = dma.done.wait (%p7890_p6), %s276_s6, 5120  }
  0x98   : > { %5098 = vsyncadd (%p7890_p6), %s276_s6, 4294962176  ;;  %s5405_s20 = scalar_lea.vmem [#allocation7], %s3719_s5  ;;  %s294_s23 = scalar_lea.sflag [#allocation9], %s5387_s14 }
  0x99   : > { %s297_s8 = scalar_lea.vmem [#allocation8], %s3720_s30 }
  0x9a   : > { %5100 = dma.done.wait (%p7890_p6), %s294_s23, 1024  }
  0x9b   : > { %5102 = vsyncadd (%p7890_p6), %s294_s23, 4294966272  ;;  %v933_v0 = vld [vmem:[%s297_s8] sm:$0xff]  ;;  %v934_v2 = vld [vmem:[%s297_s8 + $0x8] sm:$0xff]  ;;  %vm969_vm0 = vcmask 261120   ;;  %vm888_vm1 = vcmask 7168   ;;  %s3724_s25 = sshll.u32 %s5176_s19, 1 }
  0x9c   : > { %v5413_v1 = vld [vmem:[%s5391_s29] sm:$0xff]  ;;  %1163 = vxpose.xlu1.b32.start [1/4] (short) %v933_v0, 128  ;;  %v5417_v3 = vld [vmem:[%s5391_s29 + $0x8] sm:$0xff]  ;;  %v3795_v4 = vld [vmem:[%s297_s8 + $0x30] sm:$0xff]  ;;  %v4057_v13 = vpack.c.bf16 %v934_v2, %v933_v0  ;;  %s1943_s9 = sadd.s32 1, %s3724_s25  ;;  %p342_p12 = scmp.lt.s32.totalorder %s3724_s25, 8 }
  0x9d   : > { %376 = vmax.xlane.f32.xlu0 %v5413_v1  ;;  %v3796_v5 = vld [vmem:[%s297_s8 + $0x38] sm:$0xff]  ;;  %v935_v7 = vld [vmem:[%s297_s8 + $0x10] sm:$0xff]  ;;  %v3793_v9 = vld [vmem:[%s297_s8 + $0x20] sm:$0xff]  ;;  %p1944_p3 = scmp.lt.s32.totalorder %s1943_s9, 8  ;;  %s3723_s7 = sshll.u32 %s5387_s14, 3 }
  0x9e   : > { %v4077_v6 = vpack.c.bf16 %v3796_v5, %v3795_v4  ;;  %v936_v8 = vld [vmem:[%s297_s8 + $0x18] sm:$0xff]  ;;  %v3794_v10 = vld [vmem:[%s297_s8 + $0x28] sm:$0xff]  ;;  %v929_v11 = vld [vmem:[%s5399_s10] sm:$0xff]  ;;  %4058 = vmatprep.subr.bf16.mxu1 %v4057_v13  ;;  %s343_s22 = scalar_select %p342_p12, 1.0, 0.0 }
  0x9f   : > { %v4061_v12 = vpack.c.bf16 %v936_v8, %v935_v7  ;;  %v930_v14 = vld [vmem:[%s5399_s10 + $0x8] sm:$0xff]  ;;  %4060 = vmatpush3.bf16.msra.mxu1 %v4057_v13  ;;  %v4073_v15 = vpack.c.bf16 %v3794_v10, %v3793_v9  ;;  %v931_v16 = vld [vmem:[%s5399_s10 + $0x10] sm:$0xff]  ;;  %v932_v17 = vld [vmem:[%s5399_s10 + $0x18] sm:$0xff]  ;;  %s1945_s11 = scalar_select %p1944_p3, 1.0, 0.0 }
  0xa0   : > { %1164 = vxpose.xlu1.b32.cont [2/4] (short) %v934_v2, 128  ;;  %v3789_v18 = vld [vmem:[%s5399_s10 + $0x20] sm:$0xff]  ;;  %v4053_v19 = vpack.c.bf16 %v932_v17, %v931_v16  ;;  %v3790_v20 = vld [vmem:[%s5399_s10 + $0x28] sm:$0xff]  ;;  %v4049_v21 = vpack.c.bf16 %v930_v14, %v929_v11  ;;  %v5429_v23 = vld [vmem:[%s5399_s10 + $0x30] sm:$0xff]  ;;  %s3830_s30 = sshll.u32 %s5176_s19, 7  ;;  %p8304_p9 = scmp.ne.s32.totalorder %s7876_s26, 0 }
  0xa1   : > { %378 = vmax.xlane.f32.xlu0 %v5417_v3  ;;  %4062 = vmatprep.subr.bf16.mxu1 %v4061_v12  ;;  %v5426_v22 = vpack.c.bf16 %v3790_v20, %v3789_v18  ;;  %v5433_v24 = vld [vmem:[%s5399_s10 + $0x38] sm:$0xff]  ;;  %v5445_v33 = vld [vmem:[%s5391_s29 + $0x10] sm:$0xff]  ;;  %v5457_v38 = vld [vmem:[%s5391_s29 + $0x28] sm:$0xff]  ;;  %s336_s10 = scalar_lea.vmem [#allocation10], %s3723_s7  ;;  %s7629_s9 = scalar_lea.hbm %s7676_s4, %s3830_s30 }
  0xa2   : > { %4050 = vmatprep.subr.bf16.mxu0 %v4049_v21  ;;  %v5452_v36 = vld [vmem:[%s5391_s29 + $0x18] sm:$0xff]  ;;  %v5470_v45 = vld [vmem:[%s5391_s29 + $0x48] sm:$0xff]  ;;  %v4069_v61 = vpack.c.bf16 %v5433_v24, %v5429_v23  ;;  %s5129_s19 = smov [#allocation10]  }
  0xa3   : > { %4064 = vmatpush3.bf16.msra.mxu1 %v4061_v12  ;;  %4052 = vmatpush3.bf16.msra.mxu0 %v4049_v21  ;;  %v5463_v42 = vld [vmem:[%s5391_s29 + $0x38] sm:$0xff]  ;;  %v5481_v51 = vld [vmem:[%s5391_s29 + $0x68] sm:$0xff]  ;;  %v5541_v21 = vld [vmem:[%s5391_s29 + $0x60] sm:$0xff] }
  0xa4   : > { %1165 = vxpose.xlu1.b32.cont [3/4] (short) %v935_v7, 128  ;;  %4074 = vmatprep.subr.bf16.mxu1 %v4073_v15  ;;  %v5476_v48 = vld [vmem:[%s5391_s29 + $0x58] sm:$0xff]  ;;  %v5512_v7 = vld [vmem:[%s5391_s29 + $0x20] sm:$0xff] }
  0xa5   : > { %4054 = vmatprep.subr.bf16.mxu0 %v4053_v19  ;;  %v5486_v54 = vld [vmem:[%s5391_s29 + $0x78] sm:$0xff] }
  0xa7   : > { %4056 = vmatpush3.bf16.msra.mxu0 %v4053_v19 }
  0xa8   : > { %1166 = vxpose.xlu1.b32.end [4/4] (short) %v936_v8, 128  ;;  %4066 = vmatprep.subr.bf16.mxu0 %v5426_v22 }
  0xce   : > { %2767 = vxpose.xlu0.b32.start [1/4] (short) %v3793_v9, 128 }
  0xd2   : > { %2768 = vxpose.xlu0.b32.cont [2/4] (short) %v3794_v10, 128 }
  0xd6   : > { %2769 = vxpose.xlu0.b32.cont [3/4] (short) %v3795_v4, 128 }
  0xd9   : > { %937 = vxpose.xlu1.b32.start [1/4] (short) %v929_v11, 128  ;;  %v5520_v11 = vld [vmem:[%s5391_s29 + $0x30] sm:$0xff] }
  0xda   : > { %2770 = vxpose.xlu0.b32.end [4/4] (short) %v3796_v5, 128 }
  0xdd   : > { %938 = vxpose.xlu1.b32.cont [2/4] (short) %v930_v14, 128 }
  0xe1   : > { %939 = vxpose.xlu1.b32.cont [3/4] (short) %v931_v16, 128 }
  0xe5   : > { %940 = vxpose.xlu1.b32.end [4/4] (short) %v932_v17, 128 }
 0x10b   : > { %2542 = vxpose.xlu0.b32.start [1/4] (short) %v3789_v18, 128  ;;  %v5535_v18 = vld [vmem:[%s5391_s29 + $0x50] sm:$0xff] }
 0x10f   : > { %2543 = vxpose.xlu0.b32.cont [2/4] (short) %v3790_v20, 128 }
 0x113   : > { %2544 = vxpose.xlu0.b32.cont [3/4] (short) %v5429_v23, 128 }
 0x117   : > { %2545 = vxpose.xlu0.b32.end [4/4] (short) %v5433_v24, 128  ;;  %v5547_v24 = vld [vmem:[%s5391_s29 + $0x70] sm:$0xff] }
 0x11c   : > { %v1179_v25 = vpop.trf.xlu1 }
 0x11d   : > { %3961 = vmatprep.mubr.msk.f32.mxu1 %vm969_vm0, %v1179_v25 }
 0x120   : > { %v1180_v26 = vpop.trf.xlu1 }
 0x121   : > { %3962 = vmatmul.mubr.msk.f32.vlgmr.msra.gmra.mrb[0].mxu1 %vm969_vm0, %v1180_v26 }
 0x122   : > { %4076 = vmatpush3.bf16.msra.mxu1 %v4073_v15  ;;  %v5528_v15 = vld [vmem:[%s5391_s29 + $0x40] sm:$0xff] }
 0x123   : > { %4078 = vmatprep.subr.bf16.mxu1 %v4077_v6 }
 0x124   : > { %v1181_v27 = vpop.trf.xlu1 }
 0x125   : > { %3964 = vmatprep.mubr.msk.f32.mxu1 %vm969_vm0, %v1181_v27 }
 0x126   : > { %4080 = vmatpush3.bf16.msra.mxu1 %v4077_v6 }
 0x128   : > { %v1182_v28 = vpop.trf.xlu1 }
 0x129   : > { %3965 = vmatmul.mubr.msk.f32.gmra.mrb[2].mxu1 %vm969_vm0, %v1182_v28 }
 0x12a   : > { %v5448_v34 = vpop.xlane.xlu0 %376 }
 0x12b   : > { %v408_v10 = vsub.f32 %v5413_v1, %v5448_v34 }
 0x12c   : > { %v1183_v29 = vpop.trf.xlu1 }
 0x12d   : > { %3967 = vmatprep.mubr.msk.f32.mxu1 %vm969_vm0, %v1183_v29  ;;  %v5525_v14 = vmul.f32 0.5, %v408_v10 }
 0x12e   : > { %v379_v39 = vpop.xlane.xlu0 %378 }
 0x12f   : > { %v409_v41 = vsub.f32 %v5417_v3, %v379_v39  ;;  %v440_v1 = vmul.f32 1.442695, %v5525_v14 }
 0x130   : > { %v1184_v30 = vpop.trf.xlu1 }
 0x131   : > { %3968 = vmatmul.mubr.msk.f32.gmra.mrb[4].mxu1 %vm969_vm0, %v1184_v30  ;;  %v5467_v44 = vmul.f32 0.5, %v409_v41 }
 0x133   : > { %v442_v47 = vmul.f32 1.442695, %v5467_v44 }
 0x134   : > { %v1185_v31 = vpop.trf.xlu1 }
 0x135   : > { %3970 = vmatprep.mubr.msk.f32.mxu1 %vm969_vm0, %v1185_v31  ;;  %4153 = vpow2.f32 %v442_v47 }
 0x136   : > { %4155 = vpow2.f32 %v440_v1 }
 0x138   : > { %v1186_v32 = vpop.trf.xlu1 }
 0x139   : > { %3971 = vmatmul.mubr.msk.f32.gmra.mrb[6].mxu1 %vm969_vm0, %v1186_v32 }
 0x13c   : > { %380 = vmax.xlane.f32.xlu1 %v5445_v33  ;;  %v1187_v35 = vpop.trf.xlu1 }
 0x13d   : > { %3973 = vmatprep.mubr.msk.f32.mxu1 %vm969_vm0, %v1187_v35 }
 0x13f   : > { %v5492_v58 = vpop.eup %4153 }
 0x140   : > { %382 = vmax.xlane.f32.xlu1 %v5452_v36  ;;  %v1188_v37 = vpop.trf.xlu1  ;;  %v5553_v29 = vpop.eup %4155 }
 0x141   : > { %3974 = vmatmul.mubr.msk.f32.gmra.mrb[8].mxu1 %vm969_vm0, %v1188_v37 }
 0x144   : > { %386 = vmax.xlane.f32.xlu1 %v5457_v38  ;;  %v1189_v40 = vpop.trf.xlu1 }
 0x145   : > { %3976 = vmatprep.mubr.msk.f32.mxu1 %vm969_vm0, %v1189_v40 }
 0x148   : > { %390 = vmax.xlane.f32.xlu1 %v5463_v42  ;;  %v1190_v43 = vpop.trf.xlu1 }
 0x149   : > { %3977 = vmatmul.mubr.msk.f32.gmra.mrb[10].mxu1 %vm969_vm0, %v1190_v43 }
 0x14c   : > { %394 = vmax.xlane.f32.xlu1 %v5470_v45  ;;  %v1191_v46 = vpop.trf.xlu1 }
 0x14d   : > { %3979 = vmatprep.mubr.msk.f32.mxu1 %vm969_vm0, %v1191_v46 }
 0x14e   : > { %v2783_v49 = vpop.trf.xlu0 }
 0x150   : > { %398 = vmax.xlane.f32.xlu1 %v5476_v48  ;;  %v1192_v50 = vpop.trf.xlu1 }
 0x151   : > { %3980 = vmatmul.mubr.msk.f32.gmra.mrb[12].mxu1 %vm969_vm0, %v1192_v50 }
 0x152   : > { %v2784_v52 = vpop.trf.xlu0 }
 0x154   : > { %402 = vmax.xlane.f32.xlu1 %v5481_v51  ;;  %v1193_v53 = vpop.trf.xlu1 }
 0x155   : > { %3982 = vmatprep.mubr.msk.f32.mxu1 %vm969_vm0, %v1193_v53 }
 0x156   : > { %v2785_v55 = vpop.trf.xlu0 }
 0x158   : > { %406 = vmax.xlane.f32.xlu1 %v5486_v54  ;;  %v1194_v56 = vpop.trf.xlu1 }
 0x159   : > { %3983 = vmatmul.mubr.msk.f32.gmra.mrb[14].mxu1 %vm969_vm0, %v1194_v56 }
 0x15a   : > { %v2786_v57 = vpop.trf.xlu0  ;;  %4025 = vmatprep.mubr.msk.f32.mxu1 %vm969_vm0, %v2783_v49 }
 0x15c   : > { %474 = vadd.xlane.f32.xlu1 %v5492_v58  ;;  %v953_v59 = vpop.trf.xlu1 }
 0x15d   : > { %4026 = vmatmul.mubr.msk.f32.vlgmr.msra.gmra.mrb[16].mxu1 %vm969_vm0, %v2784_v52  ;;  %3929 = vmatprep.mubr.msk.f32.mxu0 %vm969_vm0, %v953_v59 }
 0x15e   : > { %v2787_v60 = vpop.trf.xlu0  ;;  %4028 = vmatprep.mubr.msk.f32.mxu1 %vm969_vm0, %v2785_v55 }
 0x160   : > { %v954_v62 = vpop.trf.xlu1 }
 0x161   : > { %4029 = vmatmul.mubr.msk.f32.gmra.mrb[18].mxu1 %vm969_vm0, %v2786_v57  ;;  %3930 = vmatmul.mubr.msk.f32.vlgmr.msra.gmra.mrb[0].mxu0 %vm969_vm0, %v954_v62 }
 0x162   : > { %v2788_v63 = vpop.trf.xlu0  ;;  %4031 = vmatprep.mubr.msk.f32.mxu1 %vm969_vm0, %v2787_v60  ;;  %4068 = vmatpush3.bf16.msra.mxu0 %v5426_v22 }
 0x163   : > { %4070 = vmatprep.subr.bf16.mxu0 %v4069_v61 }
 0x164   : > { %v955_v0 = vpop.trf.xlu1 }
 0x165   : > { %4032 = vmatmul.mubr.msk.f32.gmra.mrb[20].mxu1 %vm969_vm0, %v2788_v63  ;;  %3932 = vmatprep.mubr.msk.f32.mxu0 %vm969_vm0, %v955_v0 }
 0x166   : > { %v2789_v2 = vpop.trf.xlu0  ;;  %4072 = vmatpush3.bf16.msra.mxu0 %v4069_v61 }
 0x167   : > { %4034 = vmatprep.mubr.msk.f32.mxu1 %vm969_vm0, %v2789_v2 }
 0x168   : > { %v956_v3 = vpop.trf.xlu1 }
 0x169   : > { %3933 = vmatmul.mubr.msk.f32.gmra.mrb[2].mxu0 %vm969_vm0, %v956_v3 }
 0x16a   : > { %v2790_v4 = vpop.trf.xlu0 }
 0x16b   : > { %4035 = vmatmul.mubr.msk.f32.gmra.mrb[22].mxu1 %vm969_vm0, %v2790_v4 }
 0x16c   : > { %v957_v5 = vpop.trf.xlu1 }
 0x16d   : > { %3935 = vmatprep.mubr.msk.f32.mxu0 %vm969_vm0, %v957_v5 }
 0x16e   : > { %v2791_v6 = vpop.trf.xlu0 }
 0x16f   : > { %4037 = vmatprep.mubr.msk.f32.mxu1 %vm969_vm0, %v2791_v6 }
 0x170   : > { %v958_v8 = vpop.trf.xlu1 }
 0x171   : > { %3936 = vmatmul.mubr.msk.f32.gmra.mrb[4].mxu0 %vm969_vm0, %v958_v8 }
 0x172   : > { %v2792_v9 = vpop.trf.xlu0 }
 0x173   : > { %4038 = vmatmul.mubr.msk.f32.gmra.mrb[24].mxu1 %vm969_vm0, %v2792_v9 }
 0x174   : > { %384 = vmax.xlane.f32.xlu0 %v5512_v7  ;;  %v959_v12 = vpop.trf.xlu1 }
 0x175   : > { %3938 = vmatprep.mubr.msk.f32.mxu0 %vm969_vm0, %v959_v12 }
 0x176   : > { %v2793_v13 = vpop.trf.xlu0 }
 0x177   : > { %4040 = vmatprep.mubr.msk.f32.mxu1 %vm969_vm0, %v2793_v13 }
 0x178   : > { %388 = vmax.xlane.f32.xlu0 %v5520_v11  ;;  %v960_v16 = vpop.trf.xlu1 }
 0x179   : > { %3939 = vmatmul.mubr.msk.f32.gmra.mrb[6].mxu0 %vm969_vm0, %v960_v16 }
 0x17a   : > { %v2794_v17 = vpop.trf.xlu0 }
 0x17b   : > { %4041 = vmatmul.mubr.msk.f32.gmra.mrb[26].mxu1 %vm969_vm0, %v2794_v17 }
 0x17c   : > { %392 = vmax.xlane.f32.xlu0 %v5528_v15  ;;  %v961_v19 = vpop.trf.xlu1 }
 0x17d   : > { %3941 = vmatprep.mubr.msk.f32.mxu0 %vm969_vm0, %v961_v19 }
 0x17e   : > { %v2795_v20 = vpop.trf.xlu0 }
 0x17f   : > { %4043 = vmatprep.mubr.msk.f32.mxu1 %vm969_vm0, %v2795_v20 }
 0x180   : > { %396 = vmax.xlane.f32.xlu0 %v5535_v18  ;;  %v962_v22 = vpop.trf.xlu1 }
 0x181   : > { %3942 = vmatmul.mubr.msk.f32.gmra.mrb[8].mxu0 %vm969_vm0, %v962_v22 }
 0x182   : > { %v2796_v23 = vpop.trf.xlu0 }
 0x183   : > { %4044 = vmatmul.mubr.msk.f32.gmra.mrb[28].mxu1 %vm969_vm0, %v2796_v23 }
 0x184   : > { %400 = vmax.xlane.f32.xlu0 %v5541_v21  ;;  %v963_v25 = vpop.trf.xlu1 }
 0x185   : > { %3944 = vmatprep.mubr.msk.f32.mxu0 %vm969_vm0, %v963_v25 }
 0x186   : > { %v2797_v26 = vpop.trf.xlu0 }
 0x187   : > { %4046 = vmatprep.mubr.msk.f32.mxu1 %vm969_vm0, %v2797_v26 }
 0x188   : > { %404 = vmax.xlane.f32.xlu0 %v5547_v24  ;;  %v964_v27 = vpop.trf.xlu1 }
 0x189   : > { %3945 = vmatmul.mubr.msk.f32.gmra.mrb[10].mxu0 %vm969_vm0, %v964_v27 }
 0x18a   : > { %v2798_v28 = vpop.trf.xlu0 }
 0x18b   : > { %4047 = vmatmul.mubr.msk.f32.gmra.mrb[30].mxu1 %vm969_vm0, %v2798_v28 }
 0x18c   : > { %472 = vadd.xlane.f32.xlu0 %v5553_v29  ;;  %v965_v30 = vpop.trf.xlu1 }
 0x18d   : > { %3947 = vmatprep.mubr.msk.f32.mxu0 %vm969_vm0, %v965_v30 }
 0x18e   : > { %v2558_v31 = vpop.trf.xlu0 }
 0x190   : > { %v966_v32 = vpop.trf.xlu1 }
 0x191   : > { %3948 = vmatmul.mubr.msk.f32.gmra.mrb[12].mxu0 %vm969_vm0, %v966_v32 }
 0x192   : > { %v2559_v34 = vpop.trf.xlu0 }
 0x194   : > { %v967_v35 = vpop.trf.xlu1 }
 0x195   : > { %3950 = vmatprep.mubr.msk.f32.mxu0 %vm969_vm0, %v967_v35 }
 0x196   : > { %v2560_v37 = vpop.trf.xlu0 }
 0x198   : > { %v968_v39 = vpop.trf.xlu1 }
 0x199   : > { %3951 = vmatmul.mubr.msk.f32.gmra.mrb[14].mxu0 %vm969_vm0, %v968_v39 }
 0x19a   : > { %v2561_v40 = vpop.trf.xlu0  ;;  %3993 = vmatprep.mubr.msk.f32.mxu0 %vm969_vm0, %v2558_v31 }
 0x19d   : > { %3994 = vmatmul.mubr.msk.f32.vlgmr.msra.gmra.mrb[16].mxu0 %vm969_vm0, %v2559_v34 }
 0x19e   : > { %v2562_v41 = vpop.trf.xlu0  ;;  %3996 = vmatprep.mubr.msk.f32.mxu0 %vm969_vm0, %v2560_v37 }
 0x1a1   : > { %3997 = vmatmul.mubr.msk.f32.gmra.mrb[18].mxu0 %vm969_vm0, %v2561_v40 }
 0x1a2   : > { %v2563_v43 = vpop.trf.xlu0  ;;  %3999 = vmatprep.mubr.msk.f32.mxu0 %vm969_vm0, %v2562_v41  ;;  %v5638_v41 = vld [vmem:[%s5405_s20 + $0x8] sm:$0xff] }
 0x1a5   : > { %4000 = vmatmul.mubr.msk.f32.gmra.mrb[20].mxu0 %vm969_vm0, %v2563_v43  ;;  %v5642_v43 = vld [vmem:[%s5405_s20 + $0x18] sm:$0xff] }
 0x1a6   : > { %v2564_v46 = vpop.trf.xlu0 }
 0x1a7   : > { %4002 = vmatprep.mubr.msk.f32.mxu0 %vm969_vm0, %v2564_v46 }
 0x1aa   : > { %v2565_v47 = vpop.trf.xlu0 }
 0x1ab   : > { %4003 = vmatmul.mubr.msk.f32.gmra.mrb[22].mxu0 %vm969_vm0, %v2565_v47 }
 0x1ae   : > { %v2566_v49 = vpop.trf.xlu0 }
 0x1af   : > { %4005 = vmatprep.mubr.msk.f32.mxu0 %vm969_vm0, %v2566_v49 }
 0x1b2   : > { %v2567_v50 = vpop.trf.xlu0 }
 0x1b3   : > { %4006 = vmatmul.mubr.msk.f32.gmra.mrb[24].mxu0 %vm969_vm0, %v2567_v50  ;;  %v5650_v50 = vld [vmem:[%s5405_s20 + $0x28] sm:$0xff] }
 0x1b6   : > { %v2568_v52 = vpop.trf.xlu0 }
 0x1b7   : > { %4008 = vmatprep.mubr.msk.f32.mxu0 %vm969_vm0, %v2568_v52 }
 0x1ba   : > { %v2569_v53 = vpop.trf.xlu0 }
 0x1bb   : > { %4009 = vmatmul.mubr.msk.f32.gmra.mrb[26].mxu0 %vm969_vm0, %v2569_v53 }
 0x1be   : > { %v2570_v55 = vpop.trf.xlu0 }
 0x1bf   : > { %4011 = vmatprep.mubr.msk.f32.mxu0 %vm969_vm0, %v2570_v55 }
 0x1c2   : > { %v2571_v56 = vpop.trf.xlu0 }
 0x1c3   : > { %4012 = vmatmul.mubr.msk.f32.gmra.mrb[28].mxu0 %vm969_vm0, %v2571_v56  ;;  %v5657_v56 = vld [vmem:[%s5405_s20 + $0x38] sm:$0xff] }
 0x1c6   : > { %v2572_v57 = vpop.trf.xlu0 }
 0x1c7   : > { %4014 = vmatprep.mubr.msk.f32.mxu0 %vm969_vm0, %v2572_v57 }
 0x1c9   : > { %v381_v59 = vpop.xlane.xlu1 %380 }
 0x1ca   : > { %v2573_v60 = vpop.trf.xlu0  ;;  %v410_v61 = vsub.f32 %v5445_v33, %v381_v59 }
 0x1cb   : > { %4015 = vmatmul.mubr.msk.f32.gmra.mrb[30].mxu0 %vm969_vm0, %v2573_v60 }
 0x1cc   : > { %v5578_v62 = vmul.f32 0.5, %v410_v61 }
 0x1cd   : > { %v383_v63 = vpop.xlane.xlu1 %382 }
 0x1ce   : > { %v444_v0 = vmul.f32 1.442695, %v5578_v62  ;;  %v411_v2 = vsub.f32 %v5452_v36, %v383_v63 }
 0x1d0   : > { %4157 = vpow2.f32 %v444_v0  ;;  %v5582_v3 = vmul.f32 0.5, %v411_v2  ;;  %v5669_v0 = vld [vmem:[%s5405_s20 + $0x48] sm:$0xff] }
 0x1d1   : > { %v387_v4 = vpop.xlane.xlu1 %386 }
 0x1d2   : > { %v446_v5 = vmul.f32 1.442695, %v5582_v3  ;;  %v413_v6 = vsub.f32 %v5457_v38, %v387_v4 }
 0x1d4   : > { %4159 = vpow2.f32 %v446_v5  ;;  %v5586_v8 = vmul.f32 0.5, %v413_v6  ;;  %v5677_v6 = vld [vmem:[%s5405_s20 + $0x58] sm:$0xff] }
 0x1d5   : > { %v391_v33 = vpop.xlane.xlu1 %390 }
 0x1d6   : > { %v450_v9 = vmul.f32 1.442695, %v5586_v8  ;;  %v415_v10 = vsub.f32 %v5463_v42, %v391_v33 }
 0x1d8   : > { %4161 = vpow2.f32 %v450_v9  ;;  %v5590_v12 = vmul.f32 0.5, %v415_v10 }
 0x1d9   : > { %v395_v36 = vpop.xlane.xlu1 %394 }
 0x1da   : > { %v5592_v13 = vpop.eup %4157  ;;  %v454_v16 = vmul.f32 1.442695, %v5590_v12  ;;  %v417_v17 = vsub.f32 %v5470_v45, %v395_v36 }
 0x1db   : > { %476 = vadd.xlane.f32.xlu0 %v5592_v13 }
 0x1dc   : > { %4163 = vpow2.f32 %v454_v16  ;;  %v5597_v38 = vmul.f32 0.5, %v417_v17  ;;  %v5689_v17 = vld [vmem:[%s5405_s20 + $0x68] sm:$0xff] }
 0x1dd   : > { %v399_v1 = vpop.xlane.xlu1 %398 }
 0x1de   : > { %v5599_v19 = vpop.eup %4159  ;;  %v458_v42 = vmul.f32 1.442695, %v5597_v38  ;;  %v419_v20 = vsub.f32 %v5476_v48, %v399_v1 }
 0x1df   : > { %478 = vadd.xlane.f32.xlu1 %v5599_v19 }
 0x1e0   : > { %4165 = vpow2.f32 %v458_v42  ;;  %v5604_v22 = vmul.f32 0.5, %v419_v20 }
 0x1e1   : > { %v403_v23 = vpop.xlane.xlu1 %402 }
 0x1e2   : > { %v5606_v25 = vpop.eup %4161  ;;  %v462_v45 = vmul.f32 1.442695, %v5604_v22  ;;  %v421_v26 = vsub.f32 %v5481_v51, %v403_v23 }
 0x1e3   : > { %482 = vadd.xlane.f32.xlu1 %v5606_v25 }
 0x1e4   : > { %4167 = vpow2.f32 %v462_v45  ;;  %v5611_v27 = vmul.f32 0.5, %v421_v26  ;;  %v5700_v45 = vld [vmem:[%s5405_s20 + $0x78] sm:$0xff] }
 0x1e5   : > { %v407_v28 = vpop.xlane.xlu1 %406 }
 0x1e6   : > { %v5613_v30 = vpop.eup %4163  ;;  %v466_v48 = vmul.f32 1.442695, %v5611_v27  ;;  %v423_v31 = vsub.f32 %v5486_v54, %v407_v28 }
 0x1e7   : > { %486 = vadd.xlane.f32.xlu1 %v5613_v30 }
 0x1e8   : > { %4169 = vpow2.f32 %v466_v48  ;;  %v5618_v32 = vmul.f32 0.5, %v423_v31 }
 0x1ea   : > { %v5620_v51 = vpop.eup %4165  ;;  %v470_v34 = vmul.f32 1.442695, %v5618_v32 }
 0x1eb   : > { %490 = vadd.xlane.f32.xlu1 %v5620_v51 }
 0x1ec   : > { %4171 = vpow2.f32 %v470_v34 }
 0x1ee   : > { %v5624_v35 = vpop.eup %4167 }
 0x1ef   : > { %494 = vadd.xlane.f32.xlu1 %v5624_v35 }
 0x1f2   : > { %v5627_v54 = vpop.eup %4169 }
 0x1f3   : > { %498 = vadd.xlane.f32.xlu1 %v5627_v54 }
 0x1f4   : > { %v5630_v37 = vpop.f32.mrb[0].mxu1 }
 0x1f5   : > { %7891 = vst [vmem:[#allocation15_spill] sm:$0xff] %v5630_v37  ;;  %v5632_v39 = vpop.f32.mrb[1].mxu1 }
 0x1f6   : > { %7892 = vst [vmem:[#allocation16_spill] sm:$0xff] %v5632_v39  ;;  %v5634_v40 = vpop.eup %4171 }
 0x1f7   : > { %502 = vadd.xlane.f32.xlu1 %v5634_v40 }
 0x1fb   : > { %506 = vmax.xlane.f32.xlu1 %v5638_v41 }
 0x1fc   : > { %v5644_v46 = vpop.f32.mrb[2].mxu1 }
 0x1fd   : > { %7893 = vst [vmem:[#allocation17_spill] sm:$0xff] %v5644_v46  ;;  %v5646_v47 = vpop.f32.mrb[3].mxu1 }
 0x1fe   : > { %7894 = vst [vmem:[#allocation18_spill] sm:$0xff] %v5646_v47 }
 0x1ff   : > { %510 = vmax.xlane.f32.xlu1 %v5642_v43 }
 0x201   : > { %v385_v49 = vpop.xlane.xlu0 %384 }
 0x202   : > { %v412_v52 = vsub.f32 %v5512_v7, %v385_v49 }
 0x203   : > { %514 = vmax.xlane.f32.xlu1 %v5650_v50 }
 0x204   : > { %v5653_v53 = vmul.f32 0.5, %v412_v52  ;;  %v5659_v57 = vpop.f32.mrb[4].mxu1 }
 0x205   : > { %v389_v55 = vpop.xlane.xlu0 %388  ;;  %7895 = vst [vmem:[#allocation19_spill] sm:$0xff] %v5659_v57  ;;  %v5663_v61 = vpop.f32.mrb[5].mxu1  ;;  %v5788_v57 = vld [vmem:[%s5405_s20 + $0x60] sm:$0xff] }
 0x206   : > { %v448_v59 = vmul.f32 1.442695, %v5653_v53  ;;  %v414_v60 = vsub.f32 %v5520_v11, %v389_v55  ;;  %7896 = vst [vmem:[#allocation20_spill] sm:$0xff] %v5663_v61 }
 0x207   : > { %518 = vmax.xlane.f32.xlu1 %v5657_v56 }
 0x208   : > { %4173 = vpow2.f32 %v448_v59  ;;  %v5665_v63 = vmul.f32 0.5, %v414_v60 }
 0x209   : > { %v393_v7 = vpop.xlane.xlu0 %392 }
 0x20a   : > { %v452_v2 = vmul.f32 1.442695, %v5665_v63  ;;  %v416_v4 = vsub.f32 %v5528_v15, %v393_v7 }
 0x20b   : > { %522 = vmax.xlane.f32.xlu1 %v5669_v0 }
 0x20c   : > { %4175 = vpow2.f32 %v452_v2  ;;  %v5673_v5 = vmul.f32 0.5, %v416_v4  ;;  %v5679_v33 = vpop.f32.mrb[6].mxu1 }
 0x20d   : > { %v397_v11 = vpop.xlane.xlu0 %396  ;;  %7897 = vst [vmem:[#allocation21_spill] sm:$0xff] %v5679_v33  ;;  %v5683_v36 = vpop.f32.mrb[7].mxu1 }
 0x20e   : > { %v456_v9 = vmul.f32 1.442695, %v5673_v5  ;;  %v418_v10 = vsub.f32 %v5535_v18, %v397_v11  ;;  %7898 = vst [vmem:[#allocation22_spill] sm:$0xff] %v5683_v36  ;;  %v5736_v11 = vld [vmem:[%s5405_s20] sm:$0xff] }
 0x20f   : > { %526 = vmax.xlane.f32.xlu1 %v5677_v6 }
 0x210   : > { %4177 = vpow2.f32 %v456_v9  ;;  %v5685_v16 = vmul.f32 0.5, %v418_v10  ;;  %v5740_v9 = vld [vmem:[%s5405_s20 + $0x10] sm:$0xff] }
 0x211   : > { %v401_v15 = vpop.xlane.xlu0 %400 }
 0x212   : > { %v5691_v1 = vpop.eup %4173  ;;  %v460_v42 = vmul.f32 1.442695, %v5685_v16  ;;  %v420_v20 = vsub.f32 %v5541_v21, %v401_v15 }
 0x213   : > { %480 = vadd.xlane.f32.xlu0 %v5691_v1  ;;  %530 = vmax.xlane.f32.xlu1 %v5689_v17 }
 0x214   : > { %4179 = vpow2.f32 %v460_v42  ;;  %v5696_v18 = vmul.f32 0.5, %v420_v20  ;;  %v5702_v26 = vpop.f32.mrb[8].mxu1  ;;  %v5748_v42 = vld [vmem:[%s5405_s20 + $0x20] sm:$0xff] }
 0x215   : > { %v405_v23 = vpop.xlane.xlu0 %404  ;;  %7899 = vst [vmem:[#allocation23_spill] sm:$0xff] %v5702_v26  ;;  %v5708_v34 = vpop.f32.mrb[9].mxu1 }
 0x216   : > { %v5704_v28 = vpop.eup %4175  ;;  %v464_v48 = vmul.f32 1.442695, %v5696_v18  ;;  %v422_v31 = vsub.f32 %v5547_v24, %v405_v23  ;;  %7900 = vst [vmem:[#allocation24_spill] sm:$0xff] %v5708_v34 }
 0x217   : > { %484 = vadd.xlane.f32.xlu0 %v5704_v28  ;;  %534 = vmax.xlane.f32.xlu1 %v5700_v45 }
 0x218   : > { %4181 = vpow2.f32 %v464_v48  ;;  %v5711_v21 = vmul.f32 0.5, %v422_v31  ;;  %v5756_v48 = vld [vmem:[%s5405_s20 + $0x30] sm:$0xff] }
 0x21a   : > { %v5714_v49 = vpop.eup %4177  ;;  %v468_v52 = vmul.f32 1.442695, %v5711_v21 }
 0x21b   : > { %488 = vadd.xlane.f32.xlu0 %v5714_v49 }
 0x21c   : > { %4183 = vpow2.f32 %v468_v52  ;;  %v5718_v55 = vpop.f32.mrb[10].mxu1 }
 0x21d   : > { %7901 = vst [vmem:[#allocation25_spill] sm:$0xff] %v5718_v55  ;;  %v5722_v59 = vpop.f32.mrb[11].mxu1 }
 0x21e   : > { %v5720_v24 = vpop.eup %4179  ;;  %7902 = vst [vmem:[#allocation26_spill] sm:$0xff] %v5722_v59  ;;  %v5776_v59 = vld [vmem:[%s5405_s20 + $0x50] sm:$0xff] }
 0x21f   : > { %492 = vadd.xlane.f32.xlu0 %v5720_v24 }
 0x222   : > { %v5725_v60 = vpop.eup %4181 }
 0x223   : > { %496 = vadd.xlane.f32.xlu0 %v5725_v60 }
 0x224   : > { %v5728_v7 = vpop.f32.mrb[12].mxu1 }
 0x225   : > { %7903 = vst [vmem:[#allocation27_spill] sm:$0xff] %v5728_v7  ;;  %v5732_v4 = vpop.f32.mrb[13].mxu1  ;;  %v5768_v7 = vld [vmem:[%s5405_s20 + $0x40] sm:$0xff] }
 0x226   : > { %v5730_v2 = vpop.eup %4183  ;;  %7904 = vst [vmem:[#allocation28_spill] sm:$0xff] %v5732_v4 }
 0x227   : > { %500 = vadd.xlane.f32.xlu0 %v5730_v2 }
 0x22b   : > { %504 = vmax.xlane.f32.xlu0 %v5736_v11 }
 0x22c   : > { %v5742_v10 = vpop.f32.mrb[14].mxu1 }
 0x22d   : > { %7905 = vst [vmem:[#allocation29_spill] sm:$0xff] %v5742_v10  ;;  %v5744_v15 = vpop.f32.mrb[15].mxu1 }
 0x22e   : > { %7906 = vst [vmem:[#allocation30_spill] sm:$0xff] %v5744_v15 }
 0x22f   : > { %508 = vmax.xlane.f32.xlu0 %v5740_v9 }
 0x230   : > { %v5750_v20 = vpop.f32.mrb[16].mxu1 }
 0x231   : > { %7907 = vst [vmem:[#allocation31_spill] sm:$0xff] %v5750_v20  ;;  %v5752_v23 = vpop.f32.mrb[17].mxu1 }
 0x232   : > { %7908 = vst [vmem:[#allocation32_spill] sm:$0xff] %v5752_v23 }
 0x233   : > { %512 = vmax.xlane.f32.xlu0 %v5748_v42 }
 0x234   : > { %v5758_v31 = vpop.f32.mrb[18].mxu1  ;;  %v5760_v52 = vpop.f32.mrb[0].mxu0 }
 0x235   : > { %7909 = vst [vmem:[#allocation33_spill] sm:$0xff] %v5758_v31  ;;  %v5762_v10 = vpop.f32.mrb[19].mxu1  ;;  %v5764_v15 = vpop.f32.mrb[1].mxu0 }
 0x236   : > { %7910 = vst [vmem:[#allocation34_spill] sm:$0xff] %v5762_v10  ;;  %7911 = vst [vmem:[#allocation35_spill] sm:$0xff] %v5764_v15  ;;  %v5878_v15 = vpop.xlane.xlu0 %472 }
 0x237   : > { %516 = vmax.xlane.f32.xlu0 %v5756_v48  ;;  %7958 = vst [vmem:[#allocation82_spill] sm:$0xff] %v5878_v15 }
 0x238   : > { %v5770_v4 = vpop.f32.mrb[20].mxu1 }
 0x239   : > { %7912 = vst [vmem:[#allocation36_spill] sm:$0xff] %v5770_v4  ;;  %v5772_v55 = vpop.f32.mrb[21].mxu1  ;;  %v5792_v4 = vld [vmem:[%s5405_s20 + $0x70] sm:$0xff] }
 0x23a   : > { %7913 = vst [vmem:[#allocation37_spill] sm:$0xff] %v5772_v55 }
 0x23b   : > { %520 = vmax.xlane.f32.xlu0 %v5768_v7 }
 0x23c   : > { %v5778_v26 = vpop.f32.mrb[2].mxu0 }
 0x23d   : > { %7914 = vst [vmem:[#allocation38_spill] sm:$0xff] %v5778_v26  ;;  %v5782_v33 = vpop.f32.mrb[3].mxu0 }
 0x23e   : > { %v5780_v34 = vpop.f32.mrb[22].mxu1  ;;  %7916 = vst [vmem:[#allocation40_spill] sm:$0xff] %v5782_v33 }
 0x23f   : > { %7915 = vst [vmem:[#allocation39_spill] sm:$0xff] %v5780_v34  ;;  %524 = vmax.xlane.f32.xlu0 %v5776_v59  ;;  %v5785_v36 = vpop.f32.mrb[23].mxu1 }
 0x240   : > { %7917 = vst [vmem:[#allocation41_spill] sm:$0xff] %v5785_v36 }
 0x243   : > { %528 = vmax.xlane.f32.xlu0 %v5788_v57 }
 0x244   : > { %v5794_v55 = vpop.f32.mrb[4].mxu0 }
 0x245   : > { %7918 = vst [vmem:[#allocation42_spill] sm:$0xff] %v5794_v55  ;;  %v5798_v31 = vpop.f32.mrb[5].mxu0 }
 0x246   : > { %v5796_v61 = vpop.f32.mrb[24].mxu1  ;;  %7920 = vst [vmem:[#allocation44_spill] sm:$0xff] %v5798_v31 }
 0x247   : > { %7919 = vst [vmem:[#allocation43_spill] sm:$0xff] %v5796_v61  ;;  %532 = vmax.xlane.f32.xlu0 %v5792_v4  ;;  %v5801_v34 = vpop.f32.mrb[25].mxu1 }
 0x248   : > { %7921 = vst [vmem:[#allocation45_spill] sm:$0xff] %v5801_v34 }
 0x24c   : > { %v5803_v46 = vpop.f32.mrb[6].mxu0 }
 0x24d   : > { %7922 = vst [vmem:[#allocation46_spill] sm:$0xff] %v5803_v46  ;;  %v5807_v36 = vpop.f32.mrb[7].mxu0 }
 0x24e   : > { %v5805_v10 = vpop.f32.mrb[26].mxu1  ;;  %7924 = vst [vmem:[#allocation48_spill] sm:$0xff] %v5807_v36 }
 0x24f   : > { %7923 = vst [vmem:[#allocation47_spill] sm:$0xff] %v5805_v10  ;;  %v5809_v47 = vpop.f32.mrb[27].mxu1 }
 0x250   : > { %7925 = vst [vmem:[#allocation49_spill] sm:$0xff] %v5809_v47  ;;  %v5831_v47 = vpop.xlane.xlu1 %474 }
 0x251   : > { %7936 = vst [vmem:[#allocation60_spill] sm:$0xff] %v5831_v47 }
 0x254   : > { %v5811_v20 = vpop.f32.mrb[8].mxu0 }
 0x255   : > { %7926 = vst [vmem:[#allocation50_spill] sm:$0xff] %v5811_v20  ;;  %v5815_v37 = vpop.f32.mrb[9].mxu0 }
 0x256   : > { %v5813_v23 = vpop.f32.mrb[28].mxu1  ;;  %7928 = vst [vmem:[#allocation52_spill] sm:$0xff] %v5815_v37 }
 0x257   : > { %7927 = vst [vmem:[#allocation51_spill] sm:$0xff] %v5813_v23  ;;  %v5817_v61 = vpop.f32.mrb[29].mxu1 }
 0x258   : > { %7929 = vst [vmem:[#allocation53_spill] sm:$0xff] %v5817_v61 }
 0x25c   : > { %v5819_v39 = vpop.f32.mrb[10].mxu0 }
 0x25d   : > { %7930 = vst [vmem:[#allocation54_spill] sm:$0xff] %v5819_v39  ;;  %v5823_v34 = vpop.f32.mrb[11].mxu0 }
 0x25e   : > { %v5821_v31 = vpop.f32.mrb[30].mxu1  ;;  %7932 = vst [vmem:[#allocation56_spill] sm:$0xff] %v5823_v34 }
 0x25f   : > { %7931 = vst [vmem:[#allocation55_spill] sm:$0xff] %v5821_v31  ;;  %v5825_v46 = vpop.f32.mrb[31].mxu1 }
 0x260   : > { %7933 = vst [vmem:[#allocation57_spill] sm:$0xff] %v5825_v46 }
 0x264   : > { %v5827_v10 = vpop.f32.mrb[12].mxu0 }
 0x265   : > { %7934 = vst [vmem:[#allocation58_spill] sm:$0xff] %v5827_v10  ;;  %v5829_v36 = vpop.f32.mrb[13].mxu0 }
 0x266   : > { %7935 = vst [vmem:[#allocation59_spill] sm:$0xff] %v5829_v36 }
 0x26c   : > { %v5833_v20 = vpop.xlane.xlu1 %478  ;;  %v5835_v23 = vpop.f32.mrb[14].mxu0 }
 0x26d   : > { %7937 = vst [vmem:[#allocation61_spill] sm:$0xff] %v5833_v20  ;;  %7938 = vst [vmem:[#allocation62_spill] sm:$0xff] %v5835_v23  ;;  %v5837_v37 = vpop.f32.mrb[15].mxu0 }
 0x26e   : > { %7939 = vst [vmem:[#allocation63_spill] sm:$0xff] %v5837_v37 }
 0x270   : > { %v5839_v61 = vpop.xlane.xlu1 %482  ;;  %v5841_v39 = vpop.f32.mrb[16].mxu0 }
 0x271   : > { %7940 = vst [vmem:[#allocation64_spill] sm:$0xff] %v5839_v61  ;;  %7941 = vst [vmem:[#allocation65_spill] sm:$0xff] %v5841_v39  ;;  %v5843_v31 = vpop.f32.mrb[17].mxu0 }
 0x272   : > { %7942 = vst [vmem:[#allocation66_spill] sm:$0xff] %v5843_v31 }
 0x274   : > { %v5845_v34 = vpop.xlane.xlu1 %486  ;;  %v5847_v46 = vpop.f32.mrb[18].mxu0 }
 0x275   : > { %7943 = vst [vmem:[#allocation67_spill] sm:$0xff] %v5845_v34  ;;  %7944 = vst [vmem:[#allocation68_spill] sm:$0xff] %v5847_v46  ;;  %v5849_v10 = vpop.f32.mrb[19].mxu0 }
 0x276   : > { %7945 = vst [vmem:[#allocation69_spill] sm:$0xff] %v5849_v10 }
 0x278   : > { %v5851_v36 = vpop.xlane.xlu1 %490  ;;  %v5853_v47 = vpop.f32.mrb[20].mxu0 }
 0x279   : > { %7946 = vst [vmem:[#allocation70_spill] sm:$0xff] %v5851_v36  ;;  %7947 = vst [vmem:[#allocation71_spill] sm:$0xff] %v5853_v47  ;;  %v5855_v20 = vpop.f32.mrb[21].mxu0 }
 0x27a   : > { %7948 = vst [vmem:[#allocation72_spill] sm:$0xff] %v5855_v20 }
 0x27c   : > { %v5857_v23 = vpop.xlane.xlu1 %494 }
 0x27d   : > { %7949 = vst [vmem:[#allocation73_spill] sm:$0xff] %v5857_v23 }
 0x27e   : > { %v5859_v37 = vpop.f32.mrb[22].mxu0 }
 0x27f   : > { %7950 = vst [vmem:[#allocation74_spill] sm:$0xff] %v5859_v37  ;;  %v5861_v61 = vpop.f32.mrb[23].mxu0 }
 0x280   : > { %7951 = vst [vmem:[#allocation75_spill] sm:$0xff] %v5861_v61  ;;  %v5863_v39 = vpop.xlane.xlu1 %498 }
 0x281   : > { %7952 = vst [vmem:[#allocation76_spill] sm:$0xff] %v5863_v39 }
 0x284   : > { %v5865_v31 = vpop.xlane.xlu1 %502 }
 0x285   : > { %7953 = vst [vmem:[#allocation77_spill] sm:$0xff] %v5865_v31 }
 0x286   : > { %v5867_v34 = vpop.f32.mrb[24].mxu0 }
 0x287   : > { %7954 = vst [vmem:[#allocation78_spill] sm:$0xff] %v5867_v34  ;;  %v5869_v46 = vpop.f32.mrb[25].mxu0 }
 0x288   : > { %7955 = vst [vmem:[#allocation79_spill] sm:$0xff] %v5869_v46  ;;  %v507_v10 = vpop.xlane.xlu1 %506 }
 0x289   : > { %v537_v36 = vsub.f32 %v5638_v41, %v507_v10 }
 0x28b   : > { %v553_v47 = vmul.f32 0.5, %v537_v36 }
 0x28c   : > { %v511_v55 = vpop.xlane.xlu1 %510 }
 0x28d   : > { %v570_v20 = vmul.f32 1.442695, %v553_v47  ;;  %v539_v23 = vsub.f32 %v5642_v43, %v511_v55 }
 0x28e   : > { %v5873_v33 = vpop.f32.mrb[26].mxu0 }
 0x28f   : > { %7956 = vst [vmem:[#allocation80_spill] sm:$0xff] %v5873_v33  ;;  %v5875_v37 = vpop.f32.mrb[27].mxu0  ;;  %4185 = vpow2.f32 %v570_v20  ;;  %v555_v61 = vmul.f32 0.5, %v539_v23 }
 0x290   : > { %7957 = vst [vmem:[#allocation81_spill] sm:$0xff] %v5875_v37  ;;  %v515_v39 = vpop.xlane.xlu1 %514 }
 0x291   : > { %v574_v31 = vmul.f32 1.442695, %v555_v61  ;;  %v541_v34 = vsub.f32 %v5650_v50, %v515_v39  ;;  %v5888_v50 = vpop.xlane.xlu0 %476 }
 0x292   : > { %7961 = vst [vmem:[#allocation85_spill] sm:$0xff] %v5888_v50 }
 0x293   : > { %4187 = vpow2.f32 %v574_v31  ;;  %v557_v46 = vmul.f32 0.5, %v541_v34 }
 0x294   : > { %v519_v26 = vpop.xlane.xlu1 %518 }
 0x295   : > { %v578_v41 = vmul.f32 1.442695, %v557_v46  ;;  %v543_v47 = vsub.f32 %v5657_v56, %v519_v26 }
 0x296   : > { %v5881_v36 = vpop.f32.mrb[28].mxu0 }
 0x297   : > { %7959 = vst [vmem:[#allocation83_spill] sm:$0xff] %v5881_v36  ;;  %v5883_v43 = vpop.f32.mrb[29].mxu0  ;;  %4189 = vpow2.f32 %v578_v41  ;;  %v559_v55 = vmul.f32 0.5, %v543_v47 }
 0x298   : > { %7960 = vst [vmem:[#allocation84_spill] sm:$0xff] %v5883_v43  ;;  %v523_v10 = vpop.xlane.xlu1 %522 }
 0x299   : > { %v5885_v20 = vpop.eup %4185  ;;  %v582_v61 = vmul.f32 1.442695, %v559_v55  ;;  %v545_v39 = vsub.f32 %v5669_v0, %v523_v10 }
 0x29a   : > { %602 = vadd.xlane.f32.xlu1 %v5885_v20 }
 0x29b   : > { %4191 = vpow2.f32 %v582_v61  ;;  %v561_v46 = vmul.f32 0.5, %v545_v39 }
 0x29c   : > { %v527_v34 = vpop.xlane.xlu1 %526 }
 0x29d   : > { %v5891_v56 = vpop.eup %4187  ;;  %v586_v26 = vmul.f32 1.442695, %v561_v46  ;;  %v547_v23 = vsub.f32 %v5677_v6, %v527_v34 }
 0x29e   : > { %v5894_v31 = vpop.f32.mrb[30].mxu0  ;;  %606 = vadd.xlane.f32.xlu1 %v5891_v56 }
 0x29f   : > { %7962 = vst [vmem:[#allocation86_spill] sm:$0xff] %v5894_v31  ;;  %v5897_v41 = vpop.f32.mrb[31].mxu0  ;;  %4193 = vpow2.f32 %v586_v26  ;;  %v563_v0 = vmul.f32 0.5, %v547_v23 }
 0x2a0   : > { %7963 = vst [vmem:[#allocation87_spill] sm:$0xff] %v5897_v41  ;;  %v5899_v47 = vpop.xlane.xlu0 %480  ;;  %v531_v55 = vpop.xlane.xlu1 %530 }
 0x2a1   : > { %7964 = vst [vmem:[#allocation88_spill] sm:$0xff] %v5899_v47  ;;  %v5901_v10 = vpop.eup %4189  ;;  %v590_v61 = vmul.f32 1.442695, %v563_v0  ;;  %v549_v39 = vsub.f32 %v5689_v17, %v531_v55 }
 0x2a2   : > { %610 = vadd.xlane.f32.xlu1 %v5901_v10 }
 0x2a3   : > { %4195 = vpow2.f32 %v590_v61  ;;  %v565_v6 = vmul.f32 0.5, %v549_v39 }
 0x2a4   : > { %v5905_v46 = vpop.xlane.xlu0 %484  ;;  %v535_v34 = vpop.xlane.xlu1 %534 }
 0x2a5   : > { %7965 = vst [vmem:[#allocation89_spill] sm:$0xff] %v5905_v46  ;;  %v5907_v31 = vpop.eup %4191  ;;  %v594_v41 = vmul.f32 1.442695, %v565_v6  ;;  %v551_v26 = vsub.f32 %v5700_v45, %v535_v34 }
 0x2a6   : > { %614 = vadd.xlane.f32.xlu1 %v5907_v31 }
 0x2a7   : > { %4197 = vpow2.f32 %v594_v41  ;;  %v567_v23 = vmul.f32 0.5, %v551_v26 }
 0x2a8   : > { %v5911_v36 = vpop.xlane.xlu0 %488 }
 0x2a9   : > { %7966 = vst [vmem:[#allocation90_spill] sm:$0xff] %v5911_v36  ;;  %v5913_v0 = vpop.eup %4193  ;;  %v598_v17 = vmul.f32 1.442695, %v567_v23 }
 0x2aa   : > { %618 = vadd.xlane.f32.xlu1 %v5913_v0 }
 0x2ab   : > { %4199 = vpow2.f32 %v598_v17 }
 0x2ac   : > { %v5916_v55 = vpop.xlane.xlu0 %492 }
 0x2ad   : > { %7967 = vst [vmem:[#allocation91_spill] sm:$0xff] %v5916_v55  ;;  %v5918_v61 = vpop.eup %4195 }
 0x2ae   : > { %622 = vadd.xlane.f32.xlu1 %v5918_v61 }
 0x2b0   : > { %v5921_v39 = vpop.xlane.xlu0 %496 }
 0x2b1   : > { %7968 = vst [vmem:[#allocation92_spill] sm:$0xff] %v5921_v39  ;;  %v5923_v45 = vpop.eup %4197 }
 0x2b2   : > { %626 = vadd.xlane.f32.xlu1 %v5923_v45 }
 0x2b4   : > { %v5926_v41 = vpop.xlane.xlu0 %500 }
 0x2b5   : > { %7969 = vst [vmem:[#allocation93_spill] sm:$0xff] %v5926_v41  ;;  %v5928_v6 = vpop.eup %4199 }
 0x2b6   : > { %630 = vadd.xlane.f32.xlu1 %v5928_v6 }
 0x2b8   : > { %v505_v34 = vpop.xlane.xlu0 %504 }
 0x2b9   : > { %v536_v26 = vsub.f32 %v5736_v11, %v505_v34 }
 0x2bb   : > { %v552_v23 = vmul.f32 0.5, %v536_v26 }
 0x2bc   : > { %v509_v17 = vpop.xlane.xlu0 %508 }
 0x2bd   : > { %v568_v43 = vmul.f32 1.442695, %v552_v23  ;;  %v538_v33 = vsub.f32 %v5740_v9, %v509_v17 }
 0x2bf   : > { %4201 = vpow2.f32 %v568_v43  ;;  %v554_v37 = vmul.f32 0.5, %v538_v33 }
 0x2c0   : > { %v513_v39 = vpop.xlane.xlu0 %512 }
 0x2c1   : > { %v572_v55 = vmul.f32 1.442695, %v554_v37  ;;  %v540_v36 = vsub.f32 %v5748_v42, %v513_v39 }
 0x2c3   : > { %4203 = vpow2.f32 %v572_v55  ;;  %v556_v41 = vmul.f32 0.5, %v540_v36 }
 0x2c4   : > { %v517_v46 = vpop.xlane.xlu0 %516 }
 0x2c5   : > { %v576_v47 = vmul.f32 1.442695, %v556_v41  ;;  %v542_v50 = vsub.f32 %v5756_v48, %v517_v46 }
 0x2c7   : > { %4205 = vpow2.f32 %v576_v47  ;;  %v558_v15 = vmul.f32 0.5, %v542_v50 }
 0x2c8   : > { %v521_v11 = vpop.xlane.xlu0 %520 }
 0x2c9   : > { %v5935_v34 = vpop.eup %4201  ;;  %v580_v26 = vmul.f32 1.442695, %v558_v15  ;;  %v544_v9 = vsub.f32 %v5768_v7, %v521_v11 }
 0x2ca   : > { %600 = vadd.xlane.f32.xlu0 %v5935_v34 }
 0x2cb   : > { %4207 = vpow2.f32 %v580_v26  ;;  %v560_v37 = vmul.f32 0.5, %v544_v9 }
 0x2cc   : > { %v525_v33 = vpop.xlane.xlu0 %524 }
 0x2cd   : > { %v5939_v42 = vpop.eup %4203  ;;  %v584_v36 = vmul.f32 1.442695, %v560_v37  ;;  %v546_v43 = vsub.f32 %v5776_v59, %v525_v33 }
 0x2ce   : > { %604 = vadd.xlane.f32.xlu0 %v5939_v42 }
 0x2cf   : > { %4209 = vpow2.f32 %v584_v36  ;;  %v562_v48 = vmul.f32 0.5, %v546_v43 }
 0x2d0   : > { %v529_v50 = vpop.xlane.xlu0 %528 }
 0x2d1   : > { %v5943_v47 = vpop.eup %4205  ;;  %v588_v15 = vmul.f32 1.442695, %v562_v48  ;;  %v548_v7 = vsub.f32 %v5788_v57, %v529_v50 }
 0x2d2   : > { %608 = vadd.xlane.f32.xlu0 %v5943_v47 }
 0x2d3   : > { %4211 = vpow2.f32 %v588_v15  ;;  %v564_v46 = vmul.f32 0.5, %v548_v7 }
 0x2d4   : > { %v533_v55 = vpop.xlane.xlu0 %532 }
 0x2d5   : > { %v5947_v39 = vpop.eup %4207  ;;  %v592_v41 = vmul.f32 1.442695, %v564_v46  ;;  %v550_v59 = vsub.f32 %v5792_v4, %v533_v55 }
 0x2d6   : > { %612 = vadd.xlane.f32.xlu0 %v5947_v39 }
 0x2d7   : > { %4213 = vpow2.f32 %v592_v41  ;;  %v566_v23 = vmul.f32 0.5, %v550_v59 }
 0x2d9   : > { %v5951_v17 = vpop.eup %4209  ;;  %v596_v11 = vmul.f32 1.442695, %v566_v23 }
 0x2da   : > { %616 = vadd.xlane.f32.xlu0 %v5951_v17 }
 0x2db   : > { %4215 = vpow2.f32 %v596_v11 }
 0x2dd   : > { %v5954_v57 = vpop.eup %4211 }
 0x2de   : > { %620 = vadd.xlane.f32.xlu0 %v5954_v57 }
 0x2e1   : > { %v5957_v26 = vpop.eup %4213 }
 0x2e2   : > { %624 = vadd.xlane.f32.xlu0 %v5957_v26 }
 0x2e5   : > { %v5960_v9 = vpop.eup %4215 }
 0x2e6   : > { %628 = vadd.xlane.f32.xlu0 %v5960_v9 }
 0x327   : > { %v5963_v4 = vpop.xlane.xlu1 %602 }
 0x328   : > { %v633_v37 = vmul.f32 1e-08, %v5963_v4 }
 0x32a   : > { %v649_v33 = vadd.f32 %v5885_v20, %v633_v37 }
 0x32b   : > { %v5967_v36 = vpop.xlane.xlu1 %606 }
 0x32c   : > { %4217 = vlog2.f32 %v649_v33  ;;  %v635_v43 = vmul.f32 1e-08, %v5967_v36 }
 0x32e   : > { %v651_v48 = vadd.f32 %v5891_v56, %v635_v43 }
 0x32f   : > { %v5971_v50 = vpop.xlane.xlu1 %610 }
 0x330   : > { %4219 = vlog2.f32 %v651_v48  ;;  %v637_v15 = vmul.f32 1e-08, %v5971_v50 }
 0x332   : > { %v653_v7 = vadd.f32 %v5901_v10, %v637_v15 }
 0x333   : > { %v5981_v48 = vpop.xlane.xlu1 %614 }
 0x334   : > { %4221 = vlog2.f32 %v653_v7 }
 0x336   : > { %v4218_v46 = vpop.eup %4217 }
 0x337   : > { %v667_v55 = vmul.f32 0.6931472, %v4218_v46  ;;  %v5986_v15 = vpop.xlane.xlu1 %618 }
 0x339   : > { %v697_v41 = vsub.f32 %v5467_v44, %v667_v55 }
 0x33a   : > { %v4220_v20 = vpop.eup %4219 }
 0x33b   : > { %v713_v59 = vmul.f32 %v5492_v58, %v697_v41  ;;  %v671_v23 = vmul.f32 0.6931472, %v4220_v20  ;;  %v5994_v46 = vpop.xlane.xlu1 %622 }
 0x33d   : > { %730 = vadd.xlane.f32.xlu1 %v713_v59  ;;  %v699_v11 = vsub.f32 %v5582_v3, %v671_v23 }
 0x33e   : > { %v4222_v56 = vpop.eup %4221 }
 0x33f   : > { %v715_v37 = vmul.f32 %v5599_v19, %v699_v11  ;;  %v675_v33 = vmul.f32 0.6931472, %v4222_v56  ;;  %v6006_v56 = vpop.xlane.xlu1 %626 }
 0x341   : > { %734 = vadd.xlane.f32.xlu1 %v715_v37  ;;  %v701_v43 = vsub.f32 %v5586_v8, %v675_v33  ;;  %v639_v8 = vmul.f32 1e-08, %v5981_v48 }
 0x343   : > { %v717_v10 = vmul.f32 %v5606_v25, %v701_v43  ;;  %v655_v20 = vadd.f32 %v5907_v31, %v639_v8  ;;  %v645_v8 = vmul.f32 1e-08, %v6006_v56 }
 0x345   : > { %738 = vadd.xlane.f32.xlu1 %v717_v10 }
 0x357   : > { %v5983_v44 = vpop.xlane.xlu0 %600 }
 0x358   : > { %v632_v58 = vmul.f32 1e-08, %v5983_v44 }
 0x35a   : > { %v648_v3 = vadd.f32 %v5935_v34, %v632_v58  ;;  %v641_v34 = vmul.f32 1e-08, %v5986_v15 }
 0x35b   : > { %v5989_v7 = vpop.xlane.xlu0 %604 }
 0x35c   : > { %4223 = vlog2.f32 %v648_v3  ;;  %v634_v19 = vmul.f32 1e-08, %v5989_v7  ;;  %v657_v33 = vadd.f32 %v5913_v0, %v641_v34 }
 0x35e   : > { %v650_v25 = vadd.f32 %v5939_v42, %v634_v19  ;;  %v643_v42 = vmul.f32 1e-08, %v5994_v46 }
 0x35f   : > { %v5996_v55 = vpop.xlane.xlu0 %608 }
 0x360   : > { %4225 = vlog2.f32 %v650_v25  ;;  %v636_v41 = vmul.f32 1e-08, %v5996_v55  ;;  %v659_v58 = vadd.f32 %v5918_v61, %v643_v42 }
 0x362   : > { %v652_v59 = vadd.f32 %v5943_v47, %v636_v41  ;;  %v6017_v41 = vpop.xlane.xlu1 %630 }
 0x363   : > { %v6002_v23 = vpop.xlane.xlu0 %612 }
 0x364   : > { %4227 = vlog2.f32 %v652_v59  ;;  %v638_v11 = vmul.f32 1e-08, %v6002_v23  ;;  %v661_v59 = vadd.f32 %v5923_v45, %v645_v8 }
 0x365   : > { %4229 = vlog2.f32 %v655_v20 }
 0x366   : > { %v4224_v37 = vpop.eup %4223  ;;  %v654_v43 = vadd.f32 %v5947_v39, %v638_v11  ;;  %v647_v11 = vmul.f32 1e-08, %v6017_v41 }
 0x367   : > { %v6010_v31 = vpop.xlane.xlu0 %616  ;;  %v665_v10 = vmul.f32 0.6931472, %v4224_v37 }
 0x368   : > { %4231 = vlog2.f32 %v654_v43  ;;  %v640_v47 = vmul.f32 1e-08, %v6010_v31  ;;  %v663_v45 = vadd.f32 %v5928_v6, %v647_v11 }
 0x369   : > { %v696_v3 = vsub.f32 %v5525_v14, %v665_v10  ;;  %4233 = vlog2.f32 %v657_v33 }
 0x36a   : > { %v4226_v19 = vpop.eup %4225  ;;  %v656_v25 = vadd.f32 %v5951_v17, %v640_v47 }
 0x36b   : > { %v6019_v0 = vpop.xlane.xlu0 %620  ;;  %v712_v39 = vmul.f32 %v5553_v29, %v696_v3  ;;  %v669_v20 = vmul.f32 0.6931472, %v4226_v19 }
 0x36c   : > { %4235 = vlog2.f32 %v656_v25  ;;  %v642_v34 = vmul.f32 1e-08, %v6019_v0 }
 0x36d   : > { %4237 = vlog2.f32 %v659_v58  ;;  %728 = vadd.xlane.f32.xlu0 %v712_v39  ;;  %v698_v14 = vsub.f32 %v5578_v62, %v669_v20 }
 0x36e   : > { %v4228_v61 = vpop.eup %4227  ;;  %v658_v17 = vadd.f32 %v5954_v57, %v642_v34 }
 0x36f   : > { %v6027_v42 = vpop.xlane.xlu0 %624  ;;  %v714_v37 = vmul.f32 %v5592_v13, %v698_v14  ;;  %v673_v29 = vmul.f32 0.6931472, %v4228_v61  ;;  %v4230_v33 = vpop.eup %4229 }
 0x370   : > { %4239 = vlog2.f32 %v658_v17  ;;  %v644_v43 = vmul.f32 1e-08, %v6027_v42  ;;  %v679_v13 = vmul.f32 0.6931472, %v4230_v33 }
 0x371   : > { %732 = vadd.xlane.f32.xlu0 %v714_v37  ;;  %v700_v10 = vsub.f32 %v5653_v53, %v673_v29  ;;  %4241 = vlog2.f32 %v661_v59 }
 0x372   : > { %v4232_v62 = vpop.eup %4231  ;;  %v660_v47 = vadd.f32 %v5957_v26, %v644_v43  ;;  %v703_v20 = vsub.f32 %v5590_v12, %v679_v13  ;;  %v7978_v13 = vld [vmem:[#allocation52_spill] sm:$0xff] }
 0x373   : > { %v6034_v58 = vpop.xlane.xlu0 %628  ;;  %v716_v57 = vmul.f32 %v5691_v1, %v700_v10  ;;  %v677_v3 = vmul.f32 0.6931472, %v4232_v62  ;;  %v4234_v19 = vpop.eup %4233 }
 0x374   : > { %4243 = vlog2.f32 %v660_v47  ;;  %v646_v8 = vmul.f32 1e-08, %v6034_v58  ;;  %v683_v1 = vmul.f32 0.6931472, %v4234_v19  ;;  %v719_v11 = vmul.f32 %v5613_v30, %v703_v20  ;;  %v7979_v19 = vld [vmem:[#allocation54_spill] sm:$0xff]  ;;  %v6077_v20 = vld [vmem:[%s5405_s20 + $0x80] sm:$0xff] }
 0x375   : > { %736 = vadd.xlane.f32.xlu0 %v716_v57  ;;  %v702_v25 = vsub.f32 %v5665_v63, %v677_v3  ;;  %4245 = vlog2.f32 %v663_v45 }
 0x376   : > { %v4236_v53 = vpop.eup %4235  ;;  %v662_v39 = vadd.f32 %v5960_v9, %v646_v8  ;;  %v705_v17 = vsub.f32 %v5597_v38, %v683_v1  ;;  %v7980_v8 = vld [vmem:[#allocation56_spill] sm:$0xff]  ;;  %v6082_v1 = vld [vmem:[%s5405_s20 + $0x88] sm:$0xff] }
 0x377   : > { %v4238_v6 = vpop.eup %4237  ;;  %v718_v26 = vmul.f32 %v5704_v28, %v702_v25  ;;  %v681_v34 = vmul.f32 0.6931472, %v4236_v53  ;;  %v7981_v25 = vld [vmem:[#allocation58_spill] sm:$0xff]  ;;  %v7982_v53 = vld [vmem:[#allocation59_spill] sm:$0xff] }
 0x378   : > { %4247 = vlog2.f32 %v662_v39  ;;  %v687_v59 = vmul.f32 0.6931472, %v4238_v6  ;;  %v721_v33 = vmul.f32 %v5620_v51, %v705_v17  ;;  %v7983_v39 = vld [vmem:[#allocation62_spill] sm:$0xff]  ;;  %v7984_v6 = vld [vmem:[#allocation63_spill] sm:$0xff]  ;;  %v6094_v17 = vld [vmem:[%s5405_s20 + $0x98] sm:$0xff] }
 0x379   : > { %740 = vadd.xlane.f32.xlu0 %v718_v26  ;;  %v704_v14 = vsub.f32 %v5673_v5, %v681_v34  ;;  %v7985_v26 = vld [vmem:[#allocation16_spill] sm:$0xff]  ;;  %v7986_v34 = vld [vmem:[#allocation15_spill] sm:$0xff] }
 0x37a   : > { %v4240_v61 = vpop.eup %4239  ;;  %v707_v29 = vsub.f32 %v5604_v22, %v687_v59  ;;  %v7989_v59 = vld [vmem:[#allocation18_spill] sm:$0xff] }
 0x37b   : > { %v720_v63 = vmul.f32 %v5714_v49, %v704_v14  ;;  %v685_v9 = vmul.f32 0.6931472, %v4240_v61  ;;  %v4242_v37 = vpop.eup %4241  ;;  %v7987_v14 = vld [vmem:[#allocation32_spill] sm:$0xff]  ;;  %v7988_v61 = vld [vmem:[#allocation31_spill] sm:$0xff] }
 0x37c   : > { %v691_v10 = vmul.f32 0.6931472, %v4242_v37  ;;  %v723_v62 = vmul.f32 %v5624_v35, %v707_v29  ;;  %v7994_v37 = vld [vmem:[#allocation33_spill] sm:$0xff] }
 0x37d   : > { %742 = vadd.xlane.f32.xlu0 %v719_v11  ;;  %744 = vadd.xlane.f32.xlu1 %v720_v63  ;;  %v706_v12 = vsub.f32 %v5685_v16, %v685_v9  ;;  %v6089_v11 = vld [vmem:[%s5405_s20 + $0x90] sm:$0xff]  ;;  %v7991_v63 = vld [vmem:[#allocation34_spill] sm:$0xff]  ;;  %v7993_v9 = vld [vmem:[#allocation17_spill] sm:$0xff] }
 0x37e   : > { %v4244_v28 = vpop.eup %4243  ;;  %v709_v16 = vsub.f32 %v5611_v27, %v691_v10  ;;  %v7970_v27 = vld [vmem:[#allocation35_spill] sm:$0xff]  ;;  %v7997_v29 = vld [vmem:[#allocation37_spill] sm:$0xff]  ;;  %v8001_v10 = vld [vmem:[#allocation22_spill] sm:$0xff] }
 0x37f   : > { %v722_v5 = vmul.f32 %v5720_v24, %v706_v12  ;;  %v689_v43 = vmul.f32 0.6931472, %v4244_v28  ;;  %v4246_v30 = vpop.eup %4245  ;;  %7990 = vst [vmem:[#allocation35_spill] sm:$0xff] %v6089_v11  ;;  %v7995_v12 = vld [vmem:[#allocation20_spill] sm:$0xff]  ;;  %v6101_v28 = vld [vmem:[%s5405_s20 + $0xa0] sm:$0xff] }
 0x380   : > { %v695_v22 = vmul.f32 0.6931472, %v4246_v30  ;;  %v725_v24 = vmul.f32 %v5627_v54, %v709_v16  ;;  %v7974_v54 = vld [vmem:[#allocation44_spill] sm:$0xff]  ;;  %v6113_v30 = vld [vmem:[%s5405_s20 + $0xb0] sm:$0xff] }
 0x381   : > { %746 = vadd.xlane.f32.xlu0 %v721_v33  ;;  %748 = vadd.xlane.f32.xlu1 %v722_v5  ;;  %v708_v38 = vsub.f32 %v5696_v18, %v689_v43  ;;  %v7971_v18 = vld [vmem:[#allocation38_spill] sm:$0xff]  ;;  %v7999_v5 = vld [vmem:[#allocation19_spill] sm:$0xff]  ;;  %v8000_v43 = vld [vmem:[#allocation36_spill] sm:$0xff]  ;;  %8002 = vst [vmem:[#allocation44_spill] sm:$0xff] %v6113_v30 }
 0x382   : > { %v4248_v49 = vpop.eup %4247  ;;  %v711_v3 = vsub.f32 %v5618_v32, %v695_v22  ;;  %v7975_v32 = vld [vmem:[#allocation46_spill] sm:$0xff]  ;;  %7992 = vst [vmem:[#allocation38_spill] sm:$0xff] %v6094_v17  ;;  %v8007_v16 = vld [vmem:[#allocation24_spill] sm:$0xff]  ;;  %v8008_v22 = vld [vmem:[#allocation45_spill] sm:$0xff] }
 0x383   : > { %v724_v45 = vmul.f32 %v5725_v60, %v708_v38  ;;  %v693_v47 = vmul.f32 0.6931472, %v4248_v49  ;;  %v7972_v60 = vld [vmem:[#allocation40_spill] sm:$0xff]  ;;  %v6106_v33 = vld [vmem:[%s5405_s20 + $0xa8] sm:$0xff]  ;;  %v8003_v38 = vld [vmem:[#allocation41_spill] sm:$0xff] }
 0x384   : > { %v727_v35 = vmul.f32 %v5634_v40, %v711_v3  ;;  %v7977_v40 = vld [vmem:[#allocation50_spill] sm:$0xff]  ;;  %7996 = vst [vmem:[#allocation40_spill] sm:$0xff] %v6101_v28  ;;  %v6118_v49 = vld [vmem:[%s5405_s20 + $0xb8] sm:$0xff] }
 0x385   : > { %750 = vadd.xlane.f32.xlu1 %v723_v62  ;;  %752 = vadd.xlane.f32.xlu0 %v724_v45  ;;  %v710_v51 = vsub.f32 %v5711_v21, %v693_v47  ;;  %v7973_v21 = vld [vmem:[#allocation42_spill] sm:$0xff]  ;;  %8004 = vst [vmem:[#allocation46_spill] sm:$0xff] %v6118_v49  ;;  %v8005_v62 = vld [vmem:[#allocation21_spill] sm:$0xff]  ;;  %v8006_v45 = vld [vmem:[#allocation39_spill] sm:$0xff] }
 0x386   : > { %7998 = vst [vmem:[#allocation42_spill] sm:$0xff] %v6106_v33  ;;  %v3781_v47 = vld [vmem:[%s5405_s20 + $0xc0] sm:$0xff]  ;;  %v8011_v3 = vld [vmem:[#allocation26_spill] sm:$0xff] }
 0x387   : > { %v726_v57 = vmul.f32 %v5730_v2, %v710_v51  ;;  %v7976_v2 = vld [vmem:[#allocation48_spill] sm:$0xff]  ;;  %v3782_v51 = vld [vmem:[%s5405_s20 + $0xc8] sm:$0xff] }
 0x389   : > { %754 = vadd.xlane.f32.xlu1 %v725_v24  ;;  %756 = vadd.xlane.f32.xlu0 %v726_v57  ;;  %v8009_v24 = vld [vmem:[#allocation23_spill] sm:$0xff] }
 0x38a   : > { %v8010_v57 = vld [vmem:[#allocation43_spill] sm:$0xff] }
 0x38d   : > { %758 = vadd.xlane.f32.xlu1 %v727_v35  ;;  %1390 = vmax.xlane.f32.xlu0 %v5760_v52  ;;  %v3783_v35 = vld [vmem:[%s5405_s20 + $0xd0] sm:$0xff] }
 0x391   : > { %1388 = vmax.xlane.f32.xlu1 %v7970_v27  ;;  %1394 = vmax.xlane.f32.xlu0 %v7971_v18 }
 0x395   : > { %1392 = vmax.xlane.f32.xlu1 %v7972_v60  ;;  %1398 = vmax.xlane.f32.xlu0 %v7973_v21 }
 0x399   : > { %1396 = vmax.xlane.f32.xlu1 %v7974_v54  ;;  %1402 = vmax.xlane.f32.xlu0 %v7975_v32 }
 0x39d   : > { %1400 = vmax.xlane.f32.xlu1 %v7976_v2  ;;  %1406 = vmax.xlane.f32.xlu0 %v7977_v40 }
 0x3a1   : > { %1404 = vmax.xlane.f32.xlu1 %v7978_v13  ;;  %1410 = vmax.xlane.f32.xlu0 %v7979_v19 }
 0x3a5   : > { %1408 = vmax.xlane.f32.xlu1 %v7980_v8  ;;  %1414 = vmax.xlane.f32.xlu0 %v7981_v25 }
 0x3a9   : > { %1412 = vmax.xlane.f32.xlu1 %v7982_v53  ;;  %1418 = vmax.xlane.f32.xlu0 %v7983_v39 }
 0x3ad   : > { %1416 = vmax.xlane.f32.xlu1 %v7984_v6  ;;  %1516 = vmax.xlane.f32.xlu0 %v7985_v26 }
 0x3b1   : > { %1518 = vmax.xlane.f32.xlu1 %v7986_v34  ;;  %2108 = vmax.xlane.f32.xlu0 %v6077_v20 }
 0x3b5   : > { %2110 = vmax.xlane.f32.xlu1 %v6082_v1  ;;  %3120 = vmax.xlane.f32.xlu0 %v7987_v14 }
 0x3b9   : > { %3122 = vmax.xlane.f32.xlu1 %v7988_v61  ;;  %1520 = vmax.xlane.f32.xlu0 %v7989_v59 }
 0x3bd   : > { %2112 = vmax.xlane.f32.xlu1 %v6089_v11  ;;  %3124 = vmax.xlane.f32.xlu0 %v7991_v63 }
 0x3c1   : > { %1522 = vmax.xlane.f32.xlu1 %v7993_v9  ;;  %2114 = vmax.xlane.f32.xlu0 %v6094_v17 }
 0x3c5   : > { %3126 = vmax.xlane.f32.xlu1 %v7994_v37  ;;  %1524 = vmax.xlane.f32.xlu0 %v7995_v12 }
 0x3c9   : > { %2116 = vmax.xlane.f32.xlu1 %v6101_v28  ;;  %3128 = vmax.xlane.f32.xlu0 %v7997_v29 }
 0x3ca   : > { %v731_v39 = vpop.xlane.xlu1 %730 }
 0x3cd   : > { %1526 = vmax.xlane.f32.xlu1 %v7999_v5  ;;  %2118 = vmax.xlane.f32.xlu0 %v6106_v33  ;;  %v8018_v5 = vld [vmem:[#allocation67_spill] sm:$0xff] }
 0x3ce   : > { %v735_v53 = vpop.xlane.xlu1 %734 }
 0x3d1   : > { %3130 = vmax.xlane.f32.xlu1 %v8000_v43  ;;  %1528 = vmax.xlane.f32.xlu0 %v8001_v10 }
 0x3d5   : > { %2120 = vmax.xlane.f32.xlu1 %v6113_v30  ;;  %3132 = vmax.xlane.f32.xlu0 %v8003_v38  ;;  %v8017_v38 = vld [vmem:[#allocation88_spill] sm:$0xff] }
 0x3d9   : > { %1530 = vmax.xlane.f32.xlu1 %v8005_v62  ;;  %2122 = vmax.xlane.f32.xlu0 %v6118_v49  ;;  %v8016_v62 = vld [vmem:[#allocation64_spill] sm:$0xff] }
 0x3dd   : > { %3134 = vmax.xlane.f32.xlu1 %v8006_v45  ;;  %1532 = vmax.xlane.f32.xlu0 %v8007_v16  ;;  %v8012_v16 = vld [vmem:[#allocation60_spill] sm:$0xff] }
 0x3de   : > { %4249 = vrcp.f32 %v8012_v16 }
 0x3df   : > { %4251 = vlog2.f32 %v8012_v16 }
 0x3e1   : > { %2124 = vmax.xlane.f32.xlu1 %v3781_v47  ;;  %3136 = vmax.xlane.f32.xlu0 %v8008_v22  ;;  %v8013_v47 = vld [vmem:[#allocation82_spill] sm:$0xff] }
 0x3e2   : > { %4253 = vrcp.f32 %v8013_v47 }
 0x3e3   : > { %4255 = vlog2.f32 %v8013_v47 }
 0x3e5   : > { %1534 = vmax.xlane.f32.xlu1 %v8009_v24  ;;  %2126 = vmax.xlane.f32.xlu0 %v3782_v51  ;;  %v6136_v24 = vpop.xlane.xlu1 %738 }
 0x3e8   : > { %v4250_v16 = vpop.eup %4249 }
 0x3e9   : > { %3138 = vmax.xlane.f32.xlu1 %v8010_v57  ;;  %1536 = vmax.xlane.f32.xlu0 %v8011_v3  ;;  %v8014_v3 = vld [vmem:[#allocation85_spill] sm:$0xff]  ;;  %v763_v33 = vmul.f32 %v4250_v16, %v731_v39 }
 0x3ea   : > { %4257 = vrcp.f32 %v8014_v3  ;;  %v8020_v39 = vld [vmem:[#allocation89_spill] sm:$0xff] }
 0x3eb   : > { %4259 = vlog2.f32 %v8014_v3  ;;  %v4252_v3 = vpop.eup %4251 }
 0x3ec   : > { %v4254_v49 = vpop.eup %4253 }
 0x3ed   : > { %2128 = vmax.xlane.f32.xlu1 %v3783_v35  ;;  %v8015_v35 = vld [vmem:[#allocation61_spill] sm:$0xff]  ;;  %v4256_v30 = vpop.eup %4255 }
 0x3ee   : > { %4261 = vrcp.f32 %v8015_v35  ;;  %v793_v28 = vmul.f32 0.6931472, %v4256_v30 }
 0x3ef   : > { %4263 = vlog2.f32 %v8015_v35 }
 0x3f0   : > { %4265 = vlog2.f32 %v5983_v44 }
 0x3f1   : > { %4267 = vlog2.f32 %v5963_v4 }
 0x3f2   : > { %4269 = vlog2.f32 %v5989_v7 }
 0x3f3   : > { %4271 = vrcp.f32 %v8016_v62 }
 0x3f4   : > { %4273 = vrcp.f32 %v8017_v38  ;;  %v4258_v35 = vpop.eup %4257 }
 0x3f5   : > { %4275 = vlog2.f32 %v8017_v38  ;;  %v4260_v7 = vpop.eup %4259 }
 0x3f6   : > { %4277 = vlog2.f32 %v8016_v62  ;;  %v795_v62 = vmul.f32 0.6931472, %v4252_v3 }
 0x3f7   : > { %4279 = vlog2.f32 %v5967_v36  ;;  %v8019_v36 = vld [vmem:[#allocation70_spill] sm:$0xff] }
 0x3f8   : > { %v4262_v43 = vpop.eup %4261  ;;  %4281 = vrcp.f32 %v8018_v5  ;;  %v825_v16 = vsub.f32 %v763_v33, %v795_v62  ;;  %v8021_v62 = vld [vmem:[#allocation90_spill] sm:$0xff] }
 0x3f9   : > { %v4264_v29 = vpop.eup %4263  ;;  %4283 = vlog2.f32 %v5996_v55 }
 0x3fa   : > { %v729_v6 = vpop.xlane.xlu0 %728  ;;  %v4266_v12 = vpop.eup %4265  ;;  %4285 = vlog2.f32 %v8018_v5 }
 0x3fb   : > { %v761_v10 = vmul.f32 %v4254_v49, %v729_v6  ;;  %v4268_v17 = vpop.eup %4267  ;;  %4287 = vrcp.f32 %v8019_v36  ;;  %v797_v49 = vmul.f32 0.6931472, %v4260_v7 }
 0x3fc   : > { %v4270_v63 = vpop.eup %4269  ;;  %4289 = vrcp.f32 %v8020_v39  ;;  %v843_v3 = vmul.f32 0.6931472, %v4268_v17 }
 0x3fd   : > { %v824_v6 = vsub.f32 %v761_v10, %v793_v28  ;;  %v4272_v55 = vpop.eup %4271  ;;  %4291 = vlog2.f32 %v8020_v39  ;;  %v845_v28 = vmul.f32 0.6931472, %v4270_v63 }
 0x3fe   : > { %v733_v25 = vpop.xlane.xlu0 %732  ;;  %v4274_v5 = vpop.eup %4273  ;;  %4293 = vlog2.f32 %v8019_v36 }
 0x3ff   : > { %v765_v38 = vmul.f32 %v4258_v35, %v733_v25  ;;  %v841_v25 = vmul.f32 0.6931472, %v4266_v12  ;;  %v767_v35 = vmul.f32 %v4262_v43, %v735_v53  ;;  %v4276_v61 = vpop.eup %4275  ;;  %4295 = vlog2.f32 %v5971_v50 }
 0x400   : > { %v4278_v7 = vpop.eup %4277  ;;  %4297 = vrcp.f32 %v8021_v62  ;;  %v873_v12 = vadd.f32 %v843_v3, %v825_v16  ;;  %v801_v63 = vmul.f32 0.6931472, %v4276_v61 }
 0x401   : > { %v826_v30 = vsub.f32 %v765_v38, %v797_v49  ;;  %v872_v10 = vadd.f32 %v841_v25, %v824_v6  ;;  %v799_v38 = vmul.f32 0.6931472, %v4264_v29  ;;  %v4280_v36 = vpop.eup %4279  ;;  %4299 = vlog2.f32 %v6002_v23 }
 0x402   : > { %v6131_v19 = vpop.xlane.xlu0 %736  ;;  %v4282_v43 = vpop.eup %4281  ;;  %4301 = vlog2.f32 %v5981_v48  ;;  %v847_v25 = vmul.f32 0.6931472, %v4280_v36 }
 0x403   : > { %v769_v49 = vmul.f32 %v4274_v5, %v6131_v19  ;;  %v874_v53 = vadd.f32 %v845_v28, %v826_v30  ;;  %v827_v50 = vsub.f32 %v767_v35, %v799_v38  ;;  %v4284_v6 = vpop.eup %4283  ;;  %v889_v39 = vsel %vm888_vm1, %v872_v10, 0.0 }
 0x404   : > { %v4286_v16 = vpop.eup %4285  ;;  %4303 = vlog2.f32 %v8021_v62  ;;  %v890_v30 = vsel %vm888_vm1, %v873_v12, 0.0  ;;  %v803_v10 = vmul.f32 0.6931472, %v4278_v7 }
 0x405   : > { %v828_v48 = vsub.f32 %v769_v49, %v801_v63  ;;  %v6192_v5 = vpop.eup %4287  ;;  %v892_v61 = vsel %vm888_vm1, %v874_v53, 0.0  ;;  %v875_v12 = vadd.f32 %v847_v25, %v827_v50  ;;  %v771_v49 = vmul.f32 %v4272_v55, %v6136_v24 }
 0x406   : > { %v6138_v51 = vpop.xlane.xlu0 %740  ;;  %v4290_v28 = vpop.eup %4289 }
 0x407   : > { %v4292_v36 = vpop.eup %4291 }
 0x408   : > { %v805_v55 = vmul.f32 0.6931472, %v4292_v36 }
 0x40a   : > { %v6144_v57 = vpop.xlane.xlu1 %744  ;;  %v6146_v22 = vpop.xlane.xlu0 %742 }
 0x40e   : > { %v6152_v47 = vpop.xlane.xlu1 %748  ;;  %v6154_v45 = vpop.xlane.xlu0 %746 }
 0x412   : > { %v6160_v4 = vpop.xlane.xlu1 %750  ;;  %v6162_v44 = vpop.xlane.xlu0 %752 }
 0x416   : > { %v6168_v37 = vpop.xlane.xlu1 %754  ;;  %v6170_v9 = vpop.xlane.xlu0 %756 }
 0x41a   : > { %v6176_v11 = vpop.xlane.xlu1 %758  ;;  %v1391_v59 = vpop.xlane.xlu0 %1390 }
 0x41b   : > { %v1421_v33 = vsub.f32 %v5760_v52, %v1391_v59 }
 0x41d   : > { %v6183_v17 = vmul.f32 0.17677669, %v1421_v33  ;;  %v891_v33 = vadd.f32 %v890_v30, %v889_v39  ;;  %v775_v30 = vmul.f32 %v4282_v43, %v6146_v22 }
 0x41e   : > { %v1389_v52 = vpop.xlane.xlu1 %1388  ;;  %v1395_v59 = vpop.xlane.xlu0 %1394 }
 0x41f   : > { %8022 = vst [vmem:[#allocation48_spill] sm:$0xff] %v6183_v17  ;;  %v1454_v29 = vmul.f32 1.442695, %v6183_v17  ;;  %v1420_v19 = vsub.f32 %v7970_v27, %v1389_v52  ;;  %v1423_v23 = vsub.f32 %v7971_v18, %v1395_v59  ;;  %v8024_v27 = vld [vmem:[#allocation91_spill] sm:$0xff]  ;;  %v849_v18 = vmul.f32 0.6931472, %v4284_v6  ;;  %v4294_v52 = vpop.eup %4293 }
 0x420   : > { %v893_v59 = vadd.f32 %v892_v61, %v891_v33  ;;  %v4296_v6 = vpop.eup %4295 }
 0x421   : > { %4305 = vpow2.f32 %v1454_v29  ;;  %v6195_v3 = vmul.f32 0.17677669, %v1420_v19  ;;  %v6197_v35 = vmul.f32 0.17677669, %v1423_v23  ;;  %v876_v29 = vadd.f32 %v849_v18, %v828_v48  ;;  %v4298_v24 = vpop.eup %4297 }
 0x422   : > { %4307 = vrcp.f32 %v8024_v27  ;;  %v1393_v62 = vpop.xlane.xlu1 %1392  ;;  %v1399_v38 = vpop.xlane.xlu0 %1398  ;;  %v773_v19 = vmul.f32 %v4290_v28, %v6138_v51  ;;  %v829_v51 = vsub.f32 %v771_v49, %v803_v10  ;;  %v851_v61 = vmul.f32 0.6931472, %v4296_v6 }
 0x423   : > { %8023 = vst [vmem:[#allocation50_spill] sm:$0xff] %v6197_v35  ;;  %v1452_v63 = vmul.f32 1.442695, %v6195_v3  ;;  %v1422_v53 = vsub.f32 %v7972_v60, %v1393_v62  ;;  %4309 = vlog2.f32 %v6010_v31  ;;  %v1458_v7 = vmul.f32 1.442695, %v6197_v35  ;;  %v4300_v25 = vpop.eup %4299 }
 0x424   : > { %v1425_v50 = vsub.f32 %v7973_v21, %v1399_v38  ;;  %v807_v60 = vmul.f32 0.6931472, %v4286_v16  ;;  %v894_v31 = vsel %vm888_vm1, %v875_v12, 0.0  ;;  %v4302_v48 = vpop.eup %4301  ;;  %v896_v18 = vsel %vm888_vm1, %v876_v29, 0.0 }
 0x425   : > { %4311 = vpow2.f32 %v1452_v63  ;;  %v6206_v39 = vmul.f32 0.17677669, %v1422_v53  ;;  %v895_v28 = vadd.f32 %v894_v31, %v893_v59  ;;  %v830_v21 = vsub.f32 %v773_v19, %v805_v55  ;;  %v4304_v62 = vpop.eup %4303  ;;  %v8032_v31 = vld [vmem:[#allocation92_spill] sm:$0xff] }
 0x426   : > { %4313 = vlog2.f32 %v8024_v27  ;;  %v1397_v23 = vpop.xlane.xlu1 %1396  ;;  %v6215_v33 = vmul.f32 0.17677669, %v1425_v50  ;;  %v853_v38 = vmul.f32 0.6931472, %v4300_v25  ;;  %v1403_v10 = vpop.xlane.xlu0 %1402  ;;  %v855_v22 = vmul.f32 0.6931472, %v4302_v48 }
 0x427   : > { %8025 = vst [vmem:[#allocation52_spill] sm:$0xff] %v6206_v39  ;;  %4315 = vlog2.f32 %v5986_v15  ;;  %v1456_v27 = vmul.f32 1.442695, %v6206_v39  ;;  %v1424_v16 = vsub.f32 %v7974_v54, %v1397_v23  ;;  %v8027_v15 = vld [vmem:[#allocation73_spill] sm:$0xff]  ;;  %v877_v43 = vadd.f32 %v851_v61, %v829_v51 }
 0x428   : > { %4317 = vpow2.f32 %v1458_v7  ;;  %8026 = vst [vmem:[#allocation56_spill] sm:$0xff] %v6215_v33  ;;  %v831_v12 = vsub.f32 %v775_v30, %v807_v60  ;;  %v897_v63 = vadd.f32 %v896_v18, %v895_v28  ;;  %v878_v53 = vadd.f32 %v853_v38, %v830_v21  ;;  %v8030_v7 = vld [vmem:[#allocation76_spill] sm:$0xff] }
 0x429   : > { %4319 = vrcp.f32 %v8027_v15  ;;  %v777_v59 = vmul.f32 %v4298_v24, %v6144_v57  ;;  %v1462_v54 = vmul.f32 1.442695, %v6215_v33  ;;  %v6226_v29 = vmul.f32 0.17677669, %v1424_v16 }
 0x42a   : > { %4321 = vlog2.f32 %v8027_v15  ;;  %v1427_v19 = vsub.f32 %v7975_v32, %v1403_v10  ;;  %v809_v50 = vmul.f32 0.6931472, %v4304_v62  ;;  %v811_v55 = vmul.f32 0.6931472, %v4294_v52  ;;  %v1401_v60 = vpop.xlane.xlu1 %1400  ;;  %v8033_v52 = vld [vmem:[#allocation49_spill] sm:$0xff] }
 0x42b   : > { %v6219_v36 = vpop.eup %4305  ;;  %4323 = vlog2.f32 %v6019_v0  ;;  %8029 = vst [vmem:[#allocation15_spill] sm:$0xff] %v6226_v29  ;;  %v898_v57 = vsel %vm888_vm1, %v877_v43, 0.0  ;;  %v879_v24 = vadd.f32 %v855_v22, %v831_v12  ;;  %v779_v23 = vmul.f32 %v6192_v5, %v6154_v45  ;;  %v1407_v5 = vpop.xlane.xlu0 %1406  ;;  %v8036_v22 = vld [vmem:[#allocation25_spill] sm:$0xff] }
 0x42c   : > { %8028 = vst [vmem:[#allocation16_spill] sm:$0xff] %v6219_v36  ;;  %v4308_v49 = vpop.eup %4307  ;;  %1486 = vadd.xlane.f32.xlu0 %v6219_v36  ;;  %4325 = vpow2.f32 %v1456_v27  ;;  %v899_v32 = vadd.f32 %v898_v57, %v897_v63  ;;  %v900_v51 = vsel %vm888_vm1, %v878_v53, 0.0  ;;  %v832_v30 = vsub.f32 %v777_v59, %v809_v50  ;;  %v6257_v53 = vld [vmem:[%s5405_s20 + $0xd8] sm:$0xff] }
 0x42d   : > { %v4310_v6 = vpop.eup %4309  ;;  %4327 = vrcp.f32 %v8030_v7  ;;  %v6241_v61 = vmul.f32 0.17677669, %v1427_v19  ;;  %v1426_v28 = vsub.f32 %v7976_v2, %v1401_v60  ;;  %v902_v21 = vsel %vm888_vm1, %v879_v24, 0.0 }
 0x42e   : > { %4329 = vlog2.f32 %v5994_v46  ;;  %v1460_v46 = vmul.f32 1.442695, %v6226_v29  ;;  %v857_v45 = vmul.f32 0.6931472, %v4310_v6  ;;  %v833_v27 = vsub.f32 %v779_v23, %v811_v55  ;;  %v8039_v55 = vld [vmem:[#allocation93_spill] sm:$0xff] }
 0x42f   : > { %v6230_v0 = vpop.eup %4311  ;;  %4331 = vrcp.f32 %v8032_v31  ;;  %8034 = vst [vmem:[#allocation60_spill] sm:$0xff] %v6241_v61  ;;  %v901_v15 = vadd.f32 %v900_v51, %v899_v32  ;;  %v781_v10 = vmul.f32 %v4308_v49, %v6152_v47  ;;  %v1466_v43 = vmul.f32 1.442695, %v6241_v61  ;;  %v1405_v47 = vpop.xlane.xlu1 %1404  ;;  %v8042_v51 = vld [vmem:[#allocation77_spill] sm:$0xff] }
 0x430   : > { %8031 = vst [vmem:[#allocation32_spill] sm:$0xff] %v6230_v0  ;;  %v4314_v25 = vpop.eup %4313  ;;  %1484 = vadd.xlane.f32.xlu1 %v6230_v0  ;;  %3140 = vmax.xlane.f32.xlu0 %v8033_v52  ;;  %4333 = vpow2.f32 %v1462_v54  ;;  %v880_v38 = vadd.f32 %v857_v45, %v832_v30  ;;  %v6253_v12 = vmul.f32 0.17677669, %v1426_v28  ;;  %v1429_v63 = vsub.f32 %v7977_v40, %v1407_v5  ;;  %v8043_v5 = vld [vmem:[#allocation47_spill] sm:$0xff] }
 0x431   : > { %v4316_v48 = vpop.eup %4315  ;;  %4335 = vlog2.f32 %v8032_v31  ;;  %v903_v54 = vadd.f32 %v902_v21, %v901_v15  ;;  %v813_v19 = vmul.f32 0.6931472, %v4314_v25 }
 0x432   : > { %v6245_v18 = vpop.eup %4317  ;;  %4337 = vlog2.f32 %v8030_v7  ;;  %v859_v62 = vmul.f32 0.6931472, %v4316_v48  ;;  %8037 = vst [vmem:[#allocation85_spill] sm:$0xff] %v6253_v12  ;;  %v904_v40 = vsel %vm888_vm1, %v880_v38, 0.0  ;;  %v1464_v24 = vmul.f32 1.442695, %v6253_v12 }
 0x433   : > { %8035 = vst [vmem:[#allocation82_spill] sm:$0xff] %v6245_v18  ;;  %v4320_v16 = vpop.eup %4319  ;;  %4339 = vpow2.f32 %v1460_v46  ;;  %v834_v60 = vsub.f32 %v781_v10, %v813_v19  ;;  %v6269_v23 = vmul.f32 0.17677669, %v1429_v63  ;;  %v905_v31 = vadd.f32 %v904_v40, %v903_v54  ;;  %v1409_v15 = vpop.xlane.xlu1 %1408  ;;  %v8046_v54 = vld [vmem:[#allocation28_spill] sm:$0xff] }
 0x434   : > { %1538 = vmax.xlane.f32.xlu1 %v8036_v22  ;;  %1490 = vadd.xlane.f32.xlu0 %v6245_v18  ;;  %v4322_v2 = vpop.eup %4321  ;;  %4341 = vlog2.f32 %v6027_v42  ;;  %v881_v6 = vadd.f32 %v859_v62, %v833_v27  ;;  %v783_v7 = vmul.f32 %v4320_v16, %v6160_v4  ;;  %v6439_v18 = vld [vmem:[%s5391_s29 + $0xb8] sm:$0xff] }
 0x435   : > { %v4324_v59 = vpop.eup %4323  ;;  %4343 = vlog2.f32 %v6006_v56  ;;  %v815_v57 = vmul.f32 0.6931472, %v4322_v2  ;;  %8040 = vst [vmem:[#allocation64_spill] sm:$0xff] %v6269_v23  ;;  %v1428_v56 = vsub.f32 %v7978_v13, %v1405_v47  ;;  %v1470_v27 = vmul.f32 1.442695, %v6269_v23  ;;  %v6379_v23 = vld [vmem:[%s5391_s29 + $0xa0] sm:$0xff] }
 0x436   : > { %v6260_v49 = vpop.eup %4325  ;;  %4345 = vrcp.f32 %v8039_v55  ;;  %v861_v25 = vmul.f32 0.6931472, %v4324_v59  ;;  %v906_v30 = vsel %vm888_vm1, %v881_v6, 0.0  ;;  %v1430_v6 = vsub.f32 %v7980_v8, %v1409_v15 }
 0x437   : > { %8038 = vst [vmem:[#allocation61_spill] sm:$0xff] %v6260_v49  ;;  %v4328_v50 = vpop.eup %4327  ;;  %4347 = vpow2.f32 %v1466_v43  ;;  %v835_v48 = vsub.f32 %v783_v7, %v815_v57  ;;  %v6282_v16 = vmul.f32 0.17677669, %v1428_v56  ;;  %v907_v62 = vadd.f32 %v906_v30, %v905_v31  ;;  %v6295_v7 = vld [vmem:[%s5405_s20 + $0xe0] sm:$0xff] }
 0x438   : > { %1488 = vadd.xlane.f32.xlu1 %v6260_v49  ;;  %2130 = vmax.xlane.f32.xlu0 %v6257_v53  ;;  %v4330_v42 = vpop.eup %4329  ;;  %4349 = vlog2.f32 %v8039_v55  ;;  %v882_v45 = vadd.f32 %v861_v25, %v834_v60  ;;  %v787_v43 = vmul.f32 %v4328_v50, %v6168_v37 }
 0x439   : > { %v4332_v4 = vpop.eup %4331  ;;  %4351 = vrcp.f32 %v8042_v51  ;;  %v863_v28 = vmul.f32 0.6931472, %v4330_v42  ;;  %8044 = vst [vmem:[#allocation67_spill] sm:$0xff] %v6282_v16  ;;  %v1468_v47 = vmul.f32 1.442695, %v6282_v16 }
 0x43a   : > { %v6273_v32 = vpop.eup %4333  ;;  %4353 = vlog2.f32 %v8042_v51  ;;  %v785_v21 = vmul.f32 %v4332_v4, %v6162_v44  ;;  %v908_v44 = vsel %vm888_vm1, %v882_v45, 0.0  ;;  %v6303_v4 = vmul.f32 0.17677669, %v1430_v6  ;;  %v6308_v45 = vpop.xlane.xlu0 %1410 }
 0x43b   : > { %8041 = vst [vmem:[#allocation88_spill] sm:$0xff] %v6273_v32  ;;  %v4336_v46 = vpop.eup %4335  ;;  %4355 = vpow2.f32 %v1464_v24  ;;  %v883_v10 = vadd.f32 %v863_v28, %v835_v48  ;;  %v909_v50 = vadd.f32 %v908_v44, %v907_v62  ;;  %8050 = vst [vmem:[#allocation73_spill] sm:$0xff] %v6308_v45  ;;  %v8053_v44 = vld [vmem:[#allocation27_spill] sm:$0xff] }
 0x43c   : > { %3142 = vmax.xlane.f32.xlu1 %v8043_v5  ;;  %1494 = vadd.xlane.f32.xlu0 %v6273_v32  ;;  %v4338_v13 = vpop.eup %4337  ;;  %4357 = vlog2.f32 %v6034_v58  ;;  %v817_v2 = vmul.f32 0.6931472, %v4336_v46  ;;  %8048 = vst [vmem:[#allocation90_spill] sm:$0xff] %v6303_v4  ;;  %v1472_v62 = vmul.f32 1.442695, %v6303_v4 }
 0x43d   : > { %v6285_v38 = vpop.eup %4339  ;;  %4359 = vlog2.f32 %v6017_v41  ;;  %v819_v59 = vmul.f32 0.6931472, %v4338_v13  ;;  %v910_v40 = vsel %vm888_vm1, %v883_v10, 0.0  ;;  %v8051_v13 = vld [vmem:[#allocation53_spill] sm:$0xff] }
 0x43e   : > { %8045 = vst [vmem:[#allocation70_spill] sm:$0xff] %v6285_v38  ;;  %v4342_v63 = vpop.eup %4341  ;;  %v836_v19 = vsub.f32 %v785_v21, %v817_v2  ;;  %4361 = vpow2.f32 %v1470_v27  ;;  %v911_v31 = vadd.f32 %v910_v40, %v909_v50  ;;  %v6329_v40 = vpop.xlane.xlu1 %1412 }
 0x43f   : > { %v4344_v58 = vpop.eup %4343  ;;  %v865_v41 = vmul.f32 0.6931472, %v4342_v63  ;;  %v837_v60 = vsub.f32 %v787_v43, %v819_v59  ;;  %4363 = vpow2.f32 %v1468_v47  ;;  %v6322_v47 = vpop.xlane.xlu0 %1414  ;;  %8056 = vst [vmem:[#allocation25_spill] sm:$0xff] %v6329_v40 }
 0x440   : > { %1492 = vadd.xlane.f32.xlu1 %v6285_v38  ;;  %1540 = vmax.xlane.f32.xlu0 %v8046_v54  ;;  %v4346_v37 = vpop.eup %4345  ;;  %v867_v42 = vmul.f32 0.6931472, %v4344_v58  ;;  %4365 = vpow2.f32 %v1472_v62  ;;  %8054 = vst [vmem:[#allocation92_spill] sm:$0xff] %v6322_v47  ;;  %v8083_v38 = vld [vmem:[#allocation19_spill] sm:$0xff] }
 0x441   : > { %v6297_v55 = vpop.eup %4347  ;;  %v884_v56 = vadd.f32 %v865_v41, %v836_v19  ;;  %v789_v8 = vmul.f32 %v4346_v37, %v6170_v9  ;;  %v6320_v19 = vld [vmem:[%s5405_s20 + $0xe8] sm:$0xff] }
 0x442   : > { %8047 = vst [vmem:[#allocation89_spill] sm:$0xff] %v6297_v55  ;;  %v4350_v57 = vpop.eup %4349  ;;  %v885_v30 = vadd.f32 %v867_v42, %v837_v60 }
 0x443   : > { %v4352_v24 = vpop.eup %4351  ;;  %v821_v48 = vmul.f32 0.6931472, %v4350_v57  ;;  %v912_v9 = vsel %vm888_vm1, %v884_v56, 0.0  ;;  %v6332_v42 = vpop.xlane.xlu0 %1418  ;;  %v8059_v56 = vld [vmem:[#allocation30_spill] sm:$0xff] }
 0x444   : > { %2132 = vmax.xlane.f32.xlu1 %v6295_v7  ;;  %1498 = vadd.xlane.f32.xlu0 %v6297_v55  ;;  %v4354_v25 = vpop.eup %4353  ;;  %v791_v46 = vmul.f32 %v4352_v24, %v6176_v11  ;;  %v913_v10 = vadd.f32 %v912_v9, %v911_v31  ;;  %v914_v11 = vsel %vm888_vm1, %v885_v30, 0.0  ;;  %8057 = vst [vmem:[#allocation93_spill] sm:$0xff] %v6332_v42  ;;  %v8058_v24 = vld [vmem:[#allocation51_spill] sm:$0xff]  ;;  %v6338_v31 = vpop.xlane.xlu1 %1416 }
 0x445   : > { %v6305_v51 = vpop.eup %4355  ;;  %v838_v21 = vsub.f32 %v789_v8, %v821_v48  ;;  %v823_v27 = vmul.f32 0.6931472, %v4354_v25  ;;  %8061 = vst [vmem:[#allocation47_spill] sm:$0xff] %v6338_v31  ;;  %v6342_v30 = vld [vmem:[%s5405_s20 + $0xf0] sm:$0xff]  ;;  %v6405_v31 = vld [vmem:[%s5391_s29 + $0xa8] sm:$0xff] }
 0x446   : > { %8049 = vst [vmem:[#allocation91_spill] sm:$0xff] %v6305_v51  ;;  %v4358_v28 = vpop.eup %4357  ;;  %v915_v6 = vadd.f32 %v914_v11, %v913_v10  ;;  %v8064_v11 = vld [vmem:[#allocation55_spill] sm:$0xff] }
 0x447   : > { %v4360_v15 = vpop.eup %4359  ;;  %v869_v43 = vmul.f32 0.6931472, %v4358_v28  ;;  %v839_v63 = vsub.f32 %v791_v46, %v823_v27  ;;  %v1517_v48 = vpop.xlane.xlu0 %1516  ;;  %v8062_v46 = vld [vmem:[#allocation57_spill] sm:$0xff]  ;;  %v6347_v28 = vld [vmem:[%s5405_s20 + $0xf8] sm:$0xff] }
 0x448   : > { %1496 = vadd.xlane.f32.xlu1 %v6305_v51  ;;  %3144 = vmax.xlane.f32.xlu0 %v8051_v13  ;;  %v6314_v2 = vpop.eup %4361  ;;  %v871_v59 = vmul.f32 0.6931472, %v4360_v15  ;;  %v1519_v9 = vpop.xlane.xlu1 %1518  ;;  %v8063_v27 = vld [vmem:[#allocation29_spill] sm:$0xff]  ;;  %v1548_v62 = vsub.f32 %v7985_v26, %v1517_v48  ;;  %v8065_v26 = vld [vmem:[#allocation66_spill] sm:$0xff] }
 0x449   : > { %8052 = vst [vmem:[#allocation76_spill] sm:$0xff] %v6314_v2  ;;  %v886_v58 = vadd.f32 %v869_v43, %v838_v21  ;;  %v6324_v37 = vpop.eup %4363  ;;  %v6353_v15 = vld [vmem:[%s5391_s29 + $0x80] sm:$0xff] }
 0x44a   : > { %8055 = vst [vmem:[#allocation49_spill] sm:$0xff] %v6324_v37  ;;  %v887_v50 = vadd.f32 %v871_v59, %v839_v63  ;;  %v6336_v25 = vpop.eup %4365  ;;  %v1564_v63 = vmul.f32 0.17677669, %v1548_v62  ;;  %v1549_v59 = vsub.f32 %v7986_v34, %v1519_v9  ;;  %v8066_v62 = vld [vmem:[#allocation65_spill] sm:$0xff] }
 0x44b   : > { %v916_v41 = vsel %vm888_vm1, %v886_v58, 0.0  ;;  %8060 = vst [vmem:[#allocation77_spill] sm:$0xff] %v6336_v25  ;;  %v2109_v21 = vpop.xlane.xlu0 %2108  ;;  %v6360_v58 = vld [vmem:[%s5391_s29 + $0x88] sm:$0xff] }
 0x44c   : > { %1542 = vmax.xlane.f32.xlu1 %v8053_v44  ;;  %1502 = vadd.xlane.f32.xlu0 %v6314_v2  ;;  %v917_v60 = vadd.f32 %v916_v41, %v915_v6  ;;  %v918_v57 = vsel %vm888_vm1, %v887_v50, 0.0  ;;  %v2140_v10 = vsub.f32 %v6077_v20, %v2109_v21  ;;  %v2111_v43 = vpop.xlane.xlu1 %2110  ;;  %v1580_v20 = vmul.f32 1.442695, %v1564_v63  ;;  %v6373_v63 = vld [vmem:[%s5391_s29 + $0x98] sm:$0xff] }
 0x44d   : > { %v2141_v41 = vsub.f32 %v6082_v1, %v2111_v43  ;;  %v8067_v43 = vld [vmem:[#allocation31_spill] sm:$0xff] }
 0x44e   : > { %v919_v8 = vadd.f32 %v918_v57, %v917_v60  ;;  %v2156_v50 = vmul.f32 0.5, %v2140_v10  ;;  %v1565_v60 = vmul.f32 0.17677669, %v1549_v59  ;;  %4367 = vpow2.f32 %v1580_v20  ;;  %v8068_v59 = vld [vmem:[#allocation69_spill] sm:$0xff] }
 0x44f   : > { %v3121_v6 = vpop.xlane.xlu0 %3120  ;;  %v2157_v34 = vmul.f32 0.5, %v2141_v41  ;;  %v8069_v41 = vld [vmem:[#allocation18_spill] sm:$0xff] }
 0x450   : > { %1500 = vadd.xlane.f32.xlu1 %v6324_v37  ;;  %2134 = vmax.xlane.f32.xlu0 %v6320_v19  ;;  %v3152_v57 = vsub.f32 %v7987_v14, %v3121_v6  ;;  %v3123_v48 = vpop.xlane.xlu1 %3122  ;;  %v2172_v21 = vmul.f32 1.442695, %v2156_v50  ;;  %v1582_v1 = vmul.f32 1.442695, %v1565_v60  ;;  %v8070_v60 = vld [vmem:[#allocation35_spill] sm:$0xff] }
 0x451   : > { %v2174_v14 = vmul.f32 1.442695, %v2157_v34 }
 0x452   : > { %v3168_v10 = vmul.f32 0.17677669, %v3152_v57  ;;  %4369 = vpow2.f32 %v2172_v21 }
 0x453   : > { %v1521_v9 = vpop.xlane.xlu0 %1520  ;;  %4371 = vpow2.f32 %v1582_v1 }
 0x454   : > { %3146 = vmax.xlane.f32.xlu1 %v8058_v24  ;;  %1544 = vmax.xlane.f32.xlu0 %v8059_v56  ;;  %v3184_v6 = vmul.f32 1.442695, %v3168_v10  ;;  %v1550_v4 = vsub.f32 %v8069_v41, %v1521_v9  ;;  %v2113_v2 = vpop.xlane.xlu1 %2112  ;;  %4373 = vpow2.f32 %v2174_v14  ;;  %v8073_v41 = vld [vmem:[#allocation72_spill] sm:$0xff] }
 0x455   : > { %v2142_v57 = vsub.f32 %v8070_v60, %v2113_v2 }
 0x456   : > { %4375 = vpow2.f32 %v3184_v6  ;;  %v1566_v34 = vmul.f32 0.17677669, %v1550_v4  ;;  %v8074_v4 = vld [vmem:[#allocation38_spill] sm:$0xff] }
 0x457   : > { %v3125_v20 = vpop.xlane.xlu0 %3124 }
 0x458   : > { %1504 = vadd.xlane.f32.xlu1 %v6336_v25  ;;  %920 = vadd.xlane.f32.xlu0 %v919_v8  ;;  %v6367_v8 = vld [vmem:[%s5391_s29 + $0x90] sm:$0xff]  ;;  %v3153_v25 = vsub.f32 %v8067_v43, %v3123_v48  ;;  %v8071_v48 = vld [vmem:[#allocation68_spill] sm:$0xff]  ;;  %v8072_v43 = vld [vmem:[#allocation34_spill] sm:$0xff]  ;;  %v6385_v10 = vpop.eup %4367  ;;  %v1523_v9 = vpop.xlane.xlu1 %1522  ;;  %v1584_v2 = vmul.f32 1.442695, %v1566_v34 }
 0x459   : > { %v3154_v1 = vsub.f32 %v8072_v43, %v3125_v20  ;;  %v8075_v43 = vld [vmem:[#allocation17_spill] sm:$0xff] }
 0x45a   : > { %v3169_v50 = vmul.f32 0.17677669, %v3153_v25  ;;  %v2158_v25 = vmul.f32 0.5, %v2142_v57  ;;  %v1551_v42 = vsub.f32 %v8075_v43, %v1523_v9  ;;  %v8077_v43 = vld [vmem:[#allocation20_spill] sm:$0xff] }
 0x45b   : > { %v3170_v60 = vmul.f32 0.17677669, %v3154_v1  ;;  %v2115_v37 = vpop.xlane.xlu0 %2114 }
 0x45c   : > { %2136 = vmax.xlane.f32.xlu1 %v6342_v30  ;;  %3148 = vmax.xlane.f32.xlu0 %v8062_v46  ;;  %v3186_v21 = vmul.f32 1.442695, %v3169_v50  ;;  %v6389_v14 = vpop.eup %4369  ;;  %v2176_v6 = vmul.f32 1.442695, %v2158_v25  ;;  %v2143_v50 = vsub.f32 %v8074_v4, %v2115_v37  ;;  %v1567_v37 = vmul.f32 0.17677669, %v1551_v42 }
 0x45d   : > { %v6391_v16 = vpop.eup %4371  ;;  %v3188_v57 = vmul.f32 1.442695, %v3170_v60  ;;  %v8076_v25 = vld [vmem:[#allocation33_spill] sm:$0xff]  ;;  %v8078_v42 = vld [vmem:[#allocation40_spill] sm:$0xff] }
 0x45e   : > { %4377 = vpow2.f32 %v3186_v21  ;;  %v6396_v20 = vpop.eup %4373  ;;  %v3127_v21 = vpop.xlane.xlu1 %3126  ;;  %v2159_v1 = vmul.f32 0.5, %v2143_v50 }
 0x45f   : > { %4379 = vpow2.f32 %v1584_v2  ;;  %v1525_v55 = vpop.xlane.xlu0 %1524  ;;  %v3155_v4 = vsub.f32 %v8076_v25, %v3127_v21  ;;  %v8079_v21 = vld [vmem:[#allocation71_spill] sm:$0xff] }
 0x460   : > { %1546 = vmax.xlane.f32.xlu1 %v8063_v27  ;;  %2138 = vmax.xlane.f32.xlu0 %v6347_v28  ;;  %v6399_v34 = vpop.eup %4375  ;;  %4381 = vpow2.f32 %v2176_v6  ;;  %v2178_v60 = vmul.f32 1.442695, %v2159_v1  ;;  %v1586_v6 = vmul.f32 1.442695, %v1567_v37  ;;  %v1552_v61 = vsub.f32 %v8077_v43, %v1525_v55  ;;  %v8080_v37 = vld [vmem:[#allocation37_spill] sm:$0xff] }
 0x461   : > { %4383 = vpow2.f32 %v3188_v57  ;;  %v3171_v50 = vmul.f32 0.17677669, %v3155_v4 }
 0x462   : > { %v2117_v9 = vpop.xlane.xlu1 %2116  ;;  %4385 = vpow2.f32 %v2178_v60  ;;  %v1568_v12 = vmul.f32 0.17677669, %v1552_v61 }
 0x463   : > { %v3129_v51 = vpop.xlane.xlu0 %3128  ;;  %v2144_v57 = vsub.f32 %v8078_v42, %v2117_v9  ;;  %4387 = vpow2.f32 %v1586_v6  ;;  %v3190_v25 = vmul.f32 1.442695, %v3171_v50  ;;  %v6425_v42 = vld [vmem:[%s5391_s29 + $0xb0] sm:$0xff]  ;;  %v8081_v6 = vld [vmem:[#allocation42_spill] sm:$0xff] }
 0x464   : > { %3150 = vmax.xlane.f32.xlu1 %v8064_v11  ;;  %1980 = vmax.xlane.f32.xlu0 %v6353_v15  ;;  %v3156_v4 = vsub.f32 %v8080_v37, %v3129_v51  ;;  %v1588_v60 = vmul.f32 1.442695, %v1568_v12  ;;  %v8082_v51 = vld [vmem:[#allocation75_spill] sm:$0xff] }
 0x465   : > { %v2160_v43 = vmul.f32 0.5, %v2144_v57  ;;  %4389 = vpow2.f32 %v3190_v25 }
 0x466   : > { %v1527_v32 = vpop.xlane.xlu1 %1526  ;;  %v3172_v9 = vmul.f32 0.17677669, %v3156_v4  ;;  %4391 = vpow2.f32 %v1588_v60 }
 0x467   : > { %v2119_v40 = vpop.xlane.xlu0 %2118  ;;  %v2180_v33 = vmul.f32 1.442695, %v2160_v43  ;;  %v1553_v29 = vsub.f32 %v8083_v38, %v1527_v32  ;;  %v8085_v43 = vld [vmem:[#allocation36_spill] sm:$0xff] }
 0x468   : > { %1982 = vmax.xlane.f32.xlu1 %v6360_v58  ;;  %2992 = vmax.xlane.f32.xlu0 %v8065_v26  ;;  %v6407_v2 = vpop.eup %4377  ;;  %v2145_v50 = vsub.f32 %v8081_v6, %v2119_v40  ;;  %v3192_v37 = vmul.f32 1.442695, %v3172_v9 }
 0x469   : > { %v6412_v47 = vpop.eup %4379  ;;  %4393 = vpow2.f32 %v2180_v33  ;;  %v1569_v40 = vmul.f32 0.17677669, %v1553_v29  ;;  %v8088_v29 = vld [vmem:[#allocation44_spill] sm:$0xff] }
 0x46a   : > { %v6417_v1 = vpop.eup %4381  ;;  %v3131_v61 = vpop.xlane.xlu1 %3130  ;;  %v2161_v4 = vmul.f32 0.5, %v2145_v50  ;;  %4395 = vpow2.f32 %v3192_v37  ;;  %v8086_v50 = vld [vmem:[#allocation22_spill] sm:$0xff] }
 0x46b   : > { %v6420_v55 = vpop.eup %4383  ;;  %v1529_v25 = vpop.xlane.xlu0 %1528  ;;  %v3157_v6 = vsub.f32 %v8085_v43, %v3131_v61  ;;  %v1590_v33 = vmul.f32 1.442695, %v1569_v40  ;;  %v8089_v43 = vld [vmem:[#allocation74_spill] sm:$0xff]  ;;  %v8091_v40 = vld [vmem:[#allocation41_spill] sm:$0xff] }
 0x46c   : > { %2994 = vmax.xlane.f32.xlu1 %v8066_v62  ;;  %1984 = vmax.xlane.f32.xlu0 %v6367_v8  ;;  %v6430_v57 = vpop.eup %4385  ;;  %v2182_v9 = vmul.f32 1.442695, %v2161_v4  ;;  %v1554_v35 = vsub.f32 %v8086_v50, %v1529_v25 }
 0x46d   : > { %v6433_v12 = vpop.eup %4387  ;;  %v3173_v38 = vmul.f32 0.17677669, %v3157_v6 }
 0x46e   : > { %8084 = vst [vmem:[#allocation28_spill] sm:$0xff] %v6433_v12  ;;  %v2121_v45 = vpop.xlane.xlu1 %2120  ;;  %4397 = vpow2.f32 %v2182_v9  ;;  %v1570_v36 = vmul.f32 0.17677669, %v1554_v35 }
 0x46f   : > { %v6441_v60 = vpop.eup %4389  ;;  %v3133_v32 = vpop.xlane.xlu0 %3132  ;;  %v2146_v61 = vsub.f32 %v8088_v29, %v2121_v45  ;;  %4399 = vpow2.f32 %v1590_v33  ;;  %v3194_v39 = vmul.f32 1.442695, %v3173_v38  ;;  %v8094_v33 = vld [vmem:[#allocation46_spill] sm:$0xff] }
 0x470   : > { %2996 = vmax.xlane.f32.xlu1 %v8068_v59  ;;  %1986 = vmax.xlane.f32.xlu0 %v6373_v63  ;;  %v6446_v49 = vpop.eup %4391  ;;  %v3158_v6 = vsub.f32 %v8091_v40, %v3133_v32  ;;  %v1592_v45 = vmul.f32 1.442695, %v1570_v36  ;;  %v8095_v32 = vld [vmem:[#allocation79_spill] sm:$0xff] }
 0x471   : > { %8087 = vst [vmem:[#allocation53_spill] sm:$0xff] %v6446_v49  ;;  %v2162_v50 = vmul.f32 0.5, %v2146_v61  ;;  %4401 = vpow2.f32 %v3194_v39 }
 0x472   : > { %v1531_v37 = vpop.xlane.xlu1 %1530  ;;  %v3174_v9 = vmul.f32 0.17677669, %v3158_v6  ;;  %4403 = vpow2.f32 %v1592_v45 }
 0x473   : > { %v6451_v4 = vpop.eup %4393  ;;  %v2184_v0 = vmul.f32 1.442695, %v2162_v50  ;;  %v8099_v50 = vld [vmem:[#allocation39_spill] sm:$0xff] }
 0x474   : > { %2998 = vmax.xlane.f32.xlu1 %v8071_v48  ;;  %1988 = vmax.xlane.f32.xlu0 %v6379_v23  ;;  %8090 = vst [vmem:[#allocation27_spill] sm:$0xff] %v6451_v4  ;;  %v6454_v25 = vpop.eup %4395  ;;  %v3196_v40 = vmul.f32 1.442695, %v3174_v9  ;;  %v8102_v9 = vld [vmem:[#allocation24_spill] sm:$0xff] }
 0x475   : > { %8092 = vst [vmem:[#allocation51_spill] sm:$0xff] %v6454_v25  ;;  %4405 = vpow2.f32 %v2184_v0 }
 0x476   : > { %v3135_v29 = vpop.xlane.xlu1 %3134  ;;  %4407 = vpow2.f32 %v3196_v40 }
 0x478   : > { %3000 = vmax.xlane.f32.xlu1 %v8073_v41  ;;  %1612 = vadd.xlane.f32.xlu0 %v6385_v10  ;;  %v6464_v61 = vpop.eup %4397 }
 0x479   : > { %8096 = vst [vmem:[#allocation57_spill] sm:$0xff] %v6464_v61  ;;  %v6467_v36 = vpop.eup %4399 }
 0x47a   : > { %8098 = vst [vmem:[#allocation29_spill] sm:$0xff] %v6467_v36 }
 0x47b   : > { %v6475_v45 = vpop.eup %4401 }
 0x47c   : > { %1614 = vadd.xlane.f32.xlu1 %v6391_v16  ;;  %2204 = vadd.xlane.f32.xlu0 %v6389_v14  ;;  %8101 = vst [vmem:[#allocation66_spill] sm:$0xff] %v6475_v45  ;;  %v6480_v40 = vpop.eup %4403 }
 0x47d   : > { %8103 = vst [vmem:[#allocation65_spill] sm:$0xff] %v6480_v40 }
 0x480   : > { %2206 = vadd.xlane.f32.xlu1 %v6396_v20  ;;  %3216 = vadd.xlane.f32.xlu0 %v6399_v34 }
 0x484   : > { %3218 = vadd.xlane.f32.xlu1 %v6407_v2  ;;  %1990 = vmax.xlane.f32.xlu0 %v6405_v31 }
 0x488   : > { %3002 = vmax.xlane.f32.xlu1 %v8079_v21  ;;  %1616 = vadd.xlane.f32.xlu0 %v6412_v47 }
 0x48c   : > { %2208 = vadd.xlane.f32.xlu1 %v6417_v1  ;;  %3220 = vadd.xlane.f32.xlu0 %v6420_v55 }
 0x490   : > { %1992 = vmax.xlane.f32.xlu1 %v6425_v42  ;;  %3004 = vmax.xlane.f32.xlu0 %v8082_v51 }
 0x494   : > { %1618 = vadd.xlane.f32.xlu1 %v6433_v12  ;;  %2210 = vadd.xlane.f32.xlu0 %v6430_v57  ;;  %v2123_v12 = vpop.xlane.xlu0 %2122 }
 0x495   : > { %v2147_v38 = vsub.f32 %v8094_v33, %v2123_v12  ;;  %v3159_v33 = vsub.f32 %v8099_v50, %v3135_v29  ;;  %v4921_v29 = vld [vmem:[%s5405_s20 + $0xc0] sm:$0xff] }
 0x497   : > { %v2163_v6 = vmul.f32 0.5, %v2147_v38 }
 0x498   : > { %3222 = vadd.xlane.f32.xlu1 %v6441_v60  ;;  %1994 = vmax.xlane.f32.xlu0 %v6439_v18  ;;  %v1533_v35 = vpop.xlane.xlu0 %1532 }
 0x499   : > { %v1556_v38 = vsub.f32 %v8102_v9, %v1533_v35 }
 0x49c   : > { %3006 = vmax.xlane.f32.xlu1 %v8089_v43  ;;  %1620 = vadd.xlane.f32.xlu0 %v6446_v49  ;;  %v6459_v49 = vld [vmem:[%s5391_s29 + $0xc0] sm:$0xff] }
 0x49d   : > { %8093 = vst [vmem:[#allocation30_spill] sm:$0xff] %v6459_v49 }
 0x4a0   : > { %2212 = vadd.xlane.f32.xlu1 %v6451_v4  ;;  %3224 = vadd.xlane.f32.xlu0 %v6454_v25  ;;  %v8097_v25 = vld [vmem:[#allocation21_spill] sm:$0xff]  ;;  %v2125_v4 = vpop.xlane.xlu1 %2124 }
 0x4a1   : > { %v1555_v39 = vsub.f32 %v8097_v25, %v1531_v37  ;;  %v2186_v37 = vmul.f32 1.442695, %v2163_v6  ;;  %v3175_v25 = vmul.f32 0.17677669, %v3159_v33  ;;  %v2148_v50 = vsub.f32 %v4921_v29, %v2125_v4  ;;  %v6485_v6 = vpop.eup %4405  ;;  %v8106_v33 = vld [vmem:[#allocation45_spill] sm:$0xff] }
 0x4a2   : > { %8105 = vst [vmem:[#allocation31_spill] sm:$0xff] %v6485_v6  ;;  %v6488_v35 = vpop.eup %4407 }
 0x4a3   : > { %v1571_v12 = vmul.f32 0.17677669, %v1555_v39  ;;  %4409 = vpow2.f32 %v2186_v37  ;;  %8107 = vst [vmem:[#allocation69_spill] sm:$0xff] %v6488_v35  ;;  %v2164_v17 = vmul.f32 0.5, %v2148_v50 }
 0x4a4   : > { %1996 = vmax.xlane.f32.xlu1 %v6459_v49  ;;  %3008 = vmax.xlane.f32.xlu0 %v8095_v32  ;;  %v3137_v32 = vpop.xlane.xlu0 %3136  ;;  %v6473_v49 = vld [vmem:[%s5391_s29 + $0xc8] sm:$0xff] }
 0x4a5   : > { %8100 = vst [vmem:[#allocation55_spill] sm:$0xff] %v6473_v49  ;;  %v1594_v0 = vmul.f32 1.442695, %v1571_v12  ;;  %v1572_v12 = vmul.f32 0.17677669, %v1556_v38  ;;  %v8108_v38 = vld [vmem:[#allocation23_spill] sm:$0xff] }
 0x4a7   : > { %4411 = vpow2.f32 %v1594_v0  ;;  %v1596_v4 = vmul.f32 1.442695, %v1572_v12 }
 0x4a8   : > { %1622 = vadd.xlane.f32.xlu1 %v6467_v36  ;;  %2214 = vadd.xlane.f32.xlu0 %v6464_v61  ;;  %v1535_v36 = vpop.xlane.xlu1 %1534  ;;  %v2127_v39 = vpop.xlane.xlu0 %2126  ;;  %v8104_v61 = vld [vmem:[#allocation78_spill] sm:$0xff] }
 0x4ac   : > { %3226 = vadd.xlane.f32.xlu1 %v6475_v45  ;;  %1998 = vmax.xlane.f32.xlu0 %v6473_v49  ;;  %v3198_v45 = vmul.f32 1.442695, %v3175_v25  ;;  %v3160_v49 = vsub.f32 %v8106_v33, %v3137_v32  ;;  %v3139_v9 = vpop.xlane.xlu1 %3138  ;;  %v1537_v29 = vpop.xlane.xlu0 %1536  ;;  %v2188_v25 = vmul.f32 1.442695, %v2164_v17  ;;  %v8109_v32 = vld [vmem:[#allocation81_spill] sm:$0xff] }
 0x4ad   : > { %v6498_v50 = vpop.eup %4409 }
 0x4ae   : > { %4413 = vpow2.f32 %v3198_v45  ;;  %v3176_v37 = vmul.f32 0.17677669, %v3160_v49  ;;  %8110 = vst [vmem:[#allocation18_spill] sm:$0xff] %v6498_v50 }
 0x4af   : > { %4415 = vpow2.f32 %v1596_v4 }
 0x4b0   : > { %3010 = vmax.xlane.f32.xlu1 %v8104_v61  ;;  %1624 = vadd.xlane.f32.xlu0 %v6480_v40  ;;  %v6493_v40 = vld [vmem:[%s5391_s29 + $0xd0] sm:$0xff]  ;;  %v2129_v0 = vpop.xlane.xlu1 %2128  ;;  %v1557_v61 = vsub.f32 %v8108_v38, %v1535_v36  ;;  %v3200_v33 = vmul.f32 1.442695, %v3176_v37  ;;  %4417 = vpow2.f32 %v2188_v25  ;;  %v6511_v37 = vld [vmem:[%s5391_s29 + $0xd8] sm:$0xff] }
 0x4b1   : > { %v6503_v49 = vpop.eup %4411  ;;  %v8113_v36 = vld [vmem:[#allocation43_spill] sm:$0xff] }
 0x4b2   : > { %8112 = vst [vmem:[#allocation68_spill] sm:$0xff] %v6503_v49  ;;  %4419 = vpow2.f32 %v3200_v33  ;;  %v3161_v38 = vsub.f32 %v8113_v36, %v3139_v9  ;;  %v4923_v36 = vld [vmem:[%s5405_s20 + $0xd0] sm:$0xff] }
 0x4b4   : > { %2216 = vadd.xlane.f32.xlu1 %v6485_v6  ;;  %3228 = vadd.xlane.f32.xlu0 %v6488_v35  ;;  %v4922_v35 = vld [vmem:[%s5405_s20 + $0xc8] sm:$0xff]  ;;  %v1573_v6 = vmul.f32 0.17677669, %v1557_v61  ;;  %v3177_v25 = vmul.f32 0.17677669, %v3161_v38  ;;  %s3563_s20 = sshll.u32 %s336_s10, 4  ;;  %s7631_s20 = int_to_ptr.vmem [resolvable:$true] %s3563_s20 }
 0x4b5   : > { %v2149_v45 = vsub.f32 %v4922_v35, %v2127_v39 }
 0x4b6   : > { %v1598_v35 = vmul.f32 1.442695, %v1573_v6  ;;  %v3202_v6 = vmul.f32 1.442695, %v3177_v25 }
 0x4b7   : > { %v2165_v17 = vmul.f32 0.5, %v2149_v45 }
 0x4b8   : > { %2000 = vmax.xlane.f32.xlu1 %v6493_v40  ;;  %3012 = vmax.xlane.f32.xlu0 %v8109_v32  ;;  %v6513_v39 = vpop.eup %4413  ;;  %4421 = vpow2.f32 %v1598_v35 }
 0x4b9   : > { %v6501_v12 = vpop.xlane.xlu0 %1486  ;;  %8115 = vst [vmem:[#allocation72_spill] sm:$0xff] %v6513_v39  ;;  %v2190_v61 = vmul.f32 1.442695, %v2165_v17  ;;  %v6520_v9 = vpop.eup %4415 }
 0x4ba   : > { %8111 = vst [vmem:[#allocation35_spill] sm:$0xff] %v6501_v12  ;;  %v8116_v12 = vld [vmem:[#allocation26_spill] sm:$0xff]  ;;  %8118 = vst [vmem:[#allocation17_spill] sm:$0xff] %v6520_v9 }
 0x4bb   : > { %v1558_v33 = vsub.f32 %v8116_v12, %v1537_v29  ;;  %4423 = vpow2.f32 %v2190_v61  ;;  %v6528_v12 = vpop.eup %4417 }
 0x4bc   : > { %1626 = vadd.xlane.f32.xlu1 %v6503_v49  ;;  %2218 = vadd.xlane.f32.xlu0 %v6498_v50  ;;  %v8119_v50 = vld [vmem:[#allocation80_spill] sm:$0xff]  ;;  %4425 = vpow2.f32 %v3202_v6 }
 0x4bd   : > { %v6508_v32 = vpop.xlane.xlu1 %1484  ;;  %v3141_v4 = vpop.xlane.xlu0 %3140 }
 0x4be   : > { %8114 = vst [vmem:[#allocation34_spill] sm:$0xff] %v6508_v32  ;;  %v2150_v32 = vsub.f32 %v4923_v36, %v2129_v0  ;;  %v3162_v17 = vsub.f32 %v8033_v52, %v3141_v4 }
 0x4c0   : > { %3230 = vadd.xlane.f32.xlu1 %v6513_v39  ;;  %2002 = vmax.xlane.f32.xlu0 %v6511_v37  ;;  %v1574_v39 = vmul.f32 0.17677669, %v1558_v33  ;;  %v2166_v35 = vmul.f32 0.5, %v2150_v32  ;;  %v3178_v61 = vmul.f32 0.17677669, %v3162_v17  ;;  %v6537_v33 = vld [vmem:[%s5391_s29 + $0xe0] sm:$0xff] }
 0x4c1   : > { %v1539_v45 = vpop.xlane.xlu1 %1538  ;;  %v6518_v49 = vpop.xlane.xlu0 %1490 }
 0x4c2   : > { %8117 = vst [vmem:[#allocation38_spill] sm:$0xff] %v6518_v49  ;;  %v6530_v49 = vpop.eup %4419  ;;  %v1600_v0 = vmul.f32 1.442695, %v1574_v39  ;;  %v2192_v52 = vmul.f32 1.442695, %v2166_v35  ;;  %v1559_v4 = vsub.f32 %v8036_v22, %v1539_v45 }
 0x4c3   : > { %v3204_v32 = vmul.f32 1.442695, %v3178_v61  ;;  %v6545_v17 = vpop.eup %4421 }
 0x4c4   : > { %3014 = vmax.xlane.f32.xlu1 %v8119_v50  ;;  %1628 = vadd.xlane.f32.xlu0 %v6520_v9  ;;  %4427 = vpow2.f32 %v1600_v0  ;;  %8124 = vst [vmem:[#allocation71_spill] sm:$0xff] %v6545_v17  ;;  %v1575_v35 = vmul.f32 0.17677669, %v1559_v4 }
 0x4c5   : > { %v6526_v38 = vpop.xlane.xlu1 %1488  ;;  %v2131_v29 = vpop.xlane.xlu0 %2130  ;;  %4429 = vpow2.f32 %v2192_v52 }
 0x4c6   : > { %8120 = vst [vmem:[#allocation33_spill] sm:$0xff] %v6526_v38  ;;  %v8122_v38 = vld [vmem:[#allocation84_spill] sm:$0xff]  ;;  %v2151_v9 = vsub.f32 %v6257_v53, %v2131_v29  ;;  %4431 = vpow2.f32 %v3204_v32  ;;  %v3770_v53 = vld [vmem:[%s5391_s29 + $0xe8] sm:$0xff] }
 0x4c8   : > { %2220 = vadd.xlane.f32.xlu1 %v6528_v12  ;;  %3232 = vadd.xlane.f32.xlu0 %v6530_v49  ;;  %v2167_v22 = vmul.f32 0.5, %v2151_v9 }
 0x4c9   : > { %v3143_v36 = vpop.xlane.xlu1 %3142  ;;  %v6534_v25 = vpop.xlane.xlu0 %1494 }
 0x4ca   : > { %8121 = vst [vmem:[#allocation20_spill] sm:$0xff] %v6534_v25  ;;  %v6547_v25 = vpop.eup %4423  ;;  %v3163_v45 = vsub.f32 %v8043_v5, %v3143_v36  ;;  %v2194_v52 = vmul.f32 1.442695, %v2167_v22  ;;  %v8128_v36 = vld [vmem:[#allocation83_spill] sm:$0xff] }
 0x4cb   : > { %v6555_v29 = vpop.eup %4425 }
 0x4cc   : > { %2004 = vmax.xlane.f32.xlu1 %v6537_v33  ;;  %3016 = vmax.xlane.f32.xlu0 %v8122_v38  ;;  %v3179_v4 = vmul.f32 0.17677669, %v3163_v45 }
 0x4cd   : > { %v6543_v6 = vpop.xlane.xlu1 %1492  ;;  %v1541_v39 = vpop.xlane.xlu0 %1540 }
 0x4ce   : > { %8123 = vst [vmem:[#allocation40_spill] sm:$0xff] %v6543_v6  ;;  %v1602_v6 = vmul.f32 1.442695, %v1575_v35  ;;  %v6561_v9 = vpop.eup %4427  ;;  %v3206_v35 = vmul.f32 1.442695, %v3179_v4  ;;  %v3771_v4 = vld [vmem:[%s5391_s29 + $0xf0] sm:$0xff] }
 0x4cf   : > { %8127 = vst [vmem:[#allocation75_spill] sm:$0xff] %v6561_v9 }
 0x4d0   : > { %1630 = vadd.xlane.f32.xlu1 %v6545_v17  ;;  %2222 = vadd.xlane.f32.xlu0 %v6547_v25  ;;  %v1560_v17 = vsub.f32 %v8046_v54, %v1541_v39  ;;  %4433 = vpow2.f32 %v1602_v6  ;;  %v6569_v39 = vpop.eup %4429 }
 0x4d1   : > { %v2133_v0 = vpop.xlane.xlu1 %2132  ;;  %v6552_v61 = vpop.xlane.xlu0 %1498  ;;  %4435 = vpow2.f32 %v2194_v52  ;;  %8130 = vst [vmem:[#allocation36_spill] sm:$0xff] %v6569_v39 }
 0x4d2   : > { %8125 = vst [vmem:[#allocation37_spill] sm:$0xff] %v6552_v61  ;;  %v2152_v5 = vsub.f32 %v6295_v7, %v2133_v0  ;;  %4437 = vpow2.f32 %v3206_v35 }
 0x4d4   : > { %3234 = vadd.xlane.f32.xlu1 %v6555_v29  ;;  %2006 = vmax.xlane.f32.xlu0 %v3770_v53  ;;  %v1576_v53 = vmul.f32 0.17677669, %v1560_v17  ;;  %v2168_v6 = vmul.f32 0.5, %v2152_v5 }
 0x4d5   : > { %v6559_v38 = vpop.xlane.xlu1 %1496  ;;  %v3145_v32 = vpop.xlane.xlu0 %3144 }
 0x4d6   : > { %8126 = vst [vmem:[#allocation42_spill] sm:$0xff] %v6559_v38  ;;  %v3164_v22 = vsub.f32 %v8051_v13, %v3145_v32  ;;  %v6571_v38 = vpop.eup %4431  ;;  %v1604_v7 = vmul.f32 1.442695, %v1576_v53 }
 0x4d7   : > { %8131 = vst [vmem:[#allocation22_spill] sm:$0xff] %v6571_v38 }
 0x4d8   : > { %3018 = vmax.xlane.f32.xlu1 %v8128_v36  ;;  %1632 = vadd.xlane.f32.xlu0 %v6561_v9  ;;  %v3180_v0 = vmul.f32 0.17677669, %v3164_v22  ;;  %v8133_v9 = vld [vmem:[#allocation87_spill] sm:$0xff]  ;;  %4439 = vpow2.f32 %v1604_v7 }
 0x4d9   : > { %v1543_v45 = vpop.xlane.xlu1 %1542  ;;  %v6567_v54 = vpop.xlane.xlu0 %1502 }
 0x4da   : > { %8129 = vst [vmem:[#allocation19_spill] sm:$0xff] %v6567_v54  ;;  %v1561_v52 = vsub.f32 %v8053_v44, %v1543_v45  ;;  %v2196_v54 = vmul.f32 1.442695, %v2168_v6  ;;  %v3208_v5 = vmul.f32 1.442695, %v3180_v0  ;;  %v6581_v53 = vpop.eup %4433 }
 0x4db   : > { %8134 = vst [vmem:[#allocation74_spill] sm:$0xff] %v6581_v53  ;;  %v6585_v45 = vpop.eup %4435 }
 0x4dc   : > { %2224 = vadd.xlane.f32.xlu1 %v6569_v39  ;;  %3236 = vadd.xlane.f32.xlu0 %v6571_v38  ;;  %v1577_v39 = vmul.f32 0.17677669, %v1561_v52  ;;  %8135 = vst [vmem:[#allocation41_spill] sm:$0xff] %v6585_v45  ;;  %4441 = vpow2.f32 %v2196_v54 }
 0x4dd   : > { %v6576_v17 = vpop.xlane.xlu1 %1500  ;;  %v2135_v13 = vpop.xlane.xlu0 %2134  ;;  %4443 = vpow2.f32 %v3208_v5 }
 0x4de   : > { %8132 = vst [vmem:[#allocation44_spill] sm:$0xff] %v6576_v17  ;;  %v2153_v32 = vsub.f32 %v6320_v19, %v2135_v13  ;;  %v1606_v7 = vmul.f32 1.442695, %v1577_v39 }
 0x4e0   : > { %v2169_v61 = vmul.f32 0.5, %v2153_v32  ;;  %2008 = vmax.xlane.f32.xlu1 %v3771_v4  ;;  %3020 = vmax.xlane.f32.xlu0 %v8133_v9  ;;  %v3772_v4 = vld [vmem:[%s5391_s29 + $0xf8] sm:$0xff] }
 0x4e1   : > { %v3147_v38 = vpop.xlane.xlu1 %3146  ;;  %v1545_v35 = vpop.xlane.xlu0 %1544 }
 0x4e2   : > { %v3165_v44 = vsub.f32 %v8058_v24, %v3147_v38  ;;  %v1562_v22 = vsub.f32 %v8059_v56, %v1545_v35  ;;  %v2198_v19 = vmul.f32 1.442695, %v2169_v61  ;;  %v6592_v24 = vpop.eup %4437 }
 0x4e3   : > { %8137 = vst [vmem:[#allocation21_spill] sm:$0xff] %v6592_v24 }
 0x4e4   : > { %v3181_v6 = vmul.f32 0.17677669, %v3165_v44  ;;  %1634 = vadd.xlane.f32.xlu1 %v6581_v53  ;;  %2226 = vadd.xlane.f32.xlu0 %v6585_v45  ;;  %v1578_v0 = vmul.f32 0.17677669, %v1562_v22  ;;  %4445 = vpow2.f32 %v2198_v19  ;;  %v6597_v22 = vpop.eup %4439  ;;  %v8139_v19 = vld [vmem:[#allocation86_spill] sm:$0xff] }
 0x4e5   : > { %v6589_v52 = vpop.xlane.xlu1 %1504  ;;  %v921_v13 = vpop.xlane.xlu0 %920  ;;  %4447 = vpow2.f32 %v1606_v7  ;;  %8138 = vst [vmem:[#allocation39_spill] sm:$0xff] %v6597_v22 }
 0x4e6   : > { %8136 = vst [vmem:[#allocation46_spill] sm:$0xff] %v6589_v52  ;;  %v922_v32 = vrot.slane %v921_v13, 4  ;;  %v3210_v56 = vmul.f32 1.442695, %v3181_v6  ;;  %v1608_v61 = vmul.f32 1.442695, %v1578_v0 }
 0x4e8   : > { %v923_v38 = vadd.f32 %v922_v32, %v921_v13  ;;  %3238 = vadd.xlane.f32.xlu1 %v6592_v24  ;;  %2010 = vmax.xlane.f32.xlu0 %v3772_v4  ;;  %4449 = vpow2.f32 %v3210_v56  ;;  %v6601_v13 = vpop.eup %4441 }
 0x4e9   : > { %v2137_v54 = vpop.xlane.xlu1 %2136  ;;  %v3149_v35 = vpop.xlane.xlu0 %3148  ;;  %4451 = vpow2.f32 %v1608_v61  ;;  %8140 = vst [vmem:[#allocation24_spill] sm:$0xff] %v6601_v13 }
 0x4ea   : > { %v2154_v39 = vsub.f32 %v6342_v30, %v2137_v54  ;;  %v3166_v5 = vsub.f32 %v8062_v46, %v3149_v35  ;;  %v924_v44 = vrot.slane %v923_v38, 2  ;;  %v6605_v54 = vpop.eup %4443 }
 0x4eb   : > { %8141 = vst [vmem:[#allocation45_spill] sm:$0xff] %v6605_v54 }
 0x4ec   : > { %v2170_v52 = vmul.f32 0.5, %v2154_v39  ;;  %v3182_v17 = vmul.f32 0.17677669, %v3166_v5  ;;  %3022 = vmax.xlane.f32.xlu1 %v8139_v19  ;;  %1636 = vadd.xlane.f32.xlu0 %v6597_v22  ;;  %v925_v6 = vadd.f32 %v924_v44, %v923_v38 }
 0x4ed   : > { %v1547_v7 = vpop.xlane.xlu1 %1546  ;;  %v2139_v0 = vpop.xlane.xlu0 %2138 }
 0x4ee   : > { %v2200_v4 = vmul.f32 1.442695, %v2170_v52  ;;  %v3212_v30 = vmul.f32 1.442695, %v3182_v17  ;;  %v1563_v46 = vsub.f32 %v8063_v27, %v1547_v7  ;;  %v2155_v32 = vsub.f32 %v6347_v28, %v2139_v0  ;;  %v6609_v38 = vpop.eup %4445 }
 0x4ef   : > { %v926_v56 = vrot.slane %v925_v6, 1  ;;  %8142 = vst [vmem:[#allocation23_spill] sm:$0xff] %v6609_v38  ;;  %v6613_v7 = vpop.eup %4447 }
 0x4f0   : > { %4453 = vpow2.f32 %v2200_v4  ;;  %v1579_v35 = vmul.f32 0.17677669, %v1563_v46  ;;  %v2171_v39 = vmul.f32 0.5, %v2155_v32  ;;  %2228 = vadd.xlane.f32.xlu1 %v6601_v13  ;;  %3240 = vadd.xlane.f32.xlu0 %v6605_v54  ;;  %8143 = vst [vmem:[#allocation43_spill] sm:$0xff] %v6613_v7 }
 0x4f1   : > { %4455 = vpow2.f32 %v3212_v30  ;;  %v3151_v61 = vpop.xlane.xlu1 %3150  ;;  %v1981_v52 = vpop.xlane.xlu0 %1980  ;;  %v927_v17 = vadd.f32 %v926_v56, %v925_v6 }
 0x4f2   : > { %v1610_v5 = vmul.f32 1.442695, %v1579_v35  ;;  %v2202_v27 = vmul.f32 1.442695, %v2171_v39  ;;  %v3167_v28 = vsub.f32 %v8064_v11, %v3151_v61  ;;  %v2012_v44 = vsub.f32 %v6353_v15, %v1981_v52  ;;  %v6619_v46 = vpop.eup %4449 }
 0x4f3   : > { %4081 = vpush %v927_v17  ;;  %8144 = vst [vmem:[#allocation26_spill] sm:$0xff] %v6619_v46  ;;  %v6624_v35 = vpop.eup %4451 }
 0x4f4   : > { %4457 = vpow2.f32 %v1610_v5  ;;  %v3183_v0 = vmul.f32 0.17677669, %v3167_v28  ;;  %v6615_v4 = vmul.f32 0.5, %v2012_v44  ;;  %1638 = vadd.xlane.f32.xlu1 %v6613_v7  ;;  %2230 = vadd.xlane.f32.xlu0 %v6609_v38  ;;  %8145 = vst [vmem:[#allocation80_spill] sm:$0xff] %v6624_v35 }
 0x4f5   : > { %4459 = vpow2.f32 %v2202_v27  ;;  %v1983_v30 = vpop.xlane.xlu1 %1982  ;;  %v2993_v6 = vpop.xlane.xlu0 %2992 }
 0x4f6   : > { %v3214_v32 = vmul.f32 1.442695, %v3183_v0  ;;  %v2044_v11 = vmul.f32 1.442695, %v6615_v4  ;;  %v2013_v15 = vsub.f32 %v6360_v58, %v1983_v30  ;;  %v3024_v56 = vsub.f32 %v8065_v26, %v2993_v6 }
 0x4f8   : > { %4461 = vpow2.f32 %v3214_v32  ;;  %v6626_v39 = vmul.f32 0.5, %v2013_v15  ;;  %v6628_v61 = vmul.f32 0.17677669, %v3024_v56  ;;  %3242 = vadd.xlane.f32.xlu1 %v6619_v46  ;;  %1640 = vadd.xlane.f32.xlu0 %v6624_v35 }
 0x4f9   : > { %4463 = vpow2.f32 %v2044_v11  ;;  %v2995_v52 = vpop.xlane.xlu1 %2994  ;;  %v1985_v17 = vpop.xlane.xlu0 %1984 }
 0x4fa   : > { %v6632_v5 = vpop.eup %4453  ;;  %v2046_v58 = vmul.f32 1.442695, %v6626_v39  ;;  %v3056_v26 = vmul.f32 1.442695, %v6628_v61  ;;  %v3025_v27 = vsub.f32 %v8066_v62, %v2995_v52  ;;  %v2014_v28 = vsub.f32 %v6367_v8, %v1985_v17 }
 0x4fb   : > { %8146 = vst [vmem:[#allocation83_spill] sm:$0xff] %v6632_v5  ;;  %v6638_v44 = vpop.eup %4455 }
 0x4fc   : > { %8147 = vst [vmem:[#allocation94_spill] sm:$0xff] %v6638_v44  ;;  %4465 = vpow2.f32 %v2046_v58  ;;  %v6640_v0 = vmul.f32 0.17677669, %v3025_v27  ;;  %v6642_v30 = vmul.f32 0.5, %v2014_v28  ;;  %2232 = vadd.xlane.f32.xlu1 %v6632_v5  ;;  %3244 = vadd.xlane.f32.xlu0 %v6638_v44 }
 0x4fd   : > { %4467 = vpow2.f32 %v3056_v26  ;;  %v2997_v6 = vpop.xlane.xlu1 %2996  ;;  %v1987_v32 = vpop.xlane.xlu0 %1986 }
 0x4fe   : > { %v6646_v11 = vpop.eup %4457  ;;  %v3058_v62 = vmul.f32 1.442695, %v6640_v0  ;;  %v2048_v8 = vmul.f32 1.442695, %v6642_v30  ;;  %v3026_v15 = vsub.f32 %v8068_v59, %v2997_v6  ;;  %v2015_v56 = vsub.f32 %v6373_v63, %v1987_v32 }
 0x4ff   : > { %8148 = vst [vmem:[#allocation95_spill] sm:$0xff] %v6646_v11  ;;  %v6652_v52 = vpop.eup %4459 }
 0x500   : > { %8149 = vst [vmem:[#allocation96_spill] sm:$0xff] %v6652_v52  ;;  %4469 = vpow2.f32 %v3058_v62  ;;  %v6654_v17 = vmul.f32 0.17677669, %v3026_v15  ;;  %v6656_v58 = vmul.f32 0.5, %v2015_v56  ;;  %1642 = vadd.xlane.f32.xlu1 %v6646_v11  ;;  %2234 = vadd.xlane.f32.xlu0 %v6652_v52 }
 0x501   : > { %4471 = vpow2.f32 %v2048_v8  ;;  %v2999_v26 = vpop.xlane.xlu1 %2998  ;;  %v1989_v27 = vpop.xlane.xlu0 %1988 }
 0x502   : > { %v6660_v28 = vpop.eup %4461  ;;  %v3060_v59 = vmul.f32 1.442695, %v6654_v17  ;;  %v2050_v63 = vmul.f32 1.442695, %v6656_v58  ;;  %v3027_v6 = vsub.f32 %v8071_v48, %v2999_v26  ;;  %v2016_v32 = vsub.f32 %v6379_v23, %v1989_v27 }
 0x503   : > { %8150 = vst [vmem:[#allocation97_spill] sm:$0xff] %v6660_v28  ;;  %v6666_v62 = vpop.eup %4463 }
 0x504   : > { %4473 = vpow2.f32 %v3060_v59  ;;  %v6668_v15 = vmul.f32 0.17677669, %v3027_v6  ;;  %v6670_v56 = vmul.f32 0.5, %v2016_v32  ;;  %3246 = vadd.xlane.f32.xlu1 %v6660_v28  ;;  %2076 = vadd.xlane.f32.xlu0 %v6666_v62 }
 0x505   : > { %4475 = vpow2.f32 %v2050_v63  ;;  %v3001_v8 = vpop.xlane.xlu1 %3000  ;;  %v6674_v52 = vpop.xlane.xlu0 %1612 }
 0x506   : > { %8151 = vst [vmem:[#allocation98_spill] sm:$0xff] %v6674_v52  ;;  %v6676_v11 = vpop.eup %4465  ;;  %v3062_v48 = vmul.f32 1.442695, %v6668_v15  ;;  %v2052_v23 = vmul.f32 1.442695, %v6670_v56  ;;  %v3028_v26 = vsub.f32 %v8073_v41, %v3001_v8 }
 0x507   : > { %v6681_v27 = vpop.eup %4467  ;;  %v1644_v35 = vmul.f32 1e-08, %v6674_v52 }
 0x508   : > { %4477 = vpow2.f32 %v3062_v48  ;;  %v6683_v59 = vmul.f32 0.17677669, %v3028_v26  ;;  %2078 = vadd.xlane.f32.xlu1 %v6676_v11  ;;  %3088 = vadd.xlane.f32.xlu0 %v6681_v27 }
 0x509   : > { %4479 = vpow2.f32 %v2052_v23  ;;  %v6687_v63 = vpop.xlane.xlu1 %1614  ;;  %v6689_v6 = vpop.xlane.xlu0 %2204  ;;  %v1660_v52 = vadd.f32 %v6385_v10, %v1644_v35 }
 0x50a   : > { %8152 = vst [vmem:[#allocation99_spill] sm:$0xff] %v6687_v63  ;;  %8153 = vst [vmem:[#allocation100_spill] sm:$0xff] %v6689_v6  ;;  %v6691_v32 = vpop.eup %4469  ;;  %v3064_v28 = vmul.f32 1.442695, %v6683_v59  ;;  %v1645_v7 = vmul.f32 1e-08, %v6687_v63 }
 0x50b   : > { %v6694_v44 = vpop.eup %4471  ;;  %v2236_v13 = vmul.f32 1e-08, %v6689_v6 }
 0x50c   : > { %4481 = vpow2.f32 %v3064_v28  ;;  %3090 = vadd.xlane.f32.xlu1 %v6691_v32  ;;  %2080 = vadd.xlane.f32.xlu0 %v6694_v44 }
 0x50d   : > { %v6698_v41 = vpop.xlane.xlu1 %2206  ;;  %v6700_v8 = vpop.xlane.xlu0 %3216  ;;  %v2252_v6 = vadd.f32 %v6389_v14, %v2236_v13 }
 0x50e   : > { %8154 = vst [vmem:[#allocation101_spill] sm:$0xff] %v6700_v8  ;;  %v6702_v48 = vpop.eup %4473  ;;  %v2237_v24 = vmul.f32 1e-08, %v6698_v41  ;;  %v3248_v9 = vmul.f32 1e-08, %v6700_v8 }
 0x50f   : > { %v6704_v23 = vpop.eup %4475 }
 0x510   : > { %3092 = vadd.xlane.f32.xlu1 %v6702_v48  ;;  %2082 = vadd.xlane.f32.xlu0 %v6704_v23  ;;  %v2253_v35 = vadd.f32 %v6396_v20, %v2237_v24 }
 0x511   : > { %v6708_v26 = vpop.xlane.xlu1 %3218  ;;  %v1991_v5 = vpop.xlane.xlu0 %1990 }
 0x512   : > { %8155 = vst [vmem:[#allocation102_spill] sm:$0xff] %v6708_v26  ;;  %v6710_v28 = vpop.eup %4477  ;;  %v2017_v46 = vsub.f32 %v6405_v31, %v1991_v5 }
 0x513   : > { %v6714_v38 = vpop.eup %4479 }
 0x514   : > { %v6717_v54 = vmul.f32 0.5, %v2017_v46  ;;  %3094 = vadd.xlane.f32.xlu1 %v6710_v28  ;;  %2084 = vadd.xlane.f32.xlu0 %v6714_v38  ;;  %v1661_v46 = vadd.f32 %v6391_v16, %v1645_v7  ;;  %v3249_v7 = vmul.f32 1e-08, %v6708_v26 }
 0x515   : > { %v3003_v22 = vpop.xlane.xlu1 %3002  ;;  %v6722_v53 = vpop.xlane.xlu0 %1616 }
 0x516   : > { %8156 = vst [vmem:[#allocation103_spill] sm:$0xff] %v6722_v53  ;;  %v6724_v19 = vpop.eup %4481  ;;  %v2054_v31 = vmul.f32 1.442695, %v6717_v54  ;;  %v3029_v5 = vsub.f32 %v8079_v21, %v3003_v22 }
 0x518   : > { %4483 = vpow2.f32 %v2054_v31  ;;  %v6730_v63 = vmul.f32 0.17677669, %v3029_v5  ;;  %3096 = vadd.xlane.f32.xlu1 %v6724_v19 }
 0x519   : > { %v6736_v45 = vpop.xlane.xlu1 %2208  ;;  %v6738_v10 = vpop.xlane.xlu0 %3220  ;;  %4485 = vlog2.f32 %v1660_v52  ;;  %v3264_v52 = vadd.f32 %v6399_v34, %v3248_v9 }
 0x51a   : > { %8157 = vst [vmem:[#allocation104_spill] sm:$0xff] %v6736_v45  ;;  %8158 = vst [vmem:[#allocation105_spill] sm:$0xff] %v6738_v10  ;;  %v3066_v21 = vmul.f32 1.442695, %v6730_v63  ;;  %v2238_v16 = vmul.f32 1e-08, %v6736_v45  ;;  %4487 = vlog2.f32 %v1661_v46  ;;  %v3265_v46 = vadd.f32 %v6407_v2, %v3249_v7 }
 0x51b   : > { %v3250_v22 = vmul.f32 1e-08, %v6738_v10  ;;  %v1646_v2 = vmul.f32 1e-08, %v6722_v53 }
 0x51c   : > { %4489 = vpow2.f32 %v3066_v21  ;;  %v2254_v14 = vadd.f32 %v6417_v1, %v2238_v16 }
 0x51d   : > { %v3266_v13 = vadd.f32 %v6420_v55, %v3250_v22  ;;  %4491 = vlog2.f32 %v2252_v6  ;;  %v1993_v31 = vpop.xlane.xlu1 %1992  ;;  %v3005_v5 = vpop.xlane.xlu0 %3004 }
 0x51e   : > { %4493 = vlog2.f32 %v2254_v14  ;;  %v2018_v45 = vsub.f32 %v6425_v42, %v1993_v31  ;;  %v3030_v10 = vsub.f32 %v8082_v51, %v3005_v5 }
 0x51f   : > { %4495 = vlog2.f32 %v3266_v13 }
 0x520   : > { %v6751_v21 = vmul.f32 0.5, %v2018_v45  ;;  %v6753_v1 = vmul.f32 0.17677669, %v3030_v10  ;;  %4497 = vlog2.f32 %v2253_v35  ;;  %v1662_v35 = vadd.f32 %v6412_v47, %v1646_v2 }
 0x521   : > { %v6755_v55 = vpop.xlane.xlu1 %1618  ;;  %v6757_v20 = vpop.xlane.xlu0 %2210  ;;  %4499 = vlog2.f32 %v3264_v52 }
 0x522   : > { %8159 = vst [vmem:[#allocation106_spill] sm:$0xff] %v6755_v55  ;;  %8160 = vst [vmem:[#allocation107_spill] sm:$0xff] %v6757_v20  ;;  %v6759_v24 = vpop.eup %4483  ;;  %v2056_v34 = vmul.f32 1.442695, %v6751_v21  ;;  %v3068_v42 = vmul.f32 1.442695, %v6753_v1  ;;  %4501 = vlog2.f32 %v3265_v46 }
 0x523   : > { %v2239_v51 = vmul.f32 1e-08, %v6757_v20  ;;  %2086 = vadd.xlane.f32.xlu0 %v6759_v24  ;;  %v4486_v9 = vpop.eup %4485 }
 0x524   : > { %4503 = vpow2.f32 %v2056_v34  ;;  %v4488_v45 = vpop.eup %4487  ;;  %v1677_v31 = vmul.f32 0.6931472, %v4486_v9  ;;  %s4082_s1 = spop %4081 }
 0x525   : > { %4505 = vpow2.f32 %v3068_v42  ;;  %v2255_v6 = vadd.f32 %v6430_v57, %v2239_v51  ;;  %v6767_v10 = vpop.xlane.xlu1 %3222  ;;  %v1995_v16 = vpop.xlane.xlu0 %1994  ;;  %v1679_v57 = vmul.f32 0.6931472, %v4488_v45  ;;  %v8162_v45 = vld [vmem:[#allocation48_spill] sm:$0xff] }
 0x526   : > { %8161 = vst [vmem:[#allocation108_spill] sm:$0xff] %v6767_v10  ;;  %v6769_v22 = vpop.eup %4489  ;;  %v3251_v7 = vmul.f32 1e-08, %v6767_v10  ;;  %v2019_v14 = vsub.f32 %v6439_v18, %v1995_v16  ;;  %v1708_v47 = vsub.f32 %v6195_v3, %v1677_v31 }
 0x527   : > { %v4492_v13 = vpop.eup %4491  ;;  %3098 = vadd.xlane.f32.xlu1 %v6769_v22  ;;  %4507 = vlog2.f32 %v2255_v6 }
 0x528   : > { %v4494_v5 = vpop.eup %4493  ;;  %v3267_v52 = vadd.f32 %v6441_v60, %v3251_v7  ;;  %v6776_v34 = vmul.f32 0.5, %v2019_v14  ;;  %v1647_v60 = vmul.f32 1e-08, %v6755_v55  ;;  %v1709_v7 = vsub.f32 %v8162_v45, %v1679_v57  ;;  %v8167_v45 = vld [vmem:[#allocation27_spill] sm:$0xff] }
 0x529   : > { %v4496_v46 = vpop.eup %4495  ;;  %v3007_v42 = vpop.xlane.xlu1 %3006  ;;  %v2273_v10 = vmul.f32 0.6931472, %v4494_v5  ;;  %v2269_v14 = vmul.f32 0.6931472, %v4492_v13  ;;  %v8169_v55 = vld [vmem:[#allocation51_spill] sm:$0xff] }
 0x52a   : > { %v6778_v51 = vpop.xlane.xlu0 %1620  ;;  %4509 = vlog2.f32 %v3267_v52  ;;  %v3031_v18 = vsub.f32 %v8089_v43, %v3007_v42  ;;  %v4498_v16 = vpop.eup %4497  ;;  %v3285_v9 = vmul.f32 0.6931472, %v4496_v46  ;;  %v2058_v53 = vmul.f32 1.442695, %v6776_v34  ;;  %v8165_v46 = vld [vmem:[#allocation32_spill] sm:$0xff] }
 0x52b   : > { %4511 = vlog2.f32 %v1662_v35  ;;  %v2302_v2 = vsub.f32 %v6642_v30, %v2273_v10  ;;  %v4500_v6 = vpop.eup %4499  ;;  %v2271_v31 = vmul.f32 0.6931472, %v4498_v16  ;;  %v1724_v42 = vmul.f32 %v8165_v46, %v1708_v47 }
 0x52c   : > { %v4502_v20 = vpop.eup %4501  ;;  %v6786_v5 = vmul.f32 0.17677669, %v3031_v18  ;;  %v3314_v30 = vsub.f32 %v6654_v17, %v3285_v9  ;;  %v8168_v9 = vld [vmem:[#allocation16_spill] sm:$0xff]  ;;  %v2300_v16 = vsub.f32 %v6615_v4, %v2269_v14  ;;  %4513 = vpow2.f32 %v2058_v53  ;;  %v8171_v4 = vld [vmem:[#allocation79_spill] sm:$0xff] }
 0x52d   : > { %v6788_v52 = vpop.xlane.xlu1 %2212  ;;  %v6793_v3 = vmul.f32 %v6694_v44, %v2302_v2  ;;  %v8166_v44 = vld [vmem:[#allocation28_spill] sm:$0xff]  ;;  %v3281_v46 = vmul.f32 0.6931472, %v4500_v6 }
 0x52e   : > { %8163 = vst [vmem:[#allocation48_spill] sm:$0xff] %v6788_v52  ;;  %v6790_v43 = vpop.xlane.xlu0 %3224  ;;  %v6796_v10 = vpop.eup %4503  ;;  %v2240_v35 = vmul.f32 1e-08, %v6788_v52  ;;  %v6805_v18 = vmul.f32 %v6702_v48, %v3314_v30  ;;  %v1663_v2 = vadd.f32 %v8166_v44, %v1647_v60  ;;  %v1725_v52 = vmul.f32 %v8168_v9, %v1709_v7  ;;  %v8170_v30 = vld [vmem:[#allocation30_spill] sm:$0xff] }
 0x52f   : > { %8164 = vst [vmem:[#allocation109_spill] sm:$0xff] %v6790_v43  ;;  %v6799_v13 = vpop.eup %4505  ;;  %v3252_v57 = vmul.f32 1e-08, %v6790_v43  ;;  %2088 = vadd.xlane.f32.xlu0 %v6796_v10  ;;  %v3070_v43 = vmul.f32 1.442695, %v6786_v5 }
 0x530   : > { %v2256_v17 = vadd.f32 %v8167_v45, %v2240_v35  ;;  %3100 = vadd.xlane.f32.xlu1 %v6799_v13  ;;  %v2301_v35 = vsub.f32 %v6626_v39, %v2271_v31  ;;  %v3283_v44 = vmul.f32 0.6931472, %v4502_v20  ;;  %v3312_v39 = vsub.f32 %v6628_v61, %v3281_v46 }
 0x531   : > { %v3268_v26 = vadd.f32 %v8169_v55, %v3252_v57  ;;  %v1997_v8 = vpop.xlane.xlu1 %1996  ;;  %v4508_v48 = vpop.eup %4507  ;;  %v2316_v55 = vmul.f32 %v6666_v62, %v2300_v16 }
 0x532   : > { %v3009_v47 = vpop.xlane.xlu0 %3008  ;;  %4515 = vlog2.f32 %v2256_v17  ;;  %v2020_v60 = vsub.f32 %v8170_v30, %v1997_v8  ;;  %v2275_v7 = vmul.f32 0.6931472, %v4508_v48  ;;  %v2317_v31 = vmul.f32 %v6676_v11, %v2301_v35  ;;  %v8173_v48 = vld [vmem:[#allocation55_spill] sm:$0xff] }
 0x533   : > { %4517 = vlog2.f32 %v3268_v26  ;;  %1740 = vadd.xlane.f32.xlu0 %v1724_v42  ;;  %v3032_v14 = vsub.f32 %v8171_v4, %v3009_v47  ;;  %v3313_v42 = vsub.f32 %v6640_v0, %v3283_v44  ;;  %v3328_v47 = vmul.f32 %v6681_v27, %v3312_v39  ;;  %v8174_v44 = vld [vmem:[#allocation53_spill] sm:$0xff]  ;;  %v8175_v27 = vld [vmem:[#allocation66_spill] sm:$0xff] }
 0x534   : > { %v4510_v45 = vpop.eup %4509  ;;  %4519 = vlog2.f32 %v1663_v2  ;;  %v6816_v53 = vmul.f32 0.5, %v2020_v60  ;;  %1742 = vadd.xlane.f32.xlu1 %v1725_v52  ;;  %v2303_v20 = vsub.f32 %v6656_v58, %v2275_v7  ;;  %v1648_v2 = vmul.f32 1e-08, %v6778_v51  ;;  %v8172_v58 = vld [vmem:[#allocation57_spill] sm:$0xff] }
 0x535   : > { %v4512_v6 = vpop.eup %4511  ;;  %4521 = vpow2.f32 %v3070_v43  ;;  %v6820_v57 = vpop.xlane.xlu1 %1622  ;;  %v3287_v26 = vmul.f32 0.6931472, %v4510_v45  ;;  %v6831_v43 = vmul.f32 0.17677669, %v3032_v14  ;;  %v3329_v60 = vmul.f32 %v6691_v32, %v3313_v42  ;;  %v8176_v14 = vld [vmem:[#allocation52_spill] sm:$0xff] }
 0x536   : > { %v6822_v8 = vpop.xlane.xlu0 %2214  ;;  %v2060_v52 = vmul.f32 1.442695, %v6816_v53  ;;  %v1681_v17 = vmul.f32 0.6931472, %v4512_v6  ;;  %v6835_v9 = vmul.f32 %v6704_v23, %v2303_v20  ;;  %v6844_v35 = vpop.eup %4513 }
 0x537   : > { %v2241_v62 = vmul.f32 1e-08, %v6822_v8  ;;  %2332 = vadd.xlane.f32.xlu0 %v2316_v55  ;;  %v3315_v61 = vsub.f32 %v6668_v15, %v3287_v26  ;;  %v1664_v15 = vadd.f32 %v8174_v44, %v1648_v2  ;;  %v3072_v45 = vmul.f32 1.442695, %v6831_v43 }
 0x538   : > { %2334 = vadd.xlane.f32.xlu1 %v2317_v31  ;;  %4523 = vpow2.f32 %v2060_v52  ;;  %v1710_v55 = vsub.f32 %v8176_v14, %v1681_v17  ;;  %v1649_v17 = vmul.f32 1e-08, %v6820_v57 }
 0x539   : > { %v2257_v11 = vadd.f32 %v8172_v58, %v2241_v62  ;;  %v6838_v16 = vpop.xlane.xlu1 %3226  ;;  %v6848_v23 = vmul.f32 %v6710_v28, %v3315_v61  ;;  %v8177_v28 = vld [vmem:[#allocation78_spill] sm:$0xff]  ;;  %v8178_v61 = vld [vmem:[#allocation61_spill] sm:$0xff] }
 0x53a   : > { %v1999_v0 = vpop.xlane.xlu0 %1998  ;;  %v3253_v46 = vmul.f32 1e-08, %v6838_v16  ;;  %v1726_v58 = vmul.f32 %v8178_v61, %v1710_v55 }
 0x53b   : > { %v2021_v30 = vsub.f32 %v8173_v48, %v1999_v0  ;;  %3344 = vadd.xlane.f32.xlu0 %v3328_v47  ;;  %4525 = vlog2.f32 %v2257_v11 }
 0x53c   : > { %v4516_v7 = vpop.eup %4515  ;;  %v3269_v4 = vadd.f32 %v8175_v27, %v3253_v46  ;;  %3346 = vadd.xlane.f32.xlu1 %v3329_v60  ;;  %v8180_v27 = vld [vmem:[#allocation31_spill] sm:$0xff] }
 0x53d   : > { %v4518_v6 = vpop.eup %4517  ;;  %v6853_v32 = vmul.f32 0.5, %v2021_v30  ;;  %v3011_v39 = vpop.xlane.xlu1 %3010  ;;  %v2277_v20 = vmul.f32 0.6931472, %v4516_v7  ;;  %v8179_v7 = vld [vmem:[#allocation29_spill] sm:$0xff] }
 0x53e   : > { %v6855_v26 = vpop.xlane.xlu0 %1624  ;;  %v4520_v31 = vpop.eup %4519  ;;  %4527 = vlog2.f32 %v3269_v4  ;;  %v3033_v42 = vsub.f32 %v8177_v28, %v3011_v39  ;;  %v3289_v62 = vmul.f32 0.6931472, %v4518_v6 }
 0x53f   : > { %v6858_v2 = vpop.eup %4521  ;;  %4529 = vlog2.f32 %v1664_v15  ;;  %2090 = vadd.xlane.f32.xlu0 %v6844_v35  ;;  %v2304_v52 = vsub.f32 %v6670_v56, %v2277_v20  ;;  %v2062_v11 = vmul.f32 1.442695, %v6853_v32  ;;  %v1683_v60 = vmul.f32 0.6931472, %v4520_v31  ;;  %v8182_v31 = vld [vmem:[#allocation50_spill] sm:$0xff] }
 0x540   : > { %4531 = vpow2.f32 %v3072_v45  ;;  %3102 = vadd.xlane.f32.xlu1 %v6858_v2  ;;  %v6866_v0 = vmul.f32 0.17677669, %v3033_v42  ;;  %v3316_v56 = vsub.f32 %v6683_v59, %v3289_v62  ;;  %v1665_v45 = vadd.f32 %v8179_v7, %v1649_v17  ;;  %v8181_v59 = vld [vmem:[#allocation69_spill] sm:$0xff] }
 0x541   : > { %v6868_v47 = vpop.xlane.xlu1 %2216  ;;  %v6873_v48 = vmul.f32 %v6714_v38, %v2304_v52  ;;  %4533 = vpow2.f32 %v2062_v11  ;;  %v1711_v28 = vsub.f32 %v8182_v31, %v1683_v60  ;;  %v8183_v62 = vld [vmem:[#allocation81_spill] sm:$0xff] }
 0x542   : > { %v6870_v46 = vpop.xlane.xlu0 %3228  ;;  %v2242_v30 = vmul.f32 1e-08, %v6868_v47  ;;  %v6879_v15 = vmul.f32 %v6724_v19, %v3316_v56  ;;  %v6884_v14 = vpop.eup %4523  ;;  %v3074_v38 = vmul.f32 1.442695, %v6866_v0 }
 0x543   : > { %v3254_v44 = vmul.f32 1e-08, %v6870_v46  ;;  %1744 = vadd.xlane.f32.xlu0 %v1726_v58 }
 0x544   : > { %v2258_v4 = vadd.f32 %v8180_v27, %v2242_v30  ;;  %2336 = vadd.xlane.f32.xlu1 %v6793_v3 }
 0x545   : > { %v3270_v55 = vadd.f32 %v8181_v59, %v3254_v44  ;;  %v2001_v6 = vpop.xlane.xlu1 %2000  ;;  %v4526_v20 = vpop.eup %4525  ;;  %v8185_v59 = vld [vmem:[#allocation18_spill] sm:$0xff] }
 0x546   : > { %v3013_v39 = vpop.xlane.xlu0 %3012  ;;  %4535 = vlog2.f32 %v2258_v4  ;;  %v2022_v19 = vsub.f32 %v6493_v40, %v2001_v6  ;;  %v2279_v42 = vmul.f32 0.6931472, %v4526_v20 }
 0x547   : > { %4537 = vlog2.f32 %v3270_v55  ;;  %3348 = vadd.xlane.f32.xlu0 %v6805_v18  ;;  %v3034_v17 = vsub.f32 %v8183_v62, %v3013_v39  ;;  %v8184_v18 = vld [vmem:[#allocation82_spill] sm:$0xff] }
 0x548   : > { %v4528_v3 = vpop.eup %4527  ;;  %4539 = vlog2.f32 %v1665_v45  ;;  %v6891_v52 = vmul.f32 0.5, %v2022_v19  ;;  %2092 = vadd.xlane.f32.xlu1 %v6884_v14  ;;  %v2305_v56 = vsub.f32 %v6717_v54, %v2279_v42  ;;  %v1727_v60 = vmul.f32 %v8184_v18, %v1711_v28  ;;  %v8186_v28 = vld [vmem:[#allocation73_spill] sm:$0xff]  ;;  %v8187_v42 = vld [vmem:[#allocation54_spill] sm:$0xff] }
 0x549   : > { %v4530_v61 = vpop.eup %4529  ;;  %4541 = vpow2.f32 %v3074_v38  ;;  %v6895_v58 = vpop.xlane.xlu1 %1626  ;;  %v3291_v40 = vmul.f32 0.6931472, %v4528_v3  ;;  %v6906_v45 = vmul.f32 0.17677669, %v3034_v17  ;;  %v1650_v54 = vmul.f32 1e-08, %v6855_v26 }
 0x54a   : > { %v6897_v11 = vpop.xlane.xlu0 %2218  ;;  %v6900_v30 = vpop.eup %4531  ;;  %v2064_v44 = vmul.f32 1.442695, %v6891_v52  ;;  %v1685_v27 = vmul.f32 0.6931472, %v4530_v61  ;;  %v6910_v38 = vmul.f32 %v6759_v24, %v2305_v56  ;;  %v1431_v3 = vsub.f32 %v8187_v42, %v8186_v28  ;;  %v8188_v17 = vld [vmem:[#allocation72_spill] sm:$0xff]  ;;  %v8190_v18 = vld [vmem:[#allocation65_spill] sm:$0xff] }
 0x54b   : > { %v2243_v7 = vmul.f32 1e-08, %v6897_v11  ;;  %3104 = vadd.xlane.f32.xlu0 %v6900_v30  ;;  %v3317_v4 = vsub.f32 %v6730_v63, %v3291_v40  ;;  %v6918_v31 = vpop.eup %4533  ;;  %v3076_v62 = vmul.f32 1.442695, %v6906_v45 }
 0x54c   : > { %1746 = vadd.xlane.f32.xlu1 %v1727_v60  ;;  %4543 = vpow2.f32 %v2064_v44  ;;  %v1666_v60 = vadd.f32 %v8190_v18, %v1650_v54  ;;  %v8191_v54 = vld [vmem:[#allocation70_spill] sm:$0xff] }
 0x54d   : > { %v2259_v55 = vadd.f32 %v8185_v59, %v2243_v7  ;;  %v6914_v6 = vpop.xlane.xlu1 %3230  ;;  %v6924_v63 = vmul.f32 %v6769_v22, %v3317_v4 }
 0x54e   : > { %v2003_v39 = vpop.xlane.xlu0 %2002  ;;  %v3255_v20 = vmul.f32 1e-08, %v6914_v6 }
 0x54f   : > { %v2023_v19 = vsub.f32 %v6511_v37, %v2003_v39  ;;  %2338 = vadd.xlane.f32.xlu0 %v6835_v9  ;;  %4545 = vlog2.f32 %v2259_v55  ;;  %v8189_v37 = vld [vmem:[#allocation15_spill] sm:$0xff]  ;;  %v6939_v39 = vmul.f32 0.17677669, %v1431_v3 }
 0x550   : > { %v4536_v24 = vpop.eup %4535  ;;  %v3271_v61 = vadd.f32 %v8188_v17, %v3255_v20  ;;  %3350 = vadd.xlane.f32.xlu1 %v6848_v23  ;;  %v1712_v40 = vsub.f32 %v8189_v37, %v1685_v27 }
 0x551   : > { %v4538_v56 = vpop.eup %4537  ;;  %v6931_v7 = vmul.f32 0.5, %v2023_v19  ;;  %v3015_v44 = vpop.xlane.xlu1 %3014  ;;  %v2281_v22 = vmul.f32 0.6931472, %v4536_v24 }
 0x552   : > { %v6933_v9 = vpop.xlane.xlu0 %1628  ;;  %v4540_v4 = vpop.eup %4539  ;;  %4547 = vlog2.f32 %v3271_v61  ;;  %v3293_v23 = vmul.f32 0.6931472, %v4538_v56  ;;  %v3035_v27 = vsub.f32 %v8119_v50, %v3015_v44  ;;  %v1728_v20 = vmul.f32 %v8191_v54, %v1712_v40 }
 0x553   : > { %v6935_v59 = vpop.eup %4541  ;;  %2094 = vadd.xlane.f32.xlu0 %v6918_v31  ;;  %v2306_v55 = vsub.f32 %v6751_v21, %v2281_v22  ;;  %4549 = vpow2.f32 %v3076_v62  ;;  %v2066_v19 = vmul.f32 1.442695, %v6931_v7  ;;  %v1687_v62 = vmul.f32 0.6931472, %v4540_v4  ;;  %v8195_v4 = vld [vmem:[#allocation25_spill] sm:$0xff] }
 0x554   : > { %3106 = vadd.xlane.f32.xlu1 %v6935_v59  ;;  %4551 = vlog2.f32 %v1666_v60  ;;  %v3318_v21 = vsub.f32 %v6753_v1, %v3293_v23  ;;  %v1474_v61 = vmul.f32 1.442695, %v6939_v39  ;;  %v6959_v37 = vmul.f32 0.17677669, %v3035_v27 }
 0x555   : > { %v6945_v28 = vpop.xlane.xlu1 %2220  ;;  %v6950_v24 = vmul.f32 %v6796_v10, %v2306_v55  ;;  %v1651_v1 = vmul.f32 1e-08, %v6895_v58  ;;  %4553 = vpow2.f32 %v2066_v19  ;;  %v8196_v55 = vld [vmem:[#allocation59_spill] sm:$0xff] }
 0x556   : > { %8192 = vst [vmem:[#allocation32_spill] sm:$0xff] %v6945_v28  ;;  %v6947_v42 = vpop.xlane.xlu0 %3232  ;;  %v2244_v3 = vmul.f32 1e-08, %v6945_v28  ;;  %v6956_v17 = vmul.f32 %v6799_v13, %v3318_v21  ;;  %v6963_v10 = vpop.eup %4543  ;;  %v8194_v13 = vld [vmem:[#allocation56_spill] sm:$0xff]  ;;  %v1432_v23 = vsub.f32 %v8196_v55, %v8195_v4  ;;  %v3078_v54 = vmul.f32 1.442695, %v6959_v37 }
 0x557   : > { %8193 = vst [vmem:[#allocation28_spill] sm:$0xff] %v6947_v42  ;;  %v3256_v50 = vmul.f32 1e-08, %v6947_v42  ;;  %1748 = vadd.xlane.f32.xlu0 %v1728_v20  ;;  %v1713_v22 = vsub.f32 %v8194_v13, %v1687_v62 }
 0x558   : > { %v2260_v40 = vadd.f32 %v6528_v12, %v2244_v3  ;;  %2340 = vadd.xlane.f32.xlu1 %v6873_v48 }
 0x559   : > { %v3272_v56 = vadd.f32 %v6530_v49, %v3256_v50  ;;  %v2005_v18 = vpop.xlane.xlu1 %2004  ;;  %v4546_v44 = vpop.eup %4545  ;;  %v8197_v49 = vld [vmem:[#allocation68_spill] sm:$0xff] }
 0x55a   : > { %v3017_v60 = vpop.xlane.xlu0 %3016  ;;  %4555 = vlog2.f32 %v2260_v40  ;;  %v2024_v12 = vsub.f32 %v6537_v33, %v2005_v18  ;;  %v2283_v48 = vmul.f32 0.6931472, %v4546_v44  ;;  %v1667_v20 = vadd.f32 %v8197_v49, %v1651_v1  ;;  %v8200_v33 = vld [vmem:[#allocation88_spill] sm:$0xff] }
 0x55b   : > { %4557 = vlog2.f32 %v3272_v56  ;;  %3352 = vadd.xlane.f32.xlu0 %v6879_v15  ;;  %v1729_v15 = vmul.f32 %v8200_v33, %v1713_v22  ;;  %v6983_v56 = vmul.f32 0.17677669, %v1432_v23  ;;  %v8201_v1 = vld [vmem:[#allocation84_spill] sm:$0xff]  ;;  %v8204_v33 = vld [vmem:[#allocation85_spill] sm:$0xff] }
 0x55c   : > { %v4548_v27 = vpop.eup %4547  ;;  %4559 = vpow2.f32 %v1474_v61  ;;  %2096 = vadd.xlane.f32.xlu1 %v6963_v10  ;;  %v2307_v62 = vsub.f32 %v6776_v34, %v2283_v48  ;;  %v6985_v61 = vmul.f32 0.5, %v2024_v12  ;;  %v3036_v44 = vsub.f32 %v8201_v1, %v3017_v60  ;;  %v8205_v1 = vld [vmem:[#allocation92_spill] sm:$0xff] }
 0x55d   : > { %v6975_v19 = vpop.xlane.xlu1 %1630  ;;  %v3295_v3 = vmul.f32 0.6931472, %v4548_v27  ;;  %v6980_v50 = vpop.eup %4549  ;;  %4561 = vpow2.f32 %v3078_v54  ;;  %v1476_v60 = vmul.f32 1.442695, %v6983_v56 }
 0x55e   : > { %8198 = vst [vmem:[#allocation27_spill] sm:$0xff] %v6975_v19  ;;  %v6977_v21 = vpop.xlane.xlu0 %2222  ;;  %v4552_v40 = vpop.eup %4551  ;;  %v6992_v34 = vmul.f32 %v6844_v35, %v2307_v62  ;;  %4563 = vlog2.f32 %v1667_v20  ;;  %v2068_v27 = vmul.f32 1.442695, %v6985_v61  ;;  %v1652_v20 = vmul.f32 1e-08, %v6933_v9 }
 0x55f   : > { %8199 = vst [vmem:[#allocation16_spill] sm:$0xff] %v6977_v21  ;;  %v2245_v18 = vmul.f32 1e-08, %v6977_v21  ;;  %3108 = vadd.xlane.f32.xlu0 %v6980_v50  ;;  %v3319_v13 = vsub.f32 %v6786_v5, %v3295_v3  ;;  %v1689_v12 = vmul.f32 0.6931472, %v4552_v40  ;;  %v6998_v48 = vpop.eup %4553  ;;  %v4924_v40 = vld [vmem:[%s5391_s29 + $0xe8] sm:$0xff] }
 0x560   : > { %1750 = vadd.xlane.f32.xlu1 %v1729_v15  ;;  %v8221_v21 = vld [vmem:[#allocation89_spill] sm:$0xff] }
 0x561   : > { %v2261_v22 = vadd.f32 %v6547_v25, %v2245_v18  ;;  %v6995_v4 = vpop.xlane.xlu1 %3234  ;;  %v7003_v5 = vmul.f32 %v6858_v2, %v3319_v13  ;;  %v7006_v25 = vmul.f32 0.17677669, %v3036_v44  ;;  %v1714_v15 = vsub.f32 %v8204_v33, %v1689_v12  ;;  %v8206_v44 = vld [vmem:[#allocation58_spill] sm:$0xff] }
 0x562   : > { %8202 = vst [vmem:[#allocation51_spill] sm:$0xff] %v6995_v4  ;;  %v2007_v55 = vpop.xlane.xlu0 %2006  ;;  %v3257_v23 = vmul.f32 1e-08, %v6995_v4  ;;  %v1433_v13 = vsub.f32 %v8206_v44, %v8205_v1 }
 0x563   : > { %2342 = vadd.xlane.f32.xlu0 %v6910_v38  ;;  %4565 = vlog2.f32 %v2261_v22  ;;  %v2025_v18 = vsub.f32 %v4924_v40, %v2007_v55  ;;  %v3080_v22 = vmul.f32 1.442695, %v7006_v25 }
 0x564   : > { %v4556_v35 = vpop.eup %4555  ;;  %v3273_v54 = vadd.f32 %v6555_v29, %v3257_v23  ;;  %3354 = vadd.xlane.f32.xlu1 %v6924_v63  ;;  %v8207_v23 = vld [vmem:[#allocation17_spill] sm:$0xff] }
 0x565   : > { %v4558_v49 = vpop.eup %4557  ;;  %v3019_v3 = vpop.xlane.xlu1 %3018  ;;  %v2285_v38 = vmul.f32 0.6931472, %v4556_v35  ;;  %v1668_v35 = vadd.f32 %v8207_v23, %v1652_v20  ;;  %v7036_v40 = vmul.f32 0.5, %v2025_v18 }
 0x566   : > { %v7011_v62 = vpop.xlane.xlu0 %1632  ;;  %v7013_v2 = vpop.eup %4559  ;;  %4567 = vlog2.f32 %v3273_v54  ;;  %v3297_v63 = vmul.f32 0.6931472, %v4558_v49  ;;  %v3037_v20 = vsub.f32 %v8128_v36, %v3019_v3 }
 0x567   : > { %8203 = vst [vmem:[#allocation30_spill] sm:$0xff] %v7011_v62  ;;  %4569 = vpow2.f32 %v2068_v27  ;;  %1506 = vadd.xlane.f32.xlu0 %v7013_v2  ;;  %v2308_v29 = vsub.f32 %v6816_v53, %v2285_v38  ;;  %v7032_v27 = vpop.eup %4561  ;;  %v2070_v3 = vmul.f32 1.442695, %v7036_v40 }
 0x568   : > { %4571 = vpow2.f32 %v1476_v60  ;;  %2098 = vadd.xlane.f32.xlu1 %v6998_v48  ;;  %v3320_v53 = vsub.f32 %v6831_v43, %v3297_v63  ;;  %v8210_v60 = vld [vmem:[#allocation91_spill] sm:$0xff]  ;;  %v4564_v33 = vpop.eup %4563  ;;  %v8211_v43 = vld [vmem:[#allocation36_spill] sm:$0xff] }
 0x569   : > { %v7024_v54 = vpop.xlane.xlu1 %2224  ;;  %v7029_v55 = vmul.f32 %v6884_v14, %v2308_v29  ;;  %v1730_v38 = vmul.f32 %v8210_v60, %v1714_v15  ;;  %v7044_v29 = vmul.f32 0.17677669, %v1433_v13  ;;  %4573 = vpow2.f32 %v3080_v22  ;;  %v8212_v15 = vld [vmem:[#allocation22_spill] sm:$0xff] }
 0x56a   : > { %8208 = vst [vmem:[#allocation79_spill] sm:$0xff] %v7024_v54  ;;  %v7026_v12 = vpop.xlane.xlu0 %3236  ;;  %v2246_v49 = vmul.f32 1e-08, %v7024_v54  ;;  %v7042_v14 = vmul.f32 %v6900_v30, %v3320_v53  ;;  %4575 = vlog2.f32 %v1668_v35  ;;  %v1691_v36 = vmul.f32 0.6931472, %v4564_v33  ;;  %v8217_v54 = vld [vmem:[#allocation63_spill] sm:$0xff] }
 0x56b   : > { %8209 = vst [vmem:[#allocation57_spill] sm:$0xff] %v7026_v12  ;;  %v3258_v1 = vmul.f32 1e-08, %v7026_v12  ;;  %3110 = vadd.xlane.f32.xlu0 %v7032_v27  ;;  %v7049_v12 = vmul.f32 0.17677669, %v3037_v20 }
 0x56c   : > { %v2262_v63 = vadd.f32 %v8211_v43, %v2246_v49  ;;  %1752 = vadd.xlane.f32.xlu1 %v1730_v38  ;;  %v1478_v22 = vmul.f32 1.442695, %v7044_v29  ;;  %v1653_v53 = vmul.f32 1e-08, %v6975_v19 }
 0x56d   : > { %v3274_v44 = vadd.f32 %v8212_v15, %v3258_v1  ;;  %v2009_v18 = vpop.xlane.xlu1 %2008  ;;  %v4566_v60 = vpop.eup %4565  ;;  %v4925_v15 = vld [vmem:[%s5391_s29 + $0xf0] sm:$0xff] }
 0x56e   : > { %v3021_v23 = vpop.xlane.xlu0 %3020  ;;  %4577 = vlog2.f32 %v2262_v63  ;;  %v2287_v30 = vmul.f32 0.6931472, %v4566_v60  ;;  %v3082_v63 = vmul.f32 1.442695, %v7049_v12  ;;  %v8216_v60 = vld [vmem:[#allocation47_spill] sm:$0xff] }
 0x56f   : > { %4579 = vlog2.f32 %v3274_v44  ;;  %2344 = vadd.xlane.f32.xlu0 %v6950_v24  ;;  %v8215_v24 = vld [vmem:[#allocation60_spill] sm:$0xff]  ;;  %v1434_v4 = vsub.f32 %v8217_v54, %v8216_v60 }
 0x570   : > { %v4568_v13 = vpop.eup %4567  ;;  %3356 = vadd.xlane.f32.xlu1 %v6956_v17  ;;  %v2309_v20 = vsub.f32 %v6853_v32, %v2287_v30  ;;  %v1715_v43 = vsub.f32 %v8215_v24, %v1691_v36  ;;  %4581 = vpow2.f32 %v2070_v3  ;;  %v2026_v17 = vsub.f32 %v4925_v15, %v2009_v18  ;;  %v8218_v36 = vld [vmem:[#allocation71_spill] sm:$0xff] }
 0x571   : > { %v7054_v35 = vpop.eup %4569  ;;  %v7057_v49 = vpop.xlane.xlu1 %1634  ;;  %v3299_v33 = vmul.f32 0.6931472, %v4568_v13  ;;  %4583 = vpow2.f32 %v1478_v22  ;;  %v1669_v3 = vadd.f32 %v8218_v36, %v1653_v53  ;;  %v8219_v13 = vld [vmem:[#allocation41_spill] sm:$0xff]  ;;  %v7090_v53 = vmul.f32 0.17677669, %v1434_v4 }
 0x572   : > { %8213 = vst [vmem:[#allocation55_spill] sm:$0xff] %v7057_v49  ;;  %v7059_v38 = vpop.xlane.xlu0 %2226  ;;  %v7062_v1 = vpop.eup %4571  ;;  %v7074_v30 = vmul.f32 %v6918_v31, %v2309_v20  ;;  %v1731_v54 = vmul.f32 %v8221_v21, %v1715_v43  ;;  %4585 = vpow2.f32 %v3082_v63  ;;  %v7084_v19 = vmul.f32 0.5, %v2026_v17 }
 0x573   : > { %8214 = vst [vmem:[#allocation53_spill] sm:$0xff] %v7059_v38  ;;  %v2247_v44 = vmul.f32 1e-08, %v7059_v38  ;;  %1508 = vadd.xlane.f32.xlu0 %v7062_v1  ;;  %v3321_v32 = vsub.f32 %v6866_v0, %v3299_v33  ;;  %v7080_v38 = vpop.eup %4573  ;;  %v8222_v33 = vld [vmem:[#allocation87_spill] sm:$0xff] }
 0x574   : > { %2100 = vadd.xlane.f32.xlu1 %v7054_v35  ;;  %v4576_v60 = vpop.eup %4575  ;;  %v3038_v20 = vsub.f32 %v8222_v33, %v3021_v23  ;;  %v8227_v33 = vld [vmem:[#allocation62_spill] sm:$0xff] }
 0x575   : > { %v2263_v24 = vadd.f32 %v8219_v13, %v2247_v44  ;;  %v7078_v18 = vpop.xlane.xlu1 %3238  ;;  %v7088_v0 = vmul.f32 %v6935_v59, %v3321_v32  ;;  %v8223_v44 = vld [vmem:[#allocation21_spill] sm:$0xff]  ;;  %v1693_v17 = vmul.f32 0.6931472, %v4576_v60  ;;  %v2072_v59 = vmul.f32 1.442695, %v7084_v19 }
 0x576   : > { %8220 = vst [vmem:[#allocation66_spill] sm:$0xff] %v7078_v18  ;;  %v2011_v15 = vpop.xlane.xlu0 %2010  ;;  %v3259_v22 = vmul.f32 1e-08, %v7078_v18  ;;  %v1480_v32 = vmul.f32 1.442695, %v7090_v53 }
 0x577   : > { %3112 = vadd.xlane.f32.xlu0 %v7080_v38  ;;  %4587 = vlog2.f32 %v2263_v24  ;;  %v7100_v24 = vmul.f32 0.17677669, %v3038_v20  ;;  %v8228_v20 = vld [vmem:[#allocation67_spill] sm:$0xff]  ;;  %v1655_v18 = vmul.f32 1e-08, %v7057_v49 }
 0x578   : > { %v4578_v31 = vpop.eup %4577  ;;  %v3275_v36 = vadd.f32 %v8223_v44, %v3259_v22  ;;  %1754 = vadd.xlane.f32.xlu1 %v1731_v54  ;;  %4589 = vlog2.f32 %v1669_v3  ;;  %v1654_v22 = vmul.f32 1e-08, %v7011_v62  ;;  %v8233_v62 = vld [vmem:[#allocation86_spill] sm:$0xff] }
 0x579   : > { %v4580_v13 = vpop.eup %4579  ;;  %v3023_v21 = vpop.xlane.xlu1 %3022  ;;  %v2289_v43 = vmul.f32 0.6931472, %v4578_v31 }
 0x57a   : > { %4591 = vlog2.f32 %v3275_v36  ;;  %v7094_v63 = vpop.xlane.xlu0 %1636  ;;  %v3301_v23 = vmul.f32 0.6931472, %v4580_v13  ;;  %v7103_v3 = vpop.eup %4581  ;;  %v1716_v36 = vsub.f32 %v8228_v20, %v1693_v17  ;;  %v3039_v42 = vsub.f32 %v8233_v62, %v3023_v21  ;;  %v8236_v21 = vld [vmem:[#allocation74_spill] sm:$0xff] }
 0x57b   : > { %8224 = vst [vmem:[#allocation52_spill] sm:$0xff] %v7094_v63  ;;  %2346 = vadd.xlane.f32.xlu0 %v6992_v34  ;;  %v2310_v4 = vsub.f32 %v6891_v52, %v2289_v43  ;;  %v7112_v31 = vpop.eup %4583  ;;  %v8226_v52 = vld [vmem:[#allocation93_spill] sm:$0xff]  ;;  %4593 = vpow2.f32 %v2072_v59 }
 0x57c   : > { %3358 = vadd.xlane.f32.xlu1 %v7003_v5  ;;  %v3322_v34 = vsub.f32 %v6906_v45, %v3301_v23  ;;  %v1435_v44 = vsub.f32 %v8227_v33, %v8226_v52  ;;  %v4926_v5 = vld [vmem:[%s5391_s29 + $0xf8] sm:$0xff]  ;;  %4595 = vpow2.f32 %v1480_v32  ;;  %v7126_v45 = vpop.eup %4585  ;;  %v8230_v23 = vld [vmem:[#allocation75_spill] sm:$0xff]  ;;  %v8232_v33 = vld [vmem:[#allocation49_spill] sm:$0xff] }
 0x57d   : > { %v7106_v54 = vpop.xlane.xlu1 %2228  ;;  %v7109_v60 = vmul.f32 %v6963_v10, %v2310_v4  ;;  %v2027_v13 = vsub.f32 %v4926_v5, %v2011_v15  ;;  %v3084_v10 = vmul.f32 1.442695, %v7100_v24  ;;  %v1670_v52 = vadd.f32 %v8230_v23, %v1654_v22 }
 0x57e   : > { %8225 = vst [vmem:[#allocation78_spill] sm:$0xff] %v7106_v54  ;;  %v7120_v43 = vmul.f32 %v6980_v50, %v3322_v34  ;;  %v7123_v4 = vpop.xlane.xlu0 %3240  ;;  %v7131_v15 = vmul.f32 0.17677669, %v1435_v44  ;;  %v1732_v20 = vmul.f32 %v8232_v33, %v1716_v36 }
 0x57f   : > { %1510 = vadd.xlane.f32.xlu0 %v7112_v31  ;;  %8229 = vst [vmem:[#allocation61_spill] sm:$0xff] %v7123_v4  ;;  %v7134_v34 = vmul.f32 0.5, %v2027_v13  ;;  %4597 = vpow2.f32 %v3084_v10 }
 0x580   : > { %2102 = vadd.xlane.f32.xlu1 %v7103_v3  ;;  %4599 = vlog2.f32 %v1670_v52  ;;  %v1482_v36 = vmul.f32 1.442695, %v7131_v15  ;;  %v1671_v52 = vadd.f32 %v8236_v21, %v1655_v18  ;;  %v8242_v21 = vld [vmem:[#allocation24_spill] sm:$0xff] }
 0x581   : > { %v7129_v17 = vpop.xlane.xlu1 %1638  ;;  %v4588_v59 = vpop.eup %4587 }
 0x582   : > { %8231 = vst [vmem:[#allocation29_spill] sm:$0xff] %v7129_v17  ;;  %v4590_v50 = vpop.eup %4589  ;;  %v2291_v32 = vmul.f32 0.6931472, %v4588_v59  ;;  %v7143_v13 = vpop.xlane.xlu0 %2230  ;;  %v2074_v59 = vmul.f32 1.442695, %v7134_v34  ;;  %4601 = vpow2.f32 %v1482_v36 }
 0x583   : > { %3114 = vadd.xlane.f32.xlu0 %v7126_v45  ;;  %8235 = vst [vmem:[#allocation69_spill] sm:$0xff] %v7143_v13  ;;  %v1695_v33 = vmul.f32 0.6931472, %v4590_v50 }
 0x584   : > { %v4592_v5 = vpop.eup %4591  ;;  %1756 = vadd.xlane.f32.xlu1 %v1732_v20  ;;  %v2311_v44 = vsub.f32 %v6931_v7, %v2291_v32  ;;  %v7152_v20 = vmul.f32 0.17677669, %v3039_v42  ;;  %v1656_v32 = vmul.f32 1e-08, %v7094_v63  ;;  %4603 = vpow2.f32 %v2074_v59 }
 0x585   : > { %v7139_v22 = vpop.xlane.xlu1 %3242  ;;  %v3303_v23 = vmul.f32 0.6931472, %v4592_v5  ;;  %v7155_v7 = vpop.eup %4593  ;;  %4605 = vlog2.f32 %v1671_v52 }
 0x586   : > { %8234 = vst [vmem:[#allocation31_spill] sm:$0xff] %v7139_v22  ;;  %v7148_v10 = vmul.f32 %v6998_v48, %v2311_v44  ;;  %v7161_v5 = vpop.eup %4595  ;;  %v8237_v48 = vld [vmem:[#allocation64_spill] sm:$0xff]  ;;  %v3086_v42 = vmul.f32 1.442695, %v7152_v20  ;;  %v7169_v18 = vpop.xlane.xlu0 %1640 }
 0x587   : > { %2348 = vadd.xlane.f32.xlu0 %v7029_v55  ;;  %v3323_v62 = vsub.f32 %v6959_v37, %v3303_v23  ;;  %v1717_v55 = vsub.f32 %v8237_v48, %v1695_v33  ;;  %8239 = vst [vmem:[#allocation81_spill] sm:$0xff] %v7169_v18  ;;  %v3260_v23 = vmul.f32 1e-08, %v7123_v4  ;;  %v8241_v33 = vld [vmem:[#allocation76_spill] sm:$0xff]  ;;  %v1657_v48 = vmul.f32 1e-08, %v7129_v17 }
 0x588   : > { %3360 = vadd.xlane.f32.xlu1 %v7042_v14  ;;  %v2248_v14 = vmul.f32 1e-08, %v7106_v54  ;;  %4607 = vpow2.f32 %v3086_v42  ;;  %v8243_v54 = vld [vmem:[#allocation45_spill] sm:$0xff]  ;;  %v8246_v42 = vld [vmem:[#allocation43_spill] sm:$0xff] }
 0x589   : > { %v7159_v50 = vmul.f32 %v7032_v27, %v3323_v62  ;;  %v7164_v37 = vpop.xlane.xlu1 %2232  ;;  %v8240_v27 = vld [vmem:[#allocation39_spill] sm:$0xff]  ;;  %v7174_v36 = vpop.eup %4597  ;;  %v1733_v59 = vmul.f32 %v8241_v33, %v1717_v55  ;;  %v3276_v63 = vadd.f32 %v8243_v54, %v3260_v23  ;;  %v3261_v33 = vmul.f32 1e-08, %v7139_v22 }
 0x58a   : > { %8238 = vst [vmem:[#allocation50_spill] sm:$0xff] %v7164_v37  ;;  %v1672_v44 = vadd.f32 %v8240_v27, %v1656_v32  ;;  %v4600_v62 = vpop.eup %4599  ;;  %v2264_v52 = vadd.f32 %v8242_v21, %v2248_v14  ;;  %v2249_v32 = vmul.f32 1e-08, %v7143_v13  ;;  %v7184_v4 = vpop.xlane.xlu0 %3244  ;;  %v1673_v14 = vadd.f32 %v8246_v42, %v1657_v48  ;;  %v8247_v54 = vld [vmem:[#allocation23_spill] sm:$0xff] }
 0x58b   : > { %1512 = vadd.xlane.f32.xlu0 %v7161_v5  ;;  %8245 = vst [vmem:[#allocation18_spill] sm:$0xff] %v7184_v4  ;;  %v1697_v49 = vmul.f32 0.6931472, %v4600_v62  ;;  %v8248_v62 = vld [vmem:[#allocation90_spill] sm:$0xff]  ;;  %v2250_v42 = vmul.f32 1e-08, %v7164_v37 }
 0x58c   : > { %2104 = vadd.xlane.f32.xlu1 %v7155_v7  ;;  %4609 = vlog2.f32 %v1672_v44  ;;  %v7187_v55 = vpop.eup %4601  ;;  %v2265_v23 = vadd.f32 %v8247_v54, %v2249_v32  ;;  %v3262_v54 = vmul.f32 1e-08, %v7184_v4 }
 0x58d   : > { %v7182_v27 = vpop.xlane.xlu1 %1642  ;;  %4611 = vlog2.f32 %v2264_v52  ;;  %v1718_v13 = vsub.f32 %v8248_v62, %v1697_v49  ;;  %v8249_v52 = vld [vmem:[#allocation26_spill] sm:$0xff]  ;;  %v8252_v62 = vld [vmem:[#allocation77_spill] sm:$0xff] }
 0x58e   : > { %8244 = vst [vmem:[#allocation82_spill] sm:$0xff] %v7182_v27  ;;  %v7192_v44 = vpop.eup %4603  ;;  %4613 = vlog2.f32 %v3276_v63  ;;  %v3277_v48 = vadd.f32 %v8249_v52, %v3261_v33  ;;  %v8251_v63 = vld [vmem:[#allocation80_spill] sm:$0xff]  ;;  %v1659_v52 = vmul.f32 1e-08, %v7182_v27 }
 0x58f   : > { %3116 = vadd.xlane.f32.xlu0 %v7174_v36  ;;  %v4606_v21 = vpop.eup %4605  ;;  %4615 = vlog2.f32 %v1673_v14  ;;  %v1734_v22 = vmul.f32 %v8252_v62, %v1718_v13  ;;  %v8253_v14 = vld [vmem:[#allocation83_spill] sm:$0xff] }
 0x590   : > { %1758 = vadd.xlane.f32.xlu1 %v1733_v59  ;;  %v1658_v59 = vmul.f32 1e-08, %v7169_v18  ;;  %4617 = vlog2.f32 %v2265_v23  ;;  %v1699_v18 = vmul.f32 0.6931472, %v4606_v21  ;;  %v2266_v33 = vadd.f32 %v8253_v14, %v2250_v42  ;;  %v8254_v23 = vld [vmem:[#allocation94_spill] sm:$0xff] }
 0x591   : > { %4619 = vlog2.f32 %v3277_v48  ;;  %v3278_v37 = vadd.f32 %v8254_v23, %v3262_v54  ;;  %v8255_v48 = vld [vmem:[#allocation95_spill] sm:$0xff] }
 0x592   : > { %v1674_v32 = vadd.f32 %v8251_v63, %v1658_v59  ;;  %v7207_v49 = vpop.eup %4607  ;;  %v1719_v21 = vsub.f32 %v6939_v39, %v1699_v18  ;;  %v1675_v42 = vadd.f32 %v8255_v48, %v1659_v52 }
 0x593   : > { %2350 = vadd.xlane.f32.xlu0 %v7074_v30  ;;  %v7197_v30 = vpop.xlane.xlu1 %3246 }
 0x594   : > { %3362 = vadd.xlane.f32.xlu1 %v7088_v0  ;;  %v7202_v0 = vpop.xlane.xlu0 %2234  ;;  %4621 = vlog2.f32 %v1674_v32  ;;  %v8256_v32 = vld [vmem:[#allocation96_spill] sm:$0xff]  ;;  %v1735_v14 = vmul.f32 %v7013_v2, %v1719_v21 }
 0x595   : > { %8250 = vst [vmem:[#allocation73_spill] sm:$0xff] %v7202_v0  ;;  %v2251_v59 = vmul.f32 1e-08, %v7202_v0  ;;  %4623 = vlog2.f32 %v2266_v33 }
 0x596   : > { %v4610_v17 = vpop.eup %4609  ;;  %4625 = vlog2.f32 %v3278_v37 }
 0x597   : > { %1514 = vadd.xlane.f32.xlu0 %v7187_v55  ;;  %v7215_v63 = vpop.xlane.xlu1 %2078  ;;  %v4612_v4 = vpop.eup %4611  ;;  %v1701_v62 = vmul.f32 0.6931472, %v4610_v17  ;;  %v2267_v54 = vadd.f32 %v8256_v32, %v2251_v59  ;;  %4627 = vlog2.f32 %v1675_v42 }
 0x598   : > { %2106 = vadd.xlane.f32.xlu1 %v7192_v44  ;;  %v7218_v13 = vpop.xlane.xlu0 %2076  ;;  %v4614_v28 = vpop.eup %4613  ;;  %v2293_v39 = vmul.f32 0.6931472, %v4612_v4 }
 0x599   : > { %v4616_v18 = vpop.eup %4615  ;;  %v3305_v23 = vmul.f32 0.6931472, %v4614_v28  ;;  %v1720_v17 = vsub.f32 %v6983_v56, %v1701_v62  ;;  %4629 = vlog2.f32 %v2267_v54 }
 0x59a   : > { %v4618_v0 = vpop.eup %4617  ;;  %v2312_v2 = vsub.f32 %v6985_v61, %v2293_v39  ;;  %v8258_v39 = vld [vmem:[#allocation35_spill] sm:$0xff] }
 0x59b   : > { %3118 = vadd.xlane.f32.xlu0 %v7207_v49  ;;  %v7227_v27 = vpop.xlane.xlu1 %3090  ;;  %v4620_v4 = vpop.eup %4619  ;;  %v2295_v37 = vmul.f32 0.6931472, %v4618_v0  ;;  %v1736_v28 = vmul.f32 %v7062_v1, %v1720_v17  ;;  %v3324_v56 = vsub.f32 %v7006_v25, %v3305_v23  ;;  %v8259_v17 = vld [vmem:[#allocation34_spill] sm:$0xff] }
 0x59c   : > { %1760 = vadd.xlane.f32.xlu1 %v1734_v22  ;;  %v3263_v22 = vmul.f32 1e-08, %v7197_v30  ;;  %v7230_v52 = vpop.xlane.xlu0 %3088  ;;  %v3307_v62 = vmul.f32 0.6931472, %v4620_v4  ;;  %v8261_v4 = vld [vmem:[#allocation99_spill] sm:$0xff] }
 0x59d   : > { %v3340_v1 = vmul.f32 %v7080_v38, %v3324_v56  ;;  %v2313_v25 = vsub.f32 %v7036_v40, %v2295_v37  ;;  %v8262_v37 = vld [vmem:[#allocation100_spill] sm:$0xff] }
 0x59e   : > { %v4622_v59 = vpop.eup %4621  ;;  %v3325_v54 = vsub.f32 %v7049_v12, %v3307_v62 }
 0x59f   : > { %2352 = vadd.xlane.f32.xlu0 %v7109_v60  ;;  %v8257_v60 = vld [vmem:[#allocation97_spill] sm:$0xff]  ;;  %v7239_v48 = vpop.xlane.xlu1 %3092  ;;  %v4624_v42 = vpop.eup %4623  ;;  %v1705_v0 = vmul.f32 0.6931472, %v4622_v59 }
 0x5a0   : > { %3364 = vadd.xlane.f32.xlu1 %v7120_v43  ;;  %v3279_v33 = vadd.f32 %v8257_v60, %v3263_v22  ;;  %v1703_v43 = vmul.f32 0.6931472, %v4616_v18  ;;  %v7237_v21 = vpop.xlane.xlu0 %2080  ;;  %v4626_v22 = vpop.eup %4625 }
 0x5a1   : > { %v1722_v38 = vsub.f32 %v7090_v53, %v1705_v0 }
 0x5a2   : > { %4631 = vlog2.f32 %v3279_v33  ;;  %v1721_v61 = vsub.f32 %v7044_v29, %v1703_v43  ;;  %v2329_v29 = vmul.f32 %v7103_v3, %v2313_v25  ;;  %v8260_v3 = vld [vmem:[#allocation98_spill] sm:$0xff] }
 0x5a3   : > { %1762 = vadd.xlane.f32.xlu0 %v1735_v14  ;;  %v4628_v14 = vpop.eup %4627  ;;  %4633 = vrcp.f32 %v8258_v39  ;;  %v7253_v40 = vpop.xlane.xlu1 %3094  ;;  %v1738_v43 = vmul.f32 %v7161_v5, %v1722_v38  ;;  %v8263_v5 = vld [vmem:[#allocation101_spill] sm:$0xff] }
 0x5a4   : > { %2354 = vadd.xlane.f32.xlu1 %v7148_v10  ;;  %v2328_v10 = vmul.f32 %v7054_v35, %v2312_v2  ;;  %v1737_v32 = vmul.f32 %v7112_v31, %v1721_v61  ;;  %v3309_v35 = vmul.f32 0.6931472, %v4626_v22  ;;  %v7248_v18 = vpop.xlane.xlu0 %2082  ;;  %v4630_v23 = vpop.eup %4629  ;;  %4635 = vlog2.f32 %v8258_v39 }
 0x5a5   : > { %4637 = vrcp.f32 %v8259_v17  ;;  %v1707_v12 = vmul.f32 0.6931472, %v4628_v14  ;;  %v3341_v31 = vmul.f32 %v7126_v45, %v3325_v54  ;;  %v2299_v53 = vmul.f32 0.6931472, %v4630_v23  ;;  %v8265_v14 = vld [vmem:[#allocation33_spill] sm:$0xff] }
 0x5a6   : > { %4639 = vlog2.f32 %v8259_v17  ;;  %v3326_v2 = vsub.f32 %v7100_v24, %v3309_v35 }
 0x5a7   : > { %3366 = vadd.xlane.f32.xlu0 %v7159_v50  ;;  %v2297_v50 = vmul.f32 0.6931472, %v4624_v42  ;;  %4641 = vlog2.f32 %v8260_v3  ;;  %v1723_v59 = vsub.f32 %v7131_v15, %v1707_v12  ;;  %v2315_v62 = vsub.f32 %v7134_v34, %v2299_v53 }
 0x5a8   : > { %1764 = vadd.xlane.f32.xlu1 %v1736_v28  ;;  %4643 = vlog2.f32 %v8261_v4  ;;  %v7264_v28 = vpop.xlane.xlu0 %2084  ;;  %v3342_v24 = vmul.f32 %v7174_v36, %v3326_v2 }
 0x5a9   : > { %v2314_v60 = vsub.f32 %v7084_v19, %v2297_v50  ;;  %4645 = vlog2.f32 %v8262_v37  ;;  %v7267_v19 = vpop.xlane.xlu1 %3096  ;;  %v1739_v15 = vmul.f32 %v7187_v55, %v1723_v59  ;;  %v2331_v34 = vmul.f32 %v7192_v44, %v2315_v62  ;;  %v8268_v59 = vld [vmem:[#allocation105_spill] sm:$0xff] }
 0x5aa   : > { %4647 = vlog2.f32 %v6698_v41 }
 0x5ab   : > { %2356 = vadd.xlane.f32.xlu0 %v2328_v10  ;;  %v2330_v56 = vmul.f32 %v7155_v7, %v2314_v60  ;;  %4649 = vlog2.f32 %v8263_v5  ;;  %v8264_v10 = vld [vmem:[#allocation102_spill] sm:$0xff] }
 0x5ac   : > { %3368 = vadd.xlane.f32.xlu1 %v3340_v1  ;;  %v4632_v33 = vpop.eup %4631  ;;  %4651 = vlog2.f32 %v8264_v10 }
 0x5ad   : > { %v3311_v45 = vmul.f32 0.6931472, %v4632_v33  ;;  %v4634_v61 = vpop.eup %4633  ;;  %4653 = vlog2.f32 %v7218_v13  ;;  %v8267_v33 = vld [vmem:[#allocation104_spill] sm:$0xff] }
 0x5ae   : > { %v4636_v42 = vpop.eup %4635  ;;  %4655 = vlog2.f32 %v7215_v63 }
 0x5af   : > { %1766 = vadd.xlane.f32.xlu0 %v1737_v32  ;;  %v3327_v36 = vsub.f32 %v7152_v20, %v3311_v45  ;;  %v4638_v0 = vpop.eup %4637  ;;  %4657 = vrcp.f32 %v7218_v13  ;;  %v1807_v23 = vmul.f32 0.6931472, %v4636_v42 }
 0x5b0   : > { %2358 = vadd.xlane.f32.xlu1 %v2329_v29  ;;  %v7276_v41 = vpop.xlane.xlu0 %2086  ;;  %v4640_v1 = vpop.eup %4639  ;;  %4659 = vrcp.f32 %v7215_v63 }
 0x5b1   : > { %v4642_v25 = vpop.eup %4641  ;;  %4661 = vlog2.f32 %v7230_v52  ;;  %v3343_v20 = vmul.f32 %v7207_v49, %v3327_v36  ;;  %v1805_v35 = vmul.f32 0.6931472, %v4640_v1 }
 0x5b2   : > { %v4644_v50 = vpop.eup %4643  ;;  %4663 = vlog2.f32 %v7227_v27  ;;  %v1853_v12 = vmul.f32 0.6931472, %v4642_v25 }
 0x5b3   : > { %3370 = vadd.xlane.f32.xlu0 %v3341_v31  ;;  %v4646_v13 = vpop.eup %4645  ;;  %4665 = vrcp.f32 %v7230_v52  ;;  %v8266_v52 = vld [vmem:[#allocation103_spill] sm:$0xff]  ;;  %v1855_v60 = vmul.f32 0.6931472, %v4644_v50 }
 0x5b4   : > { %1768 = vadd.xlane.f32.xlu1 %v1738_v43  ;;  %v7279_v7 = vpop.xlane.xlu1 %3098  ;;  %v4648_v44 = vpop.eup %4647  ;;  %4667 = vrcp.f32 %v7227_v27 }
 0x5b5   : > { %v4650_v63 = vpop.eup %4649  ;;  %4669 = vrcp.f32 %v8265_v14 }
 0x5b6   : > { %v4652_v54 = vpop.eup %4651  ;;  %4671 = vlog2.f32 %v8265_v14 }
 0x5b7   : > { %2360 = vadd.xlane.f32.xlu0 %v2330_v56  ;;  %v4654_v38 = vpop.eup %4653  ;;  %4673 = vlog2.f32 %v8266_v52  ;;  %v3459_v52 = vmul.f32 0.6931472, %v4652_v54 }
 0x5b8   : > { %3372 = vadd.xlane.f32.xlu1 %v3342_v24  ;;  %v4656_v17 = vpop.eup %4655  ;;  %4675 = vlog2.f32 %v8267_v33  ;;  %v2397_v37 = vmul.f32 0.6931472, %v4654_v38  ;;  %v8270_v33 = vld [vmem:[#allocation106_spill] sm:$0xff] }
 0x5b9   : > { %v4658_v27 = vpop.eup %4657  ;;  %4677 = vlog2.f32 %v7237_v21  ;;  %v2399_v24 = vmul.f32 0.6931472, %v4656_v17 }
 0x5ba   : > { %v4660_v43 = vpop.eup %4659  ;;  %4679 = vlog2.f32 %v8268_v59 }
 0x5bb   : > { %1770 = vadd.xlane.f32.xlu0 %v1739_v15  ;;  %v4662_v56 = vpop.eup %4661  ;;  %4681 = vrcp.f32 %v7237_v21 }
 0x5bc   : > { %2362 = vadd.xlane.f32.xlu1 %v2331_v34  ;;  %v7287_v22 = vpop.xlane.xlu0 %2088  ;;  %v4664_v10 = vpop.eup %4663  ;;  %4683 = vlog2.f32 %v7239_v48 }
 0x5bd   : > { %v7290_v55 = vpop.xlane.xlu1 %3100  ;;  %v4666_v36 = vpop.eup %4665  ;;  %4685 = vrcp.f32 %v7239_v48 }
 0x5be   : > { %v4668_v50 = vpop.eup %4667 }
 0x5bf   : > { %3374 = vadd.xlane.f32.xlu0 %v3343_v20  ;;  %v4670_v38 = vpop.eup %4669 }
 0x5c0   : > { %v1741_v32 = vpop.xlane.xlu0 %1740 }
 0x5c1   : > { %v1743_v39 = vpop.xlane.xlu1 %1742  ;;  %v1773_v29 = vmul.f32 %v4638_v0, %v1741_v32  ;;  %v2447_v0 = vmul.f32 0.6931472, %v4648_v44  ;;  %v8269_v44 = vld [vmem:[#allocation38_spill] sm:$0xff] }
 0x5c2   : > { %v1775_v49 = vmul.f32 %v4634_v61, %v1743_v39  ;;  %v2445_v61 = vmul.f32 0.6931472, %v4646_v13  ;;  %v3409_v39 = vmul.f32 0.6931472, %v4662_v56  ;;  %4687 = vrcp.f32 %v8269_v44 }
 0x5c3   : > { %v1836_v31 = vsub.f32 %v1773_v29, %v1805_v35  ;;  %v3411_v35 = vmul.f32 0.6931472, %v4664_v10  ;;  %4689 = vlog2.f32 %v8269_v44 }
 0x5c4   : > { %v1837_v3 = vsub.f32 %v1775_v49, %v1807_v23  ;;  %v2333_v53 = vpop.xlane.xlu0 %2332  ;;  %v3457_v23 = vmul.f32 0.6931472, %v4650_v63  ;;  %4691 = vlog2.f32 %v8270_v33 }
 0x5c5   : > { %v1884_v2 = vadd.f32 %v1853_v12, %v1836_v31  ;;  %v2335_v4 = vpop.xlane.xlu1 %2334  ;;  %v2365_v45 = vmul.f32 %v4658_v27, %v2333_v53  ;;  %v4672_v12 = vpop.eup %4671 }
 0x5c6   : > { %v1885_v5 = vadd.f32 %v1855_v60, %v1837_v3  ;;  %v2367_v62 = vmul.f32 %v4660_v43, %v2335_v4  ;;  %v4674_v48 = vpop.eup %4673 }
 0x5c7   : > { %v1900_v42 = vsel %vm888_vm1, %v1884_v2, 0.0  ;;  %v2428_v15 = vsub.f32 %v2365_v45, %v2397_v37  ;;  %v4676_v63 = vpop.eup %4675  ;;  %v8271_v2 = vld [vmem:[#allocation107_spill] sm:$0xff]  ;;  %v8272_v45 = vld [vmem:[#allocation108_spill] sm:$0xff] }
 0x5c8   : > { %v1901_v34 = vsel %vm888_vm1, %v1885_v5, 0.0  ;;  %v2429_v1 = vsub.f32 %v2367_v62, %v2399_v24  ;;  %v3345_v25 = vpop.xlane.xlu0 %3344  ;;  %4693 = vlog2.f32 %v8271_v2  ;;  %v4678_v37 = vpop.eup %4677 }
 0x5c9   : > { %v7305_v20 = vadd.f32 %v1901_v34, %v1900_v42  ;;  %v2476_v32 = vadd.f32 %v2445_v61, %v2428_v15  ;;  %v3347_v14 = vpop.xlane.xlu1 %3346  ;;  %v3377_v13 = vmul.f32 %v4666_v36, %v3345_v25  ;;  %4695 = vlog2.f32 %v8272_v45  ;;  %v4680_v56 = vpop.eup %4679 }
 0x5ca   : > { %v2477_v21 = vadd.f32 %v2447_v0, %v2429_v1  ;;  %v3379_v29 = vmul.f32 %v4668_v50, %v3347_v14  ;;  %4697 = vlog2.f32 %v7248_v18  ;;  %v4682_v24 = vpop.eup %4681  ;;  %v1809_v61 = vmul.f32 0.6931472, %v4672_v12 }
 0x5cb   : > { %v2492_v49 = vsel %vm888_vm1, %v2476_v32, 0.0  ;;  %v3440_v17 = vsub.f32 %v3377_v13, %v3409_v39  ;;  %4699 = vlog2.f32 %v7253_v40  ;;  %v4684_v15 = vpop.eup %4683  ;;  %v2401_v0 = vmul.f32 0.6931472, %v4678_v37  ;;  %v8273_v13 = vld [vmem:[#allocation20_spill] sm:$0xff] }
 0x5cc   : > { %v2493_v31 = vsel %vm888_vm1, %v2477_v21, 0.0  ;;  %v3441_v27 = vsub.f32 %v3379_v29, %v3411_v35  ;;  %v7312_v60 = vpop.xlane.xlu0 %2090  ;;  %4701 = vrcp.f32 %v7248_v18  ;;  %v1857_v34 = vmul.f32 0.6931472, %v4674_v48  ;;  %v4686_v25 = vpop.eup %4685  ;;  %v8274_v18 = vld [vmem:[#allocation40_spill] sm:$0xff] }
 0x5cd   : > { %v2494_v3 = vadd.f32 %v2493_v31, %v2492_v49  ;;  %v3488_v53 = vadd.f32 %v3457_v23, %v3440_v17  ;;  %v7315_v43 = vpop.xlane.xlu1 %3102  ;;  %4703 = vrcp.f32 %v7253_v40  ;;  %v2449_v50 = vmul.f32 0.6931472, %v4676_v63  ;;  %v4688_v39 = vpop.eup %4687  ;;  %v8275_v37 = vld [vmem:[#allocation48_spill] sm:$0xff] }
 0x5ce   : > { %v3489_v4 = vadd.f32 %v3459_v52, %v3441_v27  ;;  %4705 = vrcp.f32 %v8273_v13  ;;  %v3413_v29 = vmul.f32 0.6931472, %v4684_v15  ;;  %v4690_v44 = vpop.eup %4689  ;;  %v3461_v40 = vmul.f32 0.6931472, %v4680_v56 }
 0x5cf   : > { %v3504_v54 = vsel %vm888_vm1, %v3488_v53, 0.0  ;;  %4707 = vrcp.f32 %v8274_v18  ;;  %v4692_v49 = vpop.eup %4691  ;;  %v1811_v45 = vmul.f32 0.6931472, %v4690_v44 }
 0x5d0   : > { %v3505_v59 = vsel %vm888_vm1, %v3489_v4, 0.0  ;;  %v1745_v5 = vpop.xlane.xlu0 %1744  ;;  %4709 = vlog2.f32 %v8274_v18 }
 0x5d1   : > { %v3506_v62 = vadd.f32 %v3505_v59, %v3504_v54  ;;  %v2337_v10 = vpop.xlane.xlu1 %2336  ;;  %v1777_v42 = vmul.f32 %v4670_v38, %v1745_v5  ;;  %4711 = vlog2.f32 %v6778_v51 }
 0x5d2   : > { %v2369_v36 = vmul.f32 %v4682_v24, %v2337_v10  ;;  %v4694_v52 = vpop.eup %4693  ;;  %4713 = vlog2.f32 %v7264_v28 }
 0x5d3   : > { %v1838_v1 = vsub.f32 %v1777_v42, %v1809_v61  ;;  %v4696_v33 = vpop.eup %4695  ;;  %4715 = vlog2.f32 %v8275_v37  ;;  %v8276_v61 = vld [vmem:[#allocation109_spill] sm:$0xff] }
 0x5d4   : > { %v2430_v32 = vsub.f32 %v2369_v36, %v2401_v0  ;;  %v3349_v14 = vpop.xlane.xlu0 %3348  ;;  %v4698_v4 = vpop.eup %4697  ;;  %4717 = vrcp.f32 %v7264_v28 }
 0x5d5   : > { %v1886_v21 = vadd.f32 %v1857_v34, %v1838_v1  ;;  %v7326_v35 = vpop.xlane.xlu1 %2092  ;;  %v3381_v38 = vmul.f32 %v4686_v25, %v3349_v14  ;;  %v4700_v56 = vpop.eup %4699  ;;  %4719 = vlog2.f32 %v7267_v19  ;;  %v2403_v15 = vmul.f32 0.6931472, %v4698_v4 }
 0x5d6   : > { %v2478_v23 = vadd.f32 %v2449_v50, %v2430_v32  ;;  %v4702_v59 = vpop.eup %4701  ;;  %4721 = vlog2.f32 %v8276_v61  ;;  %v3415_v34 = vmul.f32 0.6931472, %v4700_v56  ;;  %v2451_v25 = vmul.f32 0.6931472, %v4694_v52  ;;  %v8277_v32 = vld [vmem:[#allocation37_spill] sm:$0xff] }
 0x5d7   : > { %v1903_v17 = vsel %vm888_vm1, %v1886_v21, 0.0  ;;  %v3442_v12 = vsub.f32 %v3381_v38, %v3413_v29  ;;  %4723 = vrcp.f32 %v7267_v19  ;;  %v3463_v14 = vmul.f32 0.6931472, %v4696_v33 }
 0x5d8   : > { %v2495_v31 = vsel %vm888_vm1, %v2478_v23, 0.0  ;;  %v1904_v27 = vadd.f32 %v1903_v17, %v7305_v20  ;;  %v7334_v48 = vpop.xlane.xlu0 %3104  ;;  %v1859_v20 = vmul.f32 0.6931472, %v4692_v49  ;;  %4725 = vlog2.f32 %v8273_v13 }
 0x5d9   : > { %v2496_v53 = vadd.f32 %v2495_v31, %v2494_v3  ;;  %v3490_v63 = vadd.f32 %v3461_v40, %v3442_v12  ;;  %v1747_v2 = vpop.xlane.xlu1 %1746  ;;  %v4704_v3 = vpop.eup %4703  ;;  %4727 = vrcp.f32 %v8277_v32 }
 0x5da   : > { %v1779_v54 = vmul.f32 %v4688_v39, %v1747_v2  ;;  %v7343_v1 = vpop.eup %4705  ;;  %4729 = vlog2.f32 %v6820_v57 }
 0x5db   : > { %v3507_v51 = vsel %vm888_vm1, %v3490_v63, 0.0  ;;  %4731 = vlog2.f32 %v6822_v8 }
 0x5dc   : > { %v3508_v5 = vadd.f32 %v3507_v51, %v3506_v62  ;;  %v1839_v24 = vsub.f32 %v1779_v54, %v1811_v45  ;;  %v2339_v10 = vpop.xlane.xlu0 %2338  ;;  %v4708_v62 = vpop.eup %4707  ;;  %4733 = vlog2.f32 %v6838_v16 }
 0x5dd   : > { %v3351_v42 = vpop.xlane.xlu1 %3350  ;;  %v2371_v36 = vmul.f32 %v4702_v59, %v2339_v10  ;;  %v4710_v38 = vpop.eup %4709  ;;  %4735 = vlog2.f32 %v7276_v41 }
 0x5de   : > { %v1887_v0 = vadd.f32 %v1859_v20, %v1839_v24  ;;  %v3383_v28 = vmul.f32 %v4704_v3, %v3351_v42  ;;  %v4712_v23 = vpop.eup %4711  ;;  %4737 = vlog2.f32 %v7279_v7  ;;  %v1813_v63 = vmul.f32 0.6931472, %v4710_v38 }
 0x5df   : > { %v2431_v50 = vsub.f32 %v2371_v36, %v2403_v15  ;;  %v4714_v49 = vpop.eup %4713  ;;  %4739 = vrcp.f32 %v7276_v41  ;;  %v1861_v45 = vmul.f32 0.6931472, %v4712_v23  ;;  %v8279_v15 = vld [vmem:[#allocation19_spill] sm:$0xff] }
 0x5e0   : > { %v1905_v39 = vsel %vm888_vm1, %v1887_v0, 0.0  ;;  %v3443_v21 = vsub.f32 %v3383_v28, %v3415_v34  ;;  %v7348_v29 = vpop.xlane.xlu0 %2094  ;;  %v4716_v17 = vpop.eup %4715  ;;  %v2405_v4 = vmul.f32 0.6931472, %v4714_v49  ;;  %4741 = vrcp.f32 %v7279_v7 }
 0x5e1   : > { %v1906_v19 = vadd.f32 %v1905_v39, %v1904_v27  ;;  %v2479_v44 = vadd.f32 %v2451_v25, %v2431_v50  ;;  %v7351_v18 = vpop.xlane.xlu1 %3106  ;;  %v4718_v31 = vpop.eup %4717  ;;  %4743 = vlog2.f32 %v8277_v32 }
 0x5e2   : > { %v3491_v13 = vadd.f32 %v3463_v14, %v3443_v21  ;;  %v4720_v2 = vpop.eup %4719 }
 0x5e3   : > { %v2497_v40 = vsel %vm888_vm1, %v2479_v44, 0.0  ;;  %v4722_v37 = vpop.eup %4721  ;;  %v3417_v41 = vmul.f32 0.6931472, %v4720_v2 }
 0x5e4   : > { %v3509_v12 = vsel %vm888_vm1, %v3491_v13, 0.0  ;;  %v2498_v52 = vadd.f32 %v2497_v40, %v2496_v53  ;;  %v1749_v57 = vpop.xlane.xlu0 %1748  ;;  %v4724_v56 = vpop.eup %4723  ;;  %v2453_v53 = vmul.f32 0.6931472, %v4716_v17  ;;  %v3465_v36 = vmul.f32 0.6931472, %v4722_v37 }
 0x5e5   : > { %v3510_v27 = vadd.f32 %v3509_v12, %v3508_v5  ;;  %v2341_v33 = vpop.xlane.xlu1 %2340  ;;  %v1781_v8 = vmul.f32 %v4708_v62, %v1749_v57  ;;  %v4726_v20 = vpop.eup %4725  ;;  %v8278_v5 = vld [vmem:[#allocation42_spill] sm:$0xff] }
 0x5e6   : > { %v2373_v16 = vmul.f32 %v4718_v31, %v2341_v33  ;;  %4745 = vrcp.f32 %v8278_v5  ;;  %v7365_v61 = vpop.eup %4727  ;;  %v1815_v44 = vmul.f32 0.6931472, %v4726_v20 }
 0x5e7   : > { %v1840_v54 = vsub.f32 %v1781_v8, %v1813_v63  ;;  %4747 = vlog2.f32 %v8278_v5  ;;  %v4730_v42 = vpop.eup %4729 }
 0x5e8   : > { %v2432_v51 = vsub.f32 %v2373_v16, %v2405_v4  ;;  %v3353_v59 = vpop.xlane.xlu0 %3352  ;;  %4749 = vrcp.f32 %v8279_v15  ;;  %v4732_v28 = vpop.eup %4731  ;;  %v1863_v40 = vmul.f32 0.6931472, %v4730_v42  ;;  %v8280_v4 = vld [vmem:[#allocation44_spill] sm:$0xff] }
 0x5e9   : > { %v1888_v24 = vadd.f32 %v1861_v45, %v1840_v54  ;;  %v7363_v10 = vpop.xlane.xlu1 %2096  ;;  %v3385_v3 = vmul.f32 %v4724_v56, %v3353_v59  ;;  %4751 = vlog2.f32 %v8279_v15  ;;  %v4734_v32 = vpop.eup %4733  ;;  %v2455_v2 = vmul.f32 0.6931472, %v4732_v28 }
 0x5ea   : > { %v2480_v7 = vadd.f32 %v2453_v53, %v2432_v51  ;;  %4753 = vlog2.f32 %v6855_v26  ;;  %v4736_v38 = vpop.eup %4735  ;;  %v3467_v37 = vmul.f32 0.6931472, %v4734_v32 }
 0x5eb   : > { %v1907_v0 = vsel %vm888_vm1, %v1888_v24, 0.0  ;;  %v3444_v34 = vsub.f32 %v3385_v3, %v3417_v41  ;;  %4755 = vlog2.f32 %v6868_v47  ;;  %v4738_v13 = vpop.eup %4737  ;;  %v2407_v47 = vmul.f32 0.6931472, %v4736_v38 }
 0x5ec   : > { %v2499_v25 = vsel %vm888_vm1, %v2480_v7, 0.0  ;;  %v1908_v50 = vadd.f32 %v1907_v0, %v1906_v19  ;;  %v7372_v62 = vpop.xlane.xlu0 %3108  ;;  %4757 = vlog2.f32 %v6870_v46  ;;  %v4740_v19 = vpop.eup %4739 }
 0x5ed   : > { %v2500_v14 = vadd.f32 %v2499_v25, %v2498_v52  ;;  %v3492_v39 = vadd.f32 %v3465_v36, %v3444_v34  ;;  %v1751_v21 = vpop.xlane.xlu1 %1750  ;;  %4759 = vlog2.f32 %v7287_v22  ;;  %v4742_v52 = vpop.eup %4741 }
 0x5ee   : > { %v1783_v23 = vmul.f32 %v7343_v1, %v1751_v21  ;;  %4761 = vlog2.f32 %v7290_v55  ;;  %v7381_v33 = vpop.eup %4743  ;;  %v3419_v1 = vmul.f32 0.6931472, %v4738_v13 }
 0x5ef   : > { %v3511_v49 = vsel %vm888_vm1, %v3492_v39, 0.0  ;;  %4763 = vrcp.f32 %v7287_v22 }
 0x5f0   : > { %v3512_v17 = vadd.f32 %v3511_v49, %v3510_v27  ;;  %v1841_v26 = vsub.f32 %v1783_v23, %v1815_v44  ;;  %v2343_v12 = vpop.xlane.xlu0 %2342  ;;  %v4746_v8 = vpop.eup %4745  ;;  %4765 = vrcp.f32 %v7290_v55  ;;  %v8281_v55 = vld [vmem:[#allocation46_spill] sm:$0xff] }
 0x5f1   : > { %v3355_v57 = vpop.xlane.xlu1 %3354  ;;  %v2375_v31 = vmul.f32 %v4740_v19, %v2343_v12  ;;  %v4748_v16 = vpop.eup %4747  ;;  %4767 = vrcp.f32 %v8280_v4 }
 0x5f2   : > { %v1889_v46 = vadd.f32 %v1863_v40, %v1841_v26  ;;  %v3387_v63 = vmul.f32 %v4742_v52, %v3355_v57  ;;  %v7389_v53 = vpop.eup %4749  ;;  %4769 = vlog2.f32 %v8280_v4  ;;  %v1817_v25 = vmul.f32 0.6931472, %v4748_v16  ;;  %v8282_v52 = vld [vmem:[#allocation32_spill] sm:$0xff] }
 0x5f3   : > { %v2433_v27 = vsub.f32 %v2375_v31, %v2407_v47  ;;  %v7394_v20 = vpop.eup %4751  ;;  %4771 = vrcp.f32 %v8281_v55  ;;  %v8285_v4 = vld [vmem:[#allocation16_spill] sm:$0xff] }
 0x5f4   : > { %v1909_v45 = vsel %vm888_vm1, %v1889_v46, 0.0  ;;  %v3445_v54 = vsub.f32 %v3387_v63, %v3419_v1  ;;  %v7387_v56 = vpop.xlane.xlu0 %1506  ;;  %v4754_v24 = vpop.eup %4753  ;;  %4773 = vlog2.f32 %v8281_v55  ;;  %v8283_v46 = vld [vmem:[#allocation28_spill] sm:$0xff] }
 0x5f5   : > { %v1910_v22 = vadd.f32 %v1909_v45, %v1908_v50  ;;  %v2481_v51 = vadd.f32 %v2455_v2, %v2433_v27  ;;  %v7392_v59 = vpop.xlane.xlu1 %2098  ;;  %v4756_v3 = vpop.eup %4755  ;;  %4775 = vlog2.f32 %v6895_v58  ;;  %v1865_v58 = vmul.f32 0.6931472, %v4754_v24  ;;  %v8284_v2 = vld [vmem:[#allocation27_spill] sm:$0xff]  ;;  %v8287_v24 = vld [vmem:[#allocation30_spill] sm:$0xff] }
 0x5f6   : > { %v3493_v5 = vadd.f32 %v3467_v37, %v3445_v54  ;;  %v4758_v36 = vpop.eup %4757  ;;  %4777 = vlog2.f32 %v6897_v11  ;;  %v2457_v40 = vmul.f32 0.6931472, %v4756_v3  ;;  %v8286_v54 = vld [vmem:[#allocation51_spill] sm:$0xff] }
 0x5f7   : > { %v2501_v41 = vsel %vm888_vm1, %v2481_v51, 0.0  ;;  %v4760_v28 = vpop.eup %4759  ;;  %4779 = vlog2.f32 %v6914_v6  ;;  %v3469_v12 = vmul.f32 0.6931472, %v4758_v36  ;;  %v8288_v36 = vld [vmem:[#allocation79_spill] sm:$0xff] }
 0x5f8   : > { %v3513_v7 = vsel %vm888_vm1, %v3493_v5, 0.0  ;;  %v2502_v42 = vadd.f32 %v2501_v41, %v2500_v14  ;;  %v7401_v15 = vpop.xlane.xlu0 %3110  ;;  %v4762_v32 = vpop.eup %4761  ;;  %4781 = vlog2.f32 %v6933_v9  ;;  %v2409_v44 = vmul.f32 0.6931472, %v4760_v28 }
 0x5f9   : > { %v3514_v0 = vadd.f32 %v3513_v7, %v3512_v17  ;;  %v1753_v34 = vpop.xlane.xlu1 %1752  ;;  %v4764_v39 = vpop.eup %4763  ;;  %4783 = vlog2.f32 %v7312_v60  ;;  %v3421_v49 = vmul.f32 0.6931472, %v4762_v32 }
 0x5fa   : > { %v1785_v50 = vmul.f32 %v4746_v8, %v1753_v34  ;;  %v4766_v38 = vpop.eup %4765  ;;  %4785 = vlog2.f32 %v7315_v43  ;;  %v1819_v34 = vmul.f32 0.6931472, %v7381_v33 }
 0x5fb   : > { %v7408_v13 = vpop.eup %4767  ;;  %4787 = vrcp.f32 %v7312_v60 }
 0x5fc   : > { %v1842_v14 = vsub.f32 %v1785_v50, %v1817_v25  ;;  %v2345_v21 = vpop.xlane.xlu0 %2344  ;;  %v7411_v9 = vpop.eup %4769  ;;  %4789 = vrcp.f32 %v7315_v43  ;;  %v8289_v50 = vld [vmem:[#allocation57_spill] sm:$0xff] }
 0x5fd   : > { %v3357_v11 = vpop.xlane.xlu1 %3356  ;;  %v2377_v23 = vmul.f32 %v4764_v39, %v2345_v21  ;;  %v7414_v26 = vpop.eup %4771  ;;  %4791 = vlog2.f32 %v8282_v52 }
 0x5fe   : > { %v1890_v6 = vadd.f32 %v1865_v58, %v1842_v14  ;;  %v3389_v19 = vmul.f32 %v4766_v38, %v3357_v11  ;;  %v7420_v60 = vpop.eup %4773  ;;  %4793 = vlog2.f32 %v8283_v46 }
 0x5ff   : > { %v2434_v17 = vsub.f32 %v2377_v23, %v2409_v44  ;;  %v4776_v43 = vpop.eup %4775  ;;  %4795 = vlog2.f32 %v8284_v2  ;;  %v8292_v2 = vld [vmem:[#allocation66_spill] sm:$0xff] }
 0x600   : > { %v1911_v57 = vsel %vm888_vm1, %v1890_v6, 0.0  ;;  %v3446_v47 = vsub.f32 %v3389_v19, %v3421_v49  ;;  %v7418_v31 = vpop.xlane.xlu0 %1508  ;;  %v4778_v16 = vpop.eup %4777  ;;  %4797 = vlog2.f32 %v8285_v4  ;;  %v1867_v39 = vmul.f32 0.6931472, %v4776_v43  ;;  %v8293_v4 = vld [vmem:[#allocation52_spill] sm:$0xff] }
 0x601   : > { %v1912_v1 = vadd.f32 %v1911_v57, %v1910_v22  ;;  %v2482_v63 = vadd.f32 %v2457_v40, %v2434_v17  ;;  %v7423_v8 = vpop.xlane.xlu1 %2100  ;;  %v4780_v45 = vpop.eup %4779  ;;  %4799 = vlog2.f32 %v8286_v54  ;;  %v2459_v6 = vmul.f32 0.6931472, %v4778_v16  ;;  %v8290_v17 = vld [vmem:[#allocation55_spill] sm:$0xff]  ;;  %v8294_v54 = vld [vmem:[#allocation78_spill] sm:$0xff] }
 0x602   : > { %v3494_v27 = vadd.f32 %v3469_v12, %v3446_v47  ;;  %v4782_v22 = vpop.eup %4781  ;;  %4801 = vlog2.f32 %v8287_v24  ;;  %v3471_v40 = vmul.f32 0.6931472, %v4780_v45 }
 0x603   : > { %v2503_v37 = vsel %vm888_vm1, %v2482_v63, 0.0  ;;  %v4784_v7 = vpop.eup %4783  ;;  %4803 = vlog2.f32 %v8288_v36 }
 0x604   : > { %v3515_v51 = vsel %vm888_vm1, %v3494_v27, 0.0  ;;  %v2504_v55 = vadd.f32 %v2503_v37, %v2502_v42  ;;  %v7430_v5 = vpop.xlane.xlu0 %3112  ;;  %v4786_v25 = vpop.eup %4785  ;;  %4805 = vlog2.f32 %v8289_v50  ;;  %v2411_v21 = vmul.f32 0.6931472, %v4784_v7  ;;  %v8295_v7 = vld [vmem:[#allocation61_spill] sm:$0xff] }
 0x605   : > { %v3516_v41 = vadd.f32 %v3515_v51, %v3514_v0  ;;  %v1755_v3 = vpop.xlane.xlu1 %1754  ;;  %v4788_v32 = vpop.eup %4787  ;;  %4807 = vlog2.f32 %v7326_v35  ;;  %v1821_v50 = vmul.f32 0.6931472, %v7411_v9 }
 0x606   : > { %v1787_v28 = vmul.f32 %v7365_v61, %v1755_v3  ;;  %v4790_v14 = vpop.eup %4789  ;;  %4809 = vlog2.f32 %v7334_v48  ;;  %v3423_v61 = vmul.f32 0.6931472, %v4786_v25  ;;  %v8296_v25 = vld [vmem:[#allocation29_spill] sm:$0xff] }
 0x607   : > { %v4792_v11 = vpop.eup %4791  ;;  %4811 = vrcp.f32 %v7326_v35  ;;  %v8291_v35 = vld [vmem:[#allocation53_spill] sm:$0xff] }
 0x608   : > { %v1843_v42 = vsub.f32 %v1787_v28, %v1819_v34  ;;  %v2347_v58 = vpop.xlane.xlu0 %2346  ;;  %v4794_v23 = vpop.eup %4793  ;;  %4813 = vrcp.f32 %v7334_v48 }
 0x609   : > { %v3359_v0 = vpop.xlane.xlu1 %3358  ;;  %v2379_v38 = vmul.f32 %v4788_v32, %v2347_v58  ;;  %v7441_v19 = vpop.eup %4795  ;;  %4815 = vlog2.f32 %v8290_v17  ;;  %v3473_v17 = vmul.f32 0.6931472, %v4794_v23 }
 0x60a   : > { %v1891_v33 = vadd.f32 %v1867_v39, %v1843_v42  ;;  %v3391_v44 = vmul.f32 %v4790_v14, %v3359_v0  ;;  %v7447_v47 = vpop.eup %4797  ;;  %4817 = vlog2.f32 %v8291_v35  ;;  %v8297_v42 = vld [vmem:[#allocation69_spill] sm:$0xff] }
 0x60b   : > { %v2435_v49 = vsub.f32 %v2379_v38, %v2411_v21  ;;  %v7452_v48 = vpop.eup %4799  ;;  %4819 = vlog2.f32 %v8292_v2  ;;  %v8299_v2 = vld [vmem:[#allocation81_spill] sm:$0xff] }
 0x60c   : > { %v1913_v12 = vsel %vm888_vm1, %v1891_v33, 0.0  ;;  %v3447_v52 = vsub.f32 %v3391_v44, %v3423_v61  ;;  %v7445_v57 = vpop.xlane.xlu0 %1510  ;;  %v7455_v16 = vpop.eup %4801  ;;  %4821 = vlog2.f32 %v8293_v4 }
 0x60d   : > { %v1914_v46 = vadd.f32 %v1913_v12, %v1912_v1  ;;  %v2483_v63 = vadd.f32 %v2459_v6, %v2435_v49  ;;  %v7450_v43 = vpop.xlane.xlu1 %2102  ;;  %v7459_v45 = vpop.eup %4803  ;;  %4823 = vlog2.f32 %v8294_v54  ;;  %v8298_v12 = vld [vmem:[#allocation31_spill] sm:$0xff] }
 0x60e   : > { %v3495_v27 = vadd.f32 %v3471_v40, %v3447_v52  ;;  %v7465_v3 = vpop.eup %4805  ;;  %4825 = vlog2.f32 %v8295_v7 }
 0x60f   : > { %v2505_v37 = vsel %vm888_vm1, %v2483_v63, 0.0  ;;  %v4808_v28 = vpop.eup %4807  ;;  %4827 = vlog2.f32 %v8296_v25 }
 0x610   : > { %v3517_v1 = vsel %vm888_vm1, %v3495_v27, 0.0  ;;  %v2506_v51 = vadd.f32 %v2505_v37, %v2504_v55  ;;  %v7463_v24 = vpop.xlane.xlu0 %3114  ;;  %v4810_v39 = vpop.eup %4809  ;;  %4829 = vlog2.f32 %v8297_v42  ;;  %v1869_v55 = vmul.f32 0.6931472, %v4782_v22  ;;  %v8300_v37 = vld [vmem:[#allocation50_spill] sm:$0xff] }
 0x611   : > { %v3518_v36 = vadd.f32 %v3517_v1, %v3516_v41  ;;  %v1757_v34 = vpop.xlane.xlu1 %1756  ;;  %v4812_v58 = vpop.eup %4811  ;;  %4831 = vlog2.f32 %v7348_v29  ;;  %v2413_v38 = vmul.f32 0.6931472, %v4808_v28  ;;  %v3425_v44 = vmul.f32 0.6931472, %v4810_v39  ;;  %v8301_v1 = vld [vmem:[#allocation18_spill] sm:$0xff]  ;;  %v8303_v39 = vld [vmem:[#allocation73_spill] sm:$0xff] }
 0x612   : > { %v1789_v32 = vmul.f32 %v7408_v13, %v1757_v34  ;;  %v4814_v21 = vpop.eup %4813  ;;  %4833 = vlog2.f32 %v7351_v18  ;;  %v2461_v22 = vmul.f32 0.6931472, %v4792_v11  ;;  %v8302_v28 = vld [vmem:[#allocation82_spill] sm:$0xff] }
 0x613   : > { %v7474_v61 = vpop.eup %4815  ;;  %4835 = vrcp.f32 %v7348_v29 }
 0x614   : > { %v1844_v14 = vsub.f32 %v1789_v32, %v1821_v50  ;;  %v2349_v0 = vpop.xlane.xlu0 %2348  ;;  %v7477_v6 = vpop.eup %4817  ;;  %4837 = vrcp.f32 %v7351_v18 }
 0x615   : > { %v3361_v41 = vpop.xlane.xlu1 %3360  ;;  %v2381_v33 = vmul.f32 %v4812_v58, %v2349_v0  ;;  %v7480_v40 = vpop.eup %4819  ;;  %4839 = vlog2.f32 %v8298_v12  ;;  %v3475_v12 = vmul.f32 0.6931472, %v7452_v48 }
 0x616   : > { %v1892_v13 = vadd.f32 %v1869_v55, %v1844_v14  ;;  %v3393_v9 = vmul.f32 %v4814_v21, %v3361_v41  ;;  %v7486_v29 = vpop.eup %4821  ;;  %4841 = vlog2.f32 %v8299_v2  ;;  %v1823_v14 = vmul.f32 0.6931472, %v7394_v20 }
 0x617   : > { %v2436_v49 = vsub.f32 %v2381_v33, %v2413_v38  ;;  %v7491_v18 = vpop.eup %4823  ;;  %4843 = vlog2.f32 %v8300_v37 }
 0x618   : > { %v1915_v52 = vsel %vm888_vm1, %v1892_v13, 0.0  ;;  %v3448_v35 = vsub.f32 %v3393_v9, %v3425_v44  ;;  %v7484_v63 = vpop.xlane.xlu0 %1512  ;;  %v7494_v54 = vpop.eup %4825  ;;  %4845 = vlog2.f32 %v8301_v1 }
 0x619   : > { %v1916_v27 = vadd.f32 %v1915_v52, %v1914_v46  ;;  %v2484_v4 = vadd.f32 %v2461_v22, %v2436_v49  ;;  %v7489_v11 = vpop.xlane.xlu1 %2104  ;;  %v7498_v34 = vpop.eup %4827  ;;  %4847 = vlog2.f32 %v8302_v28 }
 0x61a   : > { %v3496_v23 = vadd.f32 %v3473_v17, %v3448_v35  ;;  %v7504_v32 = vpop.eup %4829  ;;  %4849 = vlog2.f32 %v8303_v39 }
 0x61b   : > { %v2507_v7 = vsel %vm888_vm1, %v2484_v4, 0.0  ;;  %v4832_v55 = vpop.eup %4831  ;;  %4851 = vlog2.f32 %v7197_v30 }
 0x61c   : > { %v3519_v46 = vsel %vm888_vm1, %v3496_v23, 0.0  ;;  %v2508_v25 = vadd.f32 %v2507_v7, %v2506_v51  ;;  %v7502_v50 = vpop.xlane.xlu0 %3116  ;;  %v4834_v21 = vpop.eup %4833  ;;  %4853 = vrcp.f32 %v7363_v10  ;;  %v1871_v51 = vmul.f32 0.6931472, %v7441_v19 }
 0x61d   : > { %v3520_v42 = vadd.f32 %v3519_v46, %v3518_v36  ;;  %v1759_v58 = vpop.xlane.xlu1 %1758  ;;  %v4836_v41 = vpop.eup %4835  ;;  %4855 = vlog2.f32 %v7363_v10  ;;  %v2415_v9 = vmul.f32 0.6931472, %v4832_v55  ;;  %v3427_v20 = vmul.f32 0.6931472, %v4834_v21 }
 0x61e   : > { %v1791_v0 = vmul.f32 %v7389_v53, %v1759_v58  ;;  %v4838_v13 = vpop.eup %4837  ;;  %4857 = vlog2.f32 %v7372_v62  ;;  %v2463_v19 = vmul.f32 0.6931472, %v7447_v47 }
 0x61f   : > { %v7514_v44 = vpop.eup %4839  ;;  %4859 = vrcp.f32 %v7372_v62 }
 0x620   : > { %v1845_v38 = vsub.f32 %v1791_v0, %v1823_v14  ;;  %v2351_v33 = vpop.xlane.xlu0 %2350  ;;  %v7517_v49 = vpop.eup %4841  ;;  %4861 = vlog2.f32 %v7392_v59 }
 0x621   : > { %v3363_v36 = vpop.xlane.xlu1 %3362  ;;  %v2383_v30 = vmul.f32 %v4836_v41, %v2351_v33  ;;  %v7521_v17 = vpop.eup %4843  ;;  %4863 = vlog2.f32 %v7387_v56  ;;  %v1873_v41 = vmul.f32 0.6931472, %v7455_v16 }
 0x622   : > { %v1893_v53 = vadd.f32 %v1871_v51, %v1845_v38  ;;  %v3395_v22 = vmul.f32 %v4838_v13, %v3363_v36  ;;  %v7528_v2 = vpop.eup %4845  ;;  %4865 = vlog2.f32 %v7401_v15  ;;  %v2465_v51 = vmul.f32 0.6931472, %v7459_v45 }
 0x623   : > { %v2437_v10 = vsub.f32 %v2383_v30, %v2415_v9  ;;  %v7535_v23 = vpop.eup %4847  ;;  %4867 = vrcp.f32 %v7387_v56  ;;  %v7568_v9 = vmul.f32 0.6931472, %v7491_v18 }
 0x624   : > { %v1917_v52 = vsel %vm888_vm1, %v1893_v53, 0.0  ;;  %v3449_v35 = vsub.f32 %v3395_v22, %v3427_v20  ;;  %v7526_v62 = vpop.xlane.xlu0 %1514  ;;  %v7538_v1 = vpop.eup %4849  ;;  %4869 = vrcp.f32 %v7392_v59  ;;  %v1825_v59 = vmul.f32 0.6931472, %v7420_v60 }
 0x625   : > { %v7531_v4 = vadd.f32 %v1917_v52, %v1916_v27  ;;  %v2485_v47 = vadd.f32 %v2463_v19, %v2437_v10  ;;  %v7533_v37 = vpop.xlane.xlu1 %2106  ;;  %v7542_v28 = vpop.eup %4851  ;;  %4871 = vlog2.f32 %v7418_v31  ;;  %v7572_v20 = vmul.f32 0.6931472, %v7494_v54 }
 0x626   : > { %v3497_v48 = vadd.f32 %v3475_v12, %v3449_v35  ;;  %v4854_v58 = vpop.eup %4853  ;;  %4873 = vrcp.f32 %v7401_v15  ;;  %v1875_v15 = vmul.f32 0.6931472, %v7474_v61 }
 0x627   : > { %v2509_v7 = vsel %vm888_vm1, %v2485_v47, 0.0  ;;  %v4856_v14 = vpop.eup %4855  ;;  %4875 = vlog2.f32 %v7423_v8 }
 0x628   : > { %v3521_v27 = vsel %vm888_vm1, %v3497_v48, 0.0  ;;  %v2510_v46 = vadd.f32 %v2509_v7, %v2508_v25  ;;  %v7546_v39 = vpop.xlane.xlu0 %3118  ;;  %v4858_v21 = vpop.eup %4857  ;;  %v3477_v25 = vmul.f32 0.6931472, %v7465_v3  ;;  %4877 = vrcp.f32 %v7418_v31 }
 0x629   : > { %v3522_v56 = vadd.f32 %v3521_v27, %v3520_v42  ;;  %v1761_v55 = vpop.xlane.xlu1 %1760  ;;  %v4860_v38 = vpop.eup %4859  ;;  %v2467_v42 = vmul.f32 0.6931472, %v7477_v6  ;;  %4879 = vrcp.f32 %v7423_v8  ;;  %v2417_v45 = vmul.f32 0.6931472, %v4856_v14 }
 0x62a   : > { %v1793_v0 = vmul.f32 %v7414_v26, %v1761_v55  ;;  %v4862_v13 = vpop.eup %4861  ;;  %v7560_v26 = vmul.f32 0.6931472, %v7480_v40  ;;  %4881 = vlog2.f32 %v7430_v5  ;;  %v7564_v31 = vmul.f32 0.6931472, %v7486_v29 }
 0x62b   : > { %v4864_v36 = vpop.eup %4863  ;;  %4883 = vrcp.f32 %v7430_v5  ;;  %v3429_v6 = vmul.f32 0.6931472, %v4858_v21  ;;  %v2419_v22 = vmul.f32 0.6931472, %v4862_v13 }
 0x62c   : > { %v1846_v33 = vsub.f32 %v1793_v0, %v1825_v59  ;;  %v2353_v60 = vpop.xlane.xlu0 %2352  ;;  %v4866_v8 = vpop.eup %4865  ;;  %4885 = vrcp.f32 %v7445_v57  ;;  %v1827_v18 = vmul.f32 0.6931472, %v4864_v36 }
 0x62d   : > { %v3365_v16 = vpop.xlane.xlu1 %3364  ;;  %v2385_v3 = vmul.f32 %v4854_v58, %v2353_v60  ;;  %v4868_v53 = vpop.eup %4867  ;;  %4887 = vlog2.f32 %v7445_v57  ;;  %v3431_v7 = vmul.f32 0.6931472, %v4866_v8 }
 0x62e   : > { %v3397_v61 = vmul.f32 %v4860_v38, %v3365_v16  ;;  %v1894_v40 = vadd.f32 %v1873_v41, %v1846_v33  ;;  %v4870_v5 = vpop.eup %4869  ;;  %4889 = vlog2.f32 %v7450_v43 }
 0x62f   : > { %v2438_v30 = vsub.f32 %v2385_v3, %v2417_v45  ;;  %v4872_v35 = vpop.eup %4871  ;;  %4891 = vlog2.f32 %v7463_v24 }
 0x630   : > { %v3450_v29 = vsub.f32 %v3397_v61, %v3429_v6  ;;  %v1763_v19 = vpop.xlane.xlu0 %1762  ;;  %v4874_v54 = vpop.eup %4873  ;;  %4893 = vrcp.f32 %v7450_v43  ;;  %v1919_v57 = vsel %vm888_vm1, %v1894_v40, 0.0  ;;  %v1829_v33 = vmul.f32 0.6931472, %v4872_v35 }
 0x631   : > { %v2486_v10 = vadd.f32 %v2465_v51, %v2438_v30  ;;  %v2355_v12 = vpop.xlane.xlu1 %2354  ;;  %v1795_v52 = vmul.f32 %v4868_v53, %v1763_v19  ;;  %v4876_v55 = vpop.eup %4875  ;;  %4895 = vlog2.f32 %v7484_v63  ;;  %v1920_v13 = vadd.f32 %v1919_v57, %v7531_v4 }
 0x632   : > { %v3498_v47 = vadd.f32 %v3477_v25, %v3450_v29  ;;  %v2387_v48 = vmul.f32 %v4870_v5, %v2355_v12  ;;  %v4878_v41 = vpop.eup %4877  ;;  %4897 = vrcp.f32 %v7463_v24  ;;  %v2421_v61 = vmul.f32 0.6931472, %v4876_v55 }
 0x633   : > { %v2511_v27 = vsel %vm888_vm1, %v2486_v10, 0.0  ;;  %v1847_v58 = vsub.f32 %v1795_v52, %v1827_v18  ;;  %v4880_v43 = vpop.eup %4879  ;;  %4899 = vrcp.f32 %v7484_v63  ;;  %v1879_v29 = vmul.f32 0.6931472, %v7498_v34 }
 0x634   : > { %v3523_v14 = vsel %vm888_vm1, %v3498_v47, 0.0  ;;  %v2512_v59 = vadd.f32 %v2511_v27, %v2510_v46  ;;  %v2439_v0 = vsub.f32 %v2387_v48, %v2419_v22  ;;  %v3367_v21 = vpop.xlane.xlu0 %3366  ;;  %v4882_v3 = vpop.eup %4881  ;;  %4901 = vlog2.f32 %v7489_v11 }
 0x635   : > { %v3524_v51 = vadd.f32 %v3523_v14, %v3522_v56  ;;  %v1895_v25 = vadd.f32 %v1875_v15, %v1847_v58  ;;  %v1765_v38 = vpop.xlane.xlu1 %1764  ;;  %v3399_v60 = vmul.f32 %v4874_v54, %v3367_v21  ;;  %v4884_v6 = vpop.eup %4883  ;;  %4903 = vlog2.f32 %v7502_v50 }
 0x636   : > { %v2487_v16 = vadd.f32 %v2467_v42, %v2439_v0  ;;  %v1797_v45 = vmul.f32 %v4878_v41, %v1765_v38  ;;  %v4886_v24 = vpop.eup %4885  ;;  %4905 = vrcp.f32 %v7489_v11  ;;  %v3433_v19 = vmul.f32 0.6931472, %v4882_v3 }
 0x637   : > { %v1921_v46 = vsel %vm888_vm1, %v1895_v25, 0.0  ;;  %v3451_v36 = vsub.f32 %v3399_v60, %v3431_v7  ;;  %v4888_v53 = vpop.eup %4887  ;;  %4907 = vrcp.f32 %v7502_v50 }
 0x638   : > { %v2513_v56 = vsel %vm888_vm1, %v2487_v16, 0.0  ;;  %v1922_v15 = vadd.f32 %v1921_v46, %v1920_v13  ;;  %v1848_v8 = vsub.f32 %v1797_v45, %v1829_v33  ;;  %v2357_v40 = vpop.xlane.xlu0 %2356  ;;  %v4890_v5 = vpop.eup %4889  ;;  %4909 = vlog2.f32 %v7526_v62 }
 0x639   : > { %v2514_v4 = vadd.f32 %v2513_v56, %v2512_v59  ;;  %v3499_v42 = vadd.f32 %v7560_v26, %v3451_v36  ;;  %v3369_v30 = vpop.xlane.xlu1 %3368  ;;  %v2389_v63 = vmul.f32 %v4880_v43, %v2357_v40  ;;  %v4892_v52 = vpop.eup %4891  ;;  %v2471_v26 = vmul.f32 0.6931472, %v7504_v32 }
 0x63a   : > { %v3401_v22 = vmul.f32 %v4884_v6, %v3369_v30  ;;  %v1896_v10 = vadd.f32 %v7564_v31, %v1848_v8  ;;  %v4894_v48 = vpop.eup %4893  ;;  %4911 = vlog2.f32 %v7533_v37  ;;  %v1831_v50 = vmul.f32 0.6931472, %v4888_v53 }
 0x63b   : > { %v3525_v12 = vsel %vm888_vm1, %v3499_v42, 0.0  ;;  %v2440_v18 = vsub.f32 %v2389_v63, %v2421_v61  ;;  %v4896_v31 = vpop.eup %4895  ;;  %4913 = vrcp.f32 %v7526_v62  ;;  %v2423_v27 = vmul.f32 0.6931472, %v4890_v5 }
 0x63c   : > { %v3526_v35 = vadd.f32 %v3525_v12, %v3524_v51  ;;  %v3452_v47 = vsub.f32 %v3401_v22, %v3433_v19  ;;  %v1767_v34 = vpop.xlane.xlu0 %1766  ;;  %4915 = vrcp.f32 %v7533_v37  ;;  %v1923_v58 = vsel %vm888_vm1, %v1896_v10, 0.0  ;;  %v4898_v59 = vpop.eup %4897 }
 0x63d   : > { %v2488_v11 = vadd.f32 %v7568_v9, %v2440_v18  ;;  %v2359_v7 = vpop.xlane.xlu1 %2358  ;;  %v1799_v54 = vmul.f32 %v4886_v24, %v1767_v34  ;;  %v3435_v14 = vmul.f32 0.6931472, %v4892_v52  ;;  %4917 = vlog2.f32 %v7546_v39  ;;  %v4900_v62 = vpop.eup %4899 }
 0x63e   : > { %v3500_v57 = vadd.f32 %v7572_v20, %v3452_v47  ;;  %v2391_v32 = vmul.f32 %v4894_v48, %v2359_v7  ;;  %v1833_v38 = vmul.f32 0.6931472, %v4896_v31  ;;  %v4902_v37 = vpop.eup %4901  ;;  %4919 = vrcp.f32 %v7546_v39 }
 0x63f   : > { %v1849_v55 = vsub.f32 %v1799_v54, %v1831_v50  ;;  %v2515_v0 = vsel %vm888_vm1, %v2488_v11, 0.0  ;;  %v1924_v60 = vadd.f32 %v1923_v58, %v1922_v15  ;;  %v4904_v16 = vpop.eup %4903  ;;  %v3483_v45 = vmul.f32 0.6931472, %v7514_v44 }
 0x640   : > { %v3527_v9 = vsel %vm888_vm1, %v3500_v57, 0.0  ;;  %v2441_v21 = vsub.f32 %v2391_v32, %v2423_v27  ;;  %v3371_v41 = vpop.xlane.xlu0 %3370  ;;  %v2516_v3 = vadd.f32 %v2515_v0, %v2514_v4  ;;  %v4906_v61 = vpop.eup %4905  ;;  %v1881_v6 = vmul.f32 0.6931472, %v7517_v49 }
 0x641   : > { %v3528_v51 = vadd.f32 %v3527_v9, %v3526_v35  ;;  %v1897_v20 = vadd.f32 %v1879_v29, %v1849_v55  ;;  %v1769_v25 = vpop.xlane.xlu1 %1768  ;;  %v3403_v33 = vmul.f32 %v4898_v59, %v3371_v41  ;;  %v4908_v42 = vpop.eup %4907  ;;  %v2425_v63 = vmul.f32 0.6931472, %v4902_v37 }
 0x642   : > { %v2489_v43 = vadd.f32 %v2471_v26, %v2441_v21  ;;  %v1801_v13 = vmul.f32 %v4900_v62, %v1769_v25  ;;  %v4910_v29 = vpop.eup %4909  ;;  %v3437_v22 = vmul.f32 0.6931472, %v4904_v16  ;;  %v2473_v5 = vmul.f32 0.6931472, %v7521_v17 }
 0x643   : > { %v1925_v46 = vsel %vm888_vm1, %v1897_v20, 0.0  ;;  %v3453_v36 = vsub.f32 %v3403_v33, %v3435_v14  ;;  %v3485_v18 = vmul.f32 0.6931472, %v7528_v2  ;;  %v1835_v7 = vmul.f32 0.6931472, %v4910_v29 }
 0x644   : > { %v2517_v56 = vsel %vm888_vm1, %v2489_v43, 0.0  ;;  %v1926_v8 = vadd.f32 %v1925_v46, %v1924_v60  ;;  %v1850_v40 = vsub.f32 %v1801_v13, %v1833_v38  ;;  %v2361_v24 = vpop.xlane.xlu0 %2360  ;;  %v4912_v19 = vpop.eup %4911  ;;  %v1883_v32 = vmul.f32 0.6931472, %v7535_v23 }
 0x645   : > { %v2518_v39 = vadd.f32 %v2517_v56, %v2516_v3  ;;  %v3501_v15 = vadd.f32 %v3483_v45, %v3453_v36  ;;  %v3373_v30 = vpop.xlane.xlu1 %3372  ;;  %v2393_v53 = vmul.f32 %v4906_v61, %v2361_v24  ;;  %v4914_v12 = vpop.eup %4913  ;;  %v2427_v17 = vmul.f32 0.6931472, %v4912_v19 }
 0x646   : > { %v1898_v44 = vadd.f32 %v1881_v6, %v1850_v40  ;;  %v3405_v4 = vmul.f32 %v4908_v42, %v3373_v30  ;;  %v4916_v34 = vpop.eup %4915  ;;  %v2475_v14 = vmul.f32 0.6931472, %v7538_v1  ;;  %v3487_v38 = vmul.f32 0.6931472, %v7542_v28 }
 0x647   : > { %v3529_v49 = vsel %vm888_vm1, %v3501_v15, 0.0  ;;  %v2442_v10 = vsub.f32 %v2393_v53, %v2425_v63  ;;  %v4918_v31 = vpop.eup %4917 }
 0x648   : > { %v1927_v52 = vsel %vm888_vm1, %v1898_v44, 0.0  ;;  %v3530_v26 = vadd.f32 %v3529_v49, %v3528_v51  ;;  %v3454_v35 = vsub.f32 %v3405_v4, %v3437_v22  ;;  %v1771_v47 = vpop.xlane.xlu0 %1770  ;;  %v4920_v55 = vpop.eup %4919  ;;  %v3439_v62 = vmul.f32 0.6931472, %v4918_v31 }
 0x649   : > { %v2490_v48 = vadd.f32 %v2473_v5, %v2442_v10  ;;  %v2363_v11 = vpop.xlane.xlu1 %2362  ;;  %v1803_v50 = vmul.f32 %v4914_v12, %v1771_v47  ;;  %v1928_v54 = vadd.f32 %v1927_v52, %v1926_v8 }
 0x64a   : > { %v3502_v57 = vadd.f32 %v3485_v18, %v3454_v35  ;;  %v2395_v27 = vmul.f32 %v4916_v34, %v2363_v11 }
 0x64b   : > { %v2519_v58 = vsel %vm888_vm1, %v2490_v48, 0.0  ;;  %v1851_v2 = vsub.f32 %v1803_v50, %v1835_v7 }
 0x64c   : > { %v3531_v59 = vsel %vm888_vm1, %v3502_v57, 0.0  ;;  %v2443_v9 = vsub.f32 %v2395_v27, %v2427_v17  ;;  %v3375_v0 = vpop.xlane.xlu0 %3374  ;;  %v2520_v21 = vadd.f32 %v2519_v58, %v2518_v39 }
 0x64d   : > { %v1899_v41 = vadd.f32 %v1883_v32, %v1851_v2  ;;  %v3407_v51 = vmul.f32 %v4920_v55, %v3375_v0  ;;  %v3532_v20 = vadd.f32 %v3531_v59, %v3530_v26 }
 0x64e   : > { %v2491_v25 = vadd.f32 %v2475_v14, %v2443_v9 }
 0x64f   : > { %v3455_v33 = vsub.f32 %v3407_v51, %v3439_v62  ;;  %v1929_v23 = vsel %vm888_vm1, %v1899_v41, 0.0 }
 0x650   : > { %v2521_v37 = vsel %vm888_vm1, %v2491_v25, 0.0  ;;  %v1930_v60 = vadd.f32 %v1929_v23, %v1928_v54 }
 0x651   : > { %v3503_v43 = vadd.f32 %v3487_v38, %v3455_v33  ;;  %v2522_v1 = vadd.f32 %v2521_v37, %v2520_v21 }
 0x652   : > { %1931 = vadd.xlane.f32.xlu1 %v1930_v60 }
 0x653   : > { %2523 = vadd.xlane.f32.xlu0 %v2522_v1  ;;  %v3533_v13 = vsel %vm888_vm1, %v3503_v43, 0.0 }
 0x654   : > { %v3534_v16 = vadd.f32 %v3533_v13, %v3532_v20 }
 0x656   : > { %3535 = vadd.xlane.f32.xlu1 %v3534_v16 }
 0x6df   : > { %v1932_v45 = vpop.xlane.xlu1 %1931 }
 0x6e0   : > { %v1933_v3 = vrot.slane %v1932_v45, 4  ;;  %v2524_v46 = vpop.xlane.xlu0 %2523 }
 0x6e1   : > { %v2525_v36 = vrot.slane %v2524_v46, 4 }
 0x6e2   : > { %v1934_v61 = vadd.f32 %v1933_v3, %v1932_v45 }
 0x6e3   : > { %v2526_v28 = vadd.f32 %v2525_v36, %v2524_v46  ;;  %v3536_v6 = vpop.xlane.xlu1 %3535 }
 0x6e4   : > { %v1935_v56 = vrot.slane %v1934_v61, 2  ;;  %v3537_v8 = vrot.slane %v3536_v6, 4 }
 0x6e5   : > { %v2527_v40 = vrot.slane %v2526_v28, 2 }
 0x6e6   : > { %v3538_v24 = vadd.f32 %v3537_v8, %v3536_v6  ;;  %v1936_v42 = vadd.f32 %v1935_v56, %v1934_v61 }
 0x6e7   : > { %v2528_v39 = vadd.f32 %v2527_v40, %v2526_v28 }
 0x6e8   : > { %v3539_v15 = vrot.slane %v3538_v24, 2  ;;  %v1937_v30 = vrot.slane %v1936_v42, 1 }
 0x6e9   : > { %v2529_v63 = vrot.slane %v2528_v39, 1 }
 0x6ea   : > { %v3540_v53 = vadd.f32 %v3539_v15, %v3538_v24  ;;  %v1938_v29 = vadd.f32 %v1937_v30, %v1936_v42 }
 0x6eb   : > { %v2530_v44 = vadd.f32 %v2529_v63, %v2528_v39 }
 0x6ec   : > { %4083 = vpush %v1938_v29  ;;  %v3541_v4 = vrot.slane %v3540_v53, 1 }
 0x6ed   : > { %4085 = vpush %v2530_v44 }
 0x6ee   : > { %v3542_v22 = vadd.f32 %v3541_v4, %v3540_v53 }
 0x6f0   : > { %4087 = vpush %v3542_v22 }
 0x71d   : > { %s4084_s13 = spop %4083 }
 0x71e   : > { %s1940_s0 = sadd.f32 %s4084_s13, %s4082_s1  ;;  %s4086_s5 = spop %4085 }
 0x71f   : > { %s3550_s1 = scalar_lea.sflag [#allocation4], %s5387_s14  ;;  %s5047_s13 = scalar_lea.vmem %s7631_s20, 128 }
 0x720   : > { %s1941_s28 = smul.f32 %s1940_s0, %s343_s22  ;;  %p5048_p8 = scmp.ne.s32.totalorder %s7631_s20, %s5047_s13 }
 0x721   : > { %s4088_s12 = spop %4087  ;;  %s5051_s22 = sshll.u32 %s5129_s19, 4  ;;  %s5052_s22 = int_to_ptr.vmem [resolvable:$false] %s5051_s22 }
 0x722   : > { %s3544_s29 = sadd.f32 %s4088_s12, %s4086_s5  ;;  %p5049_p11 = pnand %p5048_p8, %p8304_p9 }
 0x723   : > { %p5054_p2 = scmp.lt.s32.totalorder %s7631_s20, %s5052_s22 }
 0x724   : > { %s3545_s6 = smul.f32 %s3544_s29, %s1945_s11  ;;  %p5050_p7 = pneg %p5049_p11 }
 0x725   : > { %s5053_s11 = scalar_lea.vmem %s5052_s22, 256 }
 0x726   : > { %s3546_s23 = sadd.f32 %s3545_s6, %s1941_s28  ;;  %p5055_p4 = scmp.lt.s32.totalorder %s5053_s11, %s5047_s13 }
 0x728   : > { %v3547_v19 = vstv %s3546_s23  ;;  %p5056_p0 = por %p5055_p4, %p5054_p2 }
 0x729   : > { %3548 = vst [vmem:[%s336_s10] sm:$0xff] %v3547_v19 }
 0x72a   : > { %p5057_p5 = pnand %p5056_p0, %p5050_p7 }
 0x72c   : > { %5060 = shalt.err (!%p5057_p5)
}
 0x72d   : > { %s5061_s14 = scalar_lea.hbm %s7629_s9, 128  ;;  %s5065_s5 = scalar_lea.hbm %s7676_s4, 512 }
 0x72e   : > { %p5062_p10 = scmp.ne.s32.totalorder %s7629_s9, %s5061_s14  ;;  %p5066_p6 = scmp.lt.u32.totalorder %s7629_s9, %s7676_s4 }
 0x72f   : > { %p5067_p12 = scmp.lt.u32.totalorder %s5065_s5, %s5061_s14  ;;  %p5069_p8 = scmp.lt.u32.totalorder %s5061_s14, %s7629_s9 }
 0x730   : > { %p5063_p13 = pnand %p5062_p10, %p8304_p9 }
 0x731   : > { %p5068_p3 = por %p5067_p12, %p5066_p6 }
 0x732   : > { %p5064_p1 = pneg %p5063_p13 }
 0x733   : > { %p5070_p11 = por %p5069_p8, %p5068_p3 }
 0x735   : > { %p5071_p7 = pnand %p5070_p11, %p5064_p1 }
 0x737   : > { %5074 = shalt.err (!%p5071_p7)
}
 0x738   : > { %4097 = dma.vmem_to_hbm [thread:$0]  (%p8304_p9), %s7631_s20, 128, %s7629_s9, %s3550_s1  }
 0x739 PF: > { %p4117_p2 = scmp.ge.s32.totalorder %s5121_s18, 2  ;;  %s3575_s28 = sand.u32 1, %s5109_s15  }
 0x73a   : > { %p8305_p4 = scmp.ne.s32.totalorder %s7877_s27, 0  ;;  %s3576_s30 = scalar_lea.sflag [#allocation4], %s3575_s28 }
 0x73c   : > { %p4113_p0 = pnand %p4117_p2, %p8305_p4 }
 0x73e   : > { %5104 = dma.done.wait (!%p4113_p0), %s3576_s30, 128  }
 0x73f   : > { %5106 = vsyncadd (!%p4113_p0), %s3576_s30, 4294967168  ;;  %p23_p5 = scmp.ge.s32.totalorder %s5180_s21, 6   ;;  %s8306_s15 = smov %s5113_s16 }
 0x740   : > { %s8307_s16 = smov %s5117_s17  ;;  %s8308_s17 = smov %s5192_s24 }
 0x741   : > { %s8309_s18 = smov %s5180_s21  ;;  %25 = sbr.rel (!%p23_p5) target bundleno = 12 (0xc), region = 122 }
 0x748   :  { %3581 = vsyncpa [#allocation3], 1 }
 0x749   :  { %3583 = vsyncpa [#allocation3 + $0x1], 1 }
 0x74a   :  { %3584 = vsyncpa [#allocation6], 1 }
 0x74b   :  { %3586 = vsyncpa [#allocation6 + $0x1], 1 }
 0x74c   :  { %3587 = vsyncpa [#allocation9], 1 }
 0x74d   :  { %3589 = vsyncpa [#allocation9 + $0x1], 1 }
 0x74e   :  { %3590 = vsyncpa [#allocation4], 1 }
 0x74f   :  { %3592 = vsyncpa [#allocation4 + $0x1], 1 }

</bundles_post_ra>
